<compile_context>
chip_gen: v5e
topology: v5e:2x2
jax: 0.10.0
libtpu: 0.0.40
codegen_flags: <defaults>
</compile_context>

<pallas_src>
import functools

import jax
import jax.numpy as jnp
from jax.experimental import pallas as pl
from jax.experimental.pallas import tpu as pltpu

EPS = 1e-5
LANE = 128


def _round_up(x, m):
    return (x + m - 1) // m * m


def _bottleneck_kernel(x_ref, w1_ref, b1_ref, w2_ref, b2_ref, w3_ref, b3_ref,
                       o_ref, pad_ref, *, H, W):
    HW = H * W
    Pp = pad_ref.shape[-1]

    x = x_ref[0]                                            # (HW, Cin_p) f32

    # conv1 (1x1, BN1 scale folded into weights) + bias + relu.  bf16 MXU, f32 acc.
    out1 = jnp.dot(x.astype(jnp.bfloat16), w1_ref[...],
                   preferred_element_type=jnp.float32)
    out1 = jnp.maximum(out1 + b1_ref[...], 0.0)             # (HW, Pp) f32
    # drop_rate == 0.0 -> dropout is identity, nothing to do.

    # conv2 (3x3, stride=1, dilation=1, padding=1) via a zero-padded VMEM scratch.
    # Borders are zero; interior holds relu(bn1(conv1)).  For each kernel row ky
    # the three column taps are static slices concatenated into a (HW, 3*Pp)
    # slab so each matmul has K = 3*Pp.
    pad_ref[...] = jnp.zeros_like(pad_ref)
    pad_ref[pl.ds(1, H), pl.ds(1, W), :] = out1.reshape(H, W, Pp)

    acc = jnp.zeros((HW, Pp), jnp.float32)
    for ky in range(3):
        taps = [
            pad_ref[pl.ds(ky, H), pl.ds(kx, W), :].reshape(HW, Pp)
                .astype(jnp.bfloat16)
            for kx in range(3)
        ]
        slab = jnp.concatenate(taps, axis=-1)               # (HW, 3*Pp) bf16
        acc = acc + jnp.dot(slab, w2_ref[ky],
                            preferred_element_type=jnp.float32)
    out2 = jnp.maximum(acc + b2_ref[...], 0.0)              # (HW, Pp) f32

    # conv3 (1x1, BN3 scale folded) + bias, residual add (downsample=None), relu.
    out3 = jnp.dot(out2.astype(jnp.bfloat16), w3_ref[...],
                   preferred_element_type=jnp.float32)
    out3 = out3 + b3_ref[...]                               # (HW, Cout_p)
    o_ref[0] = jnp.maximum(out3 + x, 0.0).astype(o_ref.dtype)


def prepare_params(w1_pt, w2_pt, w3_pt, bn1, bn2, bn3):
    """Fold eval-mode BN into conv weights/biases, pad channels to lane multiples,
    lay out weights for the kernel (bf16 matmul operands, f32 biases)."""
    def fold(p):
        g, b, m, v = p
        s = g / jnp.sqrt(v + EPS)
        return s, b - m * s

    s1, c1 = fold(bn1)
    s2, c2 = fold(bn2)
    s3, c3 = fold(bn3)

    P, Cin = w1_pt.shape[0], w1_pt.shape[1]
    Cout = w3_pt.shape[0]
    Cin_p = _round_up(Cin, LANE)
    Pp = _round_up(P, LANE)
    Cout_p = _round_up(Cout, LANE)

    # conv1: OIHW (P, Cin, 1, 1) -> (Cin, P), output-channel scale folded in.
    w1 = jnp.transpose(w1_pt[:, :, 0, 0]) * s1[None, :]
    w1 = jnp.pad(w1, ((0, Cin_p - Cin), (0, Pp - P))).astype(jnp.bfloat16)
    b1 = jnp.pad(c1, (0, Pp - P)).reshape(1, Pp).astype(jnp.float32)

    # conv2: OIHW (P, P, 3, 3) -> (ky, kx, Pin, Pout) -> pad -> (3, 3*Pp, Pp)
    # (kx-major along the contraction axis, matching the in-kernel tap concat).
    w2 = jnp.transpose(w2_pt, (2, 3, 1, 0)) * s2[None, None, None, :]
    w2 = jnp.pad(w2, ((0, 0), (0, 0), (0, Pp - P), (0, Pp - P)))
    w2 = w2.reshape(3, 3 * Pp, Pp).astype(jnp.bfloat16)
    b2 = jnp.pad(c2, (0, Pp - P)).reshape(1, Pp).astype(jnp.float32)

    # conv3: OIHW (Cout, P, 1, 1) -> (P, Cout)
    w3 = jnp.transpose(w3_pt[:, :, 0, 0]) * s3[None, :]
    w3 = jnp.pad(w3, ((0, Pp - P), (0, Cout_p - Cout))).astype(jnp.bfloat16)
    b3 = jnp.pad(c3, (0, Cout_p - Cout)).reshape(1, Cout_p).astype(jnp.float32)

    return (w1, b1, w2, b2, w3, b3)


def bottleneck_pallas(x_nchw, params):
    """x_nchw: (N, Cin, H, W) float32 with Cin == planes*4. Returns (N, Cin, H, W)."""
    N, Cin, H, W = x_nchw.shape
    w1, b1, w2, b2, w3, b3 = params
    Cin_p, Pp = w1.shape
    Cout_p = w3.shape[1]
    assert Cin_p == Cout_p, "residual add requires inplanes == planes * 4 (downsample=None)"
    HW = H * W

    # NCHW -> (N, H*W, C), channel-padded to a lane multiple (no-op for real
    # ResNet channel counts, which are already multiples of 128).
    # TODO(synk): keep activations NHWC end-to-end across blocks to avoid this
    # extra HBM round trip for the layout change.
    x = jnp.transpose(x_nchw, (0, 2, 3, 1)).reshape(N, HW, Cin)
    x = jnp.pad(x, ((0, 0), (0, 0), (0, Cin_p - Cin)))

    kernel = functools.partial(_bottleneck_kernel, H=H, W=W)

    weight_bytes = 2 * (Cin_p * Pp + 9 * Pp * Pp + Pp * Cout_p)
    flops = 2 * N * HW * (Cin_p * Pp + 9 * Pp * Pp + Pp * Cout_p)
    bytes_accessed = 4 * N * HW * (Cin_p + Cout_p) + weight_bytes

    # VMEM budget: double-buffered in/out blocks + weights + padded scratch + temps.
    blk_bytes = 4 * HW * (Cin_p + Cout_p)
    scratch_bytes = 4 * (H + 2) * (W + 2) * Pp
    temp_bytes = 32 * HW * Pp
    vmem_need = 2 * (blk_bytes + weight_bytes) + scratch_bytes + temp_bytes + (4 << 20)
    vmem_limit = int(min(max(vmem_need, 32 << 20), 64 << 20))

    out = pl.pallas_call(
        kernel,
        out_shape=jax.ShapeDtypeStruct((N, HW, Cout_p), jnp.float32),
        grid=(N,),
        in_specs=[
            pl.BlockSpec((1, HW, Cin_p), lambda n: (n, 0, 0)),
            pl.BlockSpec((Cin_p, Pp), lambda n: (0, 0)),
            pl.BlockSpec((1, Pp), lambda n: (0, 0)),
            pl.BlockSpec((3, 3 * Pp, Pp), lambda n: (0, 0, 0)),
            pl.BlockSpec((1, Pp), lambda n: (0, 0)),
            pl.BlockSpec((Pp, Cout_p), lambda n: (0, 0)),
            pl.BlockSpec((1, Cout_p), lambda n: (0, 0)),
        ],
        out_specs=pl.BlockSpec((1, HW, Cout_p), lambda n: (n, 0, 0)),
        scratch_shapes=[pltpu.VMEM((H + 2, W + 2, Pp), jnp.float32)],
        compiler_params=pltpu.CompilerParams(
            dimension_semantics=("parallel",),
            vmem_limit_bytes=vmem_limit),
        cost_estimate=pl.CostEstimate(flops=flops, transcendentals=0,
                                      bytes_accessed=bytes_accessed),
    )(x, w1, b1, w2, b2, w3, b3)

    # TODO(synk): spatial (row-block + halo) grid tiling for very large H*W on
    # v7x's 64 MiB VMEM; per-image blocks are fine at these sizes.
    out = out[:, :, :Cin]                   # strip channel padding (Cout == Cin)
    return jnp.transpose(out.reshape(N, H, W, Cin), (0, 3, 1, 2)).astype(x_nchw.dtype)


# ----------------------- pure-JAX reference (for checking) -----------------------
def _bn_eval(o, p):
    g, b, m, v = p
    s = g / jnp.sqrt(v + EPS)
    return o * s[None, :, None, None] + (b - m * s)[None, :, None, None]


def bottleneck_reference(x, w1_pt, w2_pt, w3_pt, bn1, bn2, bn3):
    dn = ("NCHW", "OIHW", "NCHW")
    out = jax.lax.conv_general_dilated(x, w1_pt, (1, 1), "VALID", dimension_numbers=dn)
    out = jnp.maximum(_bn_eval(out, bn1), 0.0)
    out = jax.lax.conv_general_dilated(out, w2_pt, (1, 1), [(1, 1), (1, 1)],
                                       dimension_numbers=dn)
    out = jnp.maximum(_bn_eval(out, bn2), 0.0)
    out = jax.lax.conv_general_dilated(out, w3_pt, (1, 1), "VALID", dimension_numbers=dn)
    out = _bn_eval(out, bn3)
    return jnp.maximum(out + x, 0.0)


if __name__ == "__main__":
    # TODO(synk): stride>1 / dilation>1 / downsample module / drop_rate>0 not
    # exercised (module defaults: stride=1, dilation=1, downsample=None, drop_rate=0.0).
    N, planes = 2, 4
    inplanes = planes * 4          # 16, so the identity residual is valid
    H = W = 16

    key = jax.random.PRNGKey(0)
    keys = jax.random.split(key, 8)

    x = jax.random.normal(keys[0], (N, inplanes, H, W), jnp.float32)

    # Conv weights in PyTorch OIHW layout (bias=False everywhere).
    w1_pt = 0.1 * jax.random.normal(keys[1], (planes, inplanes, 1, 1), jnp.float32)
    w2_pt = 0.1 * jax.random.normal(keys[2], (planes, planes, 3, 3), jnp.float32)
    w3_pt = 0.1 * jax.random.normal(keys[3], (planes * 4, planes, 1, 1), jnp.float32)

    def bn_params(k, c):
        k1, k2, k3, k4 = jax.random.split(k, 4)
        gamma = 1.0 + 0.1 * jax.random.normal(k1, (c,), jnp.float32)
        beta = 0.1 * jax.random.normal(k2, (c,), jnp.float32)
        mean = 0.1 * jax.random.normal(k3, (c,), jnp.float32)
        var = jax.random.uniform(k4, (c,), jnp.float32, minval=0.5, maxval=1.5)
        return gamma, beta, mean, var

    bn1 = bn_params(keys[4], planes)
    bn2 = bn_params(keys[5], planes)
    bn3 = bn_params(keys[6], planes * 4)

    # One-time weight prep (BN folding, padding, bf16 cast) outside the hot path.
    params = prepare_params(w1_pt, w2_pt, w3_pt, bn1, bn2, bn3)
    params = jax.tree_util.tree_map(jax.block_until_ready, params)

    out = jax.jit(bottleneck_pallas)(x, params)
    out = jax.block_until_ready(out)

    ref = bottleneck_reference(x, w1_pt, w2_pt, w3_pt, bn1, bn2, bn3)
    assert out.shape == ref.shape == (N, inplanes, H, W)
    max_err = float(jnp.max(jnp.abs(out - ref)))
    # bf16 matmul operands -> looser tolerance than the previous fp32 version.
    if not jnp.allclose(out, ref, atol=3e-2, rtol=3e-2):
        raise AssertionError(f"Pallas output mismatch vs reference, max_err={max_err}")
    print("KERNEL_OK")
</pallas_src>

<mosaic_0001>
module attributes {stable_mosaic.version = 11 : i64} {
  func.func @_bottleneck_kernel(%arg0: i32, %arg1: memref<1x256x128xf32, #tpu.memory_space<vmem>>, %arg2: memref<128x128xbf16, #tpu.memory_space<vmem>>, %arg3: memref<1x128xf32, #tpu.memory_space<vmem>>, %arg4: memref<3x384x128xbf16, #tpu.memory_space<vmem>>, %arg5: memref<1x128xf32, #tpu.memory_space<vmem>>, %arg6: memref<128x128xbf16, #tpu.memory_space<vmem>>, %arg7: memref<1x128xf32, #tpu.memory_space<vmem>>, %arg8: memref<1x256x128xf32, #tpu.memory_space<vmem>>, %arg9: memref<18x18x128xf32, #tpu.memory_space<vmem>>) attributes {dimension_semantics = [#tpu.dimension_semantics<parallel>], iteration_bounds = array<i64: 2>, scalar_prefetch = 0 : i64, scratch_operands = 1 : i64, tpu.core_type = #tpu.core_type<tc>, window_params = [{transform_indices = @transform_0, window_bounds = array<i64: 1, 256, 128>}, {pipeline_mode = #tpu.pipeline_mode<synchronous>, transform_indices = @transform_1, window_bounds = array<i64: 128, 128>}, {pipeline_mode = #tpu.pipeline_mode<synchronous>, transform_indices = @transform_2, window_bounds = array<i64: 1, 128>}, {pipeline_mode = #tpu.pipeline_mode<synchronous>, transform_indices = @transform_3, window_bounds = array<i64: 3, 384, 128>}, {pipeline_mode = #tpu.pipeline_mode<synchronous>, transform_indices = @transform_4, window_bounds = array<i64: 1, 128>}, {pipeline_mode = #tpu.pipeline_mode<synchronous>, transform_indices = @transform_5, window_bounds = array<i64: 128, 128>}, {pipeline_mode = #tpu.pipeline_mode<synchronous>, transform_indices = @transform_6, window_bounds = array<i64: 1, 128>}, {transform_indices = @transform_7, window_bounds = array<i64: 1, 256, 128>}]} {
    %c0 = arith.constant 0 : index
    %c0_0 = arith.constant 0 : index
    %c0_1 = arith.constant 0 : index
    %0 = vector.load %arg1[%c0, %c0_0, %c0_1] : memref<1x256x128xf32, #tpu.memory_space<vmem>>, vector<1x256x128xf32>
    %1 = vector.shape_cast %0 : vector<1x256x128xf32> to vector<256x128xf32>
    %2 = arith.truncf %1 : vector<256x128xf32> to vector<256x128xbf16>
    %c0_2 = arith.constant 0 : index
    %c0_3 = arith.constant 0 : index
    %3 = vector.load %arg2[%c0_2, %c0_3] : memref<128x128xbf16, #tpu.memory_space<vmem>>, vector<128x128xbf16>
    %cst = arith.constant dense<0.000000e+00> : vector<256x128xf32>
    %4 = tpu.matmul %2, %3, %cst {dimension_numbers = #tpu.dot_dimension_numbers<[1], [0], [0], [1], [0, 0, 1, 1], [], []>} : vector<256x128xbf16>, vector<128x128xbf16>, vector<256x128xf32> -> vector<256x128xf32>
    %c0_4 = arith.constant 0 : index
    %c0_5 = arith.constant 0 : index
    %5 = vector.load %arg3[%c0_4, %c0_5] : memref<1x128xf32, #tpu.memory_space<vmem>>, vector<1x128xf32>
    %6 = vector.broadcast %5 : vector<1x128xf32> to vector<256x128xf32>
    %7 = arith.addf %4, %6 : vector<256x128xf32>
    %cst_6 = arith.constant 0.000000e+00 : f32
    %8 = vector.broadcast %cst_6 : f32 to vector<256x128xf32>
    %9 = arith.maximumf %7, %8 : vector<256x128xf32>
    %cst_7 = arith.constant 0.000000e+00 : f32
    %10 = vector.broadcast %cst_7 : f32 to vector<18x18x128xf32>
    %c0_8 = arith.constant 0 : index
    %c0_9 = arith.constant 0 : index
    %c0_10 = arith.constant 0 : index
    %11 = vector.load %arg9[%c0_8, %c0_9, %c0_10] : memref<18x18x128xf32, #tpu.memory_space<vmem>>, vector<18x18x128xf32>
    tpu.vector_store %arg9[%c0_8, %c0_9, %c0_10], %10 {strides = array<i32>} : memref<18x18x128xf32, #tpu.memory_space<vmem>>, vector<18x18x128xf32>,
    %12 = vector.shape_cast %9 : vector<256x128xf32> to vector<16x16x128xf32>
    %c1 = arith.constant 1 : index
    %c1_11 = arith.constant 1 : index
    %c0_12 = arith.constant 0 : index
    %13 = vector.load %arg9[%c1, %c1_11, %c0_12] : memref<18x18x128xf32, #tpu.memory_space<vmem>>, vector<16x16x128xf32>
    tpu.vector_store %arg9[%c1, %c1_11, %c0_12], %12 {strides = array<i32>} : memref<18x18x128xf32, #tpu.memory_space<vmem>>, vector<16x16x128xf32>,
    %cst_13 = arith.constant 0.000000e+00 : f32
    %14 = vector.broadcast %cst_13 : f32 to vector<256x128xf32>
    %c0_14 = arith.constant 0 : index
    %c0_15 = arith.constant 0 : index
    %c0_16 = arith.constant 0 : index
    %15 = vector.load %arg9[%c0_14, %c0_15, %c0_16] : memref<18x18x128xf32, #tpu.memory_space<vmem>>, vector<16x16x128xf32>
    %16 = vector.shape_cast %15 : vector<16x16x128xf32> to vector<256x128xf32>
    %17 = arith.truncf %16 : vector<256x128xf32> to vector<256x128xbf16>
    %c0_17 = arith.constant 0 : index
    %c1_18 = arith.constant 1 : index
    %c0_19 = arith.constant 0 : index
    %18 = vector.load %arg9[%c0_17, %c1_18, %c0_19] : memref<18x18x128xf32, #tpu.memory_space<vmem>>, vector<16x16x128xf32>
    %19 = vector.shape_cast %18 : vector<16x16x128xf32> to vector<256x128xf32>
    %20 = arith.truncf %19 : vector<256x128xf32> to vector<256x128xbf16>
    %c0_20 = arith.constant 0 : index
    %c2 = arith.constant 2 : index
    %c0_21 = arith.constant 0 : index
    %21 = vector.load %arg9[%c0_20, %c2, %c0_21] : memref<18x18x128xf32, #tpu.memory_space<vmem>>, vector<16x16x128xf32>
    %22 = vector.shape_cast %21 : vector<16x16x128xf32> to vector<256x128xf32>
    %23 = arith.truncf %22 : vector<256x128xf32> to vector<256x128xbf16>
    %24 = tpu.concatenate %17, %20, %23 in 1 : vector<256x128xbf16>, vector<256x128xbf16>, vector<256x128xbf16> -> vector<256x384xbf16>
    %c0_22 = arith.constant 0 : index
    %c0_23 = arith.constant 0 : index
    %c0_24 = arith.constant 0 : index
    %25 = vector.load %arg4[%c0_22, %c0_23, %c0_24] : memref<3x384x128xbf16, #tpu.memory_space<vmem>>, vector<1x384x128xbf16>
    %26 = vector.shape_cast %25 : vector<1x384x128xbf16> to vector<384x128xbf16>
    %cst_25 = arith.constant dense<0.000000e+00> : vector<256x128xf32>
    %27 = tpu.matmul %24, %26, %cst_25 {dimension_numbers = #tpu.dot_dimension_numbers<[1], [0], [0], [1], [0, 0, 1, 1], [], []>} : vector<256x384xbf16>, vector<384x128xbf16>, vector<256x128xf32> -> vector<256x128xf32>
    %28 = arith.addf %14, %27 : vector<256x128xf32>
    %c1_26 = arith.constant 1 : index
    %c0_27 = arith.constant 0 : index
    %c0_28 = arith.constant 0 : index
    %29 = vector.load %arg9[%c1_26, %c0_27, %c0_28] : memref<18x18x128xf32, #tpu.memory_space<vmem>>, vector<16x16x128xf32>
    %30 = vector.shape_cast %29 : vector<16x16x128xf32> to vector<256x128xf32>
    %31 = arith.truncf %30 : vector<256x128xf32> to vector<256x128xbf16>
    %c1_29 = arith.constant 1 : index
    %c1_30 = arith.constant 1 : index
    %c0_31 = arith.constant 0 : index
    %32 = vector.load %arg9[%c1_29, %c1_30, %c0_31] : memref<18x18x128xf32, #tpu.memory_space<vmem>>, vector<16x16x128xf32>
    %33 = vector.shape_cast %32 : vector<16x16x128xf32> to vector<256x128xf32>
    %34 = arith.truncf %33 : vector<256x128xf32> to vector<256x128xbf16>
    %c1_32 = arith.constant 1 : index
    %c2_33 = arith.constant 2 : index
    %c0_34 = arith.constant 0 : index
    %35 = vector.load %arg9[%c1_32, %c2_33, %c0_34] : memref<18x18x128xf32, #tpu.memory_space<vmem>>, vector<16x16x128xf32>
    %36 = vector.shape_cast %35 : vector<16x16x128xf32> to vector<256x128xf32>
    %37 = arith.truncf %36 : vector<256x128xf32> to vector<256x128xbf16>
    %38 = tpu.concatenate %31, %34, %37 in 1 : vector<256x128xbf16>, vector<256x128xbf16>, vector<256x128xbf16> -> vector<256x384xbf16>
    %c1_35 = arith.constant 1 : index
    %c0_36 = arith.constant 0 : index
    %c0_37 = arith.constant 0 : index
    %39 = vector.load %arg4[%c1_35, %c0_36, %c0_37] : memref<3x384x128xbf16, #tpu.memory_space<vmem>>, vector<1x384x128xbf16>
    %40 = vector.shape_cast %39 : vector<1x384x128xbf16> to vector<384x128xbf16>
    %cst_38 = arith.constant dense<0.000000e+00> : vector<256x128xf32>
    %41 = tpu.matmul %38, %40, %cst_38 {dimension_numbers = #tpu.dot_dimension_numbers<[1], [0], [0], [1], [0, 0, 1, 1], [], []>} : vector<256x384xbf16>, vector<384x128xbf16>, vector<256x128xf32> -> vector<256x128xf32>
    %42 = arith.addf %28, %41 : vector<256x128xf32>
    %c2_39 = arith.constant 2 : index
    %c0_40 = arith.constant 0 : index
    %c0_41 = arith.constant 0 : index
    %43 = vector.load %arg9[%c2_39, %c0_40, %c0_41] : memref<18x18x128xf32, #tpu.memory_space<vmem>>, vector<16x16x128xf32>
    %44 = vector.shape_cast %43 : vector<16x16x128xf32> to vector<256x128xf32>
    %45 = arith.truncf %44 : vector<256x128xf32> to vector<256x128xbf16>
    %c2_42 = arith.constant 2 : index
    %c1_43 = arith.constant 1 : index
    %c0_44 = arith.constant 0 : index
    %46 = vector.load %arg9[%c2_42, %c1_43, %c0_44] : memref<18x18x128xf32, #tpu.memory_space<vmem>>, vector<16x16x128xf32>
    %47 = vector.shape_cast %46 : vector<16x16x128xf32> to vector<256x128xf32>
    %48 = arith.truncf %47 : vector<256x128xf32> to vector<256x128xbf16>
    %c2_45 = arith.constant 2 : index
    %c2_46 = arith.constant 2 : index
    %c0_47 = arith.constant 0 : index
    %49 = vector.load %arg9[%c2_45, %c2_46, %c0_47] : memref<18x18x128xf32, #tpu.memory_space<vmem>>, vector<16x16x128xf32>
    %50 = vector.shape_cast %49 : vector<16x16x128xf32> to vector<256x128xf32>
    %51 = arith.truncf %50 : vector<256x128xf32> to vector<256x128xbf16>
    %52 = tpu.concatenate %45, %48, %51 in 1 : vector<256x128xbf16>, vector<256x128xbf16>, vector<256x128xbf16> -> vector<256x384xbf16>
    %c2_48 = arith.constant 2 : index
    %c0_49 = arith.constant 0 : index
    %c0_50 = arith.constant 0 : index
    %53 = vector.load %arg4[%c2_48, %c0_49, %c0_50] : memref<3x384x128xbf16, #tpu.memory_space<vmem>>, vector<1x384x128xbf16>
    %54 = vector.shape_cast %53 : vector<1x384x128xbf16> to vector<384x128xbf16>
    %cst_51 = arith.constant dense<0.000000e+00> : vector<256x128xf32>
    %55 = tpu.matmul %52, %54, %cst_51 {dimension_numbers = #tpu.dot_dimension_numbers<[1], [0], [0], [1], [0, 0, 1, 1], [], []>} : vector<256x384xbf16>, vector<384x128xbf16>, vector<256x128xf32> -> vector<256x128xf32>
    %56 = arith.addf %42, %55 : vector<256x128xf32>
    %c0_52 = arith.constant 0 : index
    %c0_53 = arith.constant 0 : index
    %57 = vector.load %arg5[%c0_52, %c0_53] : memref<1x128xf32, #tpu.memory_space<vmem>>, vector<1x128xf32>
    %58 = vector.broadcast %57 : vector<1x128xf32> to vector<256x128xf32>
    %59 = arith.addf %56, %58 : vector<256x128xf32>
    %cst_54 = arith.constant 0.000000e+00 : f32
    %60 = vector.broadcast %cst_54 : f32 to vector<256x128xf32>
    %61 = arith.maximumf %59, %60 : vector<256x128xf32>
    %62 = arith.truncf %61 : vector<256x128xf32> to vector<256x128xbf16>
    %c0_55 = arith.constant 0 : index
    %c0_56 = arith.constant 0 : index
    %63 = vector.load %arg6[%c0_55, %c0_56] : memref<128x128xbf16, #tpu.memory_space<vmem>>, vector<128x128xbf16>
    %cst_57 = arith.constant dense<0.000000e+00> : vector<256x128xf32>
    %64 = tpu.matmul %62, %63, %cst_57 {dimension_numbers = #tpu.dot_dimension_numbers<[1], [0], [0], [1], [0, 0, 1, 1], [], []>} : vector<256x128xbf16>, vector<128x128xbf16>, vector<256x128xf32> -> vector<256x128xf32>
    %c0_58 = arith.constant 0 : index
    %c0_59 = arith.constant 0 : index
    %65 = vector.load %arg7[%c0_58, %c0_59] : memref<1x128xf32, #tpu.memory_space<vmem>>, vector<1x128xf32>
    %66 = vector.broadcast %65 : vector<1x128xf32> to vector<256x128xf32>
    %67 = arith.addf %64, %66 : vector<256x128xf32>
    %68 = arith.addf %67, %1 : vector<256x128xf32>
    %cst_60 = arith.constant 0.000000e+00 : f32
    %69 = vector.broadcast %cst_60 : f32 to vector<256x128xf32>
    %70 = arith.maximumf %68, %69 : vector<256x128xf32>
    %c0_61 = arith.constant 0 : index
    %c0_62 = arith.constant 0 : index
    %c0_63 = arith.constant 0 : index
    %71 = vector.load %arg8[%c0_61, %c0_62, %c0_63] : memref<1x256x128xf32, #tpu.memory_space<vmem>>, vector<1x256x128xf32>
    %72 = vector.shape_cast %71 : vector<1x256x128xf32> to vector<256x128xf32>
    %73 = vector.shape_cast %70 : vector<256x128xf32> to vector<1x256x128xf32>
    tpu.vector_store %arg8[%c0_61, %c0_62, %c0_63], %73 {strides = array<i32>} : memref<1x256x128xf32, #tpu.memory_space<vmem>>, vector<1x256x128xf32>,
    return
  }
  func.func @transform_0(%arg0: i32) -> (i32, i32, i32) {
    %c0_i32 = arith.constant 0 : i32
    %c0_i32_0 = arith.constant 0 : i32
    %c0_i32_1 = arith.constant 0 : i32
    return %arg0, %c0_i32, %c0_i32_0 : i32, i32, i32
  }
  func.func @transform_1(%arg0: i32) -> (i32, i32) {
    %c0_i32 = arith.constant 0 : i32
    %c0_i32_0 = arith.constant 0 : i32
    %c0_i32_1 = arith.constant 0 : i32
    return %c0_i32, %c0_i32_0 : i32, i32
  }
  func.func @transform_2(%arg0: i32) -> (i32, i32) {
    %c0_i32 = arith.constant 0 : i32
    %c0_i32_0 = arith.constant 0 : i32
    %c0_i32_1 = arith.constant 0 : i32
    return %c0_i32, %c0_i32_0 : i32, i32
  }
  func.func @transform_3(%arg0: i32) -> (i32, i32, i32) {
    %c0_i32 = arith.constant 0 : i32
    %c0_i32_0 = arith.constant 0 : i32
    %c0_i32_1 = arith.constant 0 : i32
    %c0_i32_2 = arith.constant 0 : i32
    return %c0_i32, %c0_i32_0, %c0_i32_1 : i32, i32, i32
  }
  func.func @transform_4(%arg0: i32) -> (i32, i32) {
    %c0_i32 = arith.constant 0 : i32
    %c0_i32_0 = arith.constant 0 : i32
    %c0_i32_1 = arith.constant 0 : i32
    return %c0_i32, %c0_i32_0 : i32, i32
  }
  func.func @transform_5(%arg0: i32) -> (i32, i32) {
    %c0_i32 = arith.constant 0 : i32
    %c0_i32_0 = arith.constant 0 : i32
    %c0_i32_1 = arith.constant 0 : i32
    return %c0_i32, %c0_i32_0 : i32, i32
  }
  func.func @transform_6(%arg0: i32) -> (i32, i32) {
    %c0_i32 = arith.constant 0 : i32
    %c0_i32_0 = arith.constant 0 : i32
    %c0_i32_1 = arith.constant 0 : i32
    return %c0_i32, %c0_i32_0 : i32, i32
  }
  func.func @transform_7(%arg0: i32) -> (i32, i32, i32) {
    %c0_i32 = arith.constant 0 : i32
    %c0_i32_0 = arith.constant 0 : i32
    %c0_i32_1 = arith.constant 0 : i32
    return %arg0, %c0_i32, %c0_i32_0 : i32, i32, i32
  }
}

</mosaic_0001>

<bundles_post_ra>
// kernel: bottleneck_pallas.1
= control target key start
LH: loop header
LB: loop body
LE: loop exit
PB: predicated region body
PF: predicated region fallthrough
CT: control target
= control target key end

     0   :  { %s4515_s24 = smov 0   ;;  %s5874_s0 = inlined_call_operand.vmem [shape: f32[2,256,128], index: 0, kind: input, shape index: {}]   ;;  %s5875_s1 = inlined_call_operand.vmem [shape: bf16[128,128], index: 1, kind: input, shape index: {}]   ;;  %s5876_s2 = inlined_call_operand.vmem [shape: f32[1,128], index: 2, kind: input, shape index: {}]   ;;  %s5877_s3 = inlined_call_operand.vmem [shape: bf16[3,384,128], index: 3, kind: input, shape index: {}]   ;;  %s5878_s4 = inlined_call_operand.vmem [shape: f32[1,128], index: 4, kind: input, shape index: {}]   ;;  %s5879_s5 = inlined_call_operand.vmem [shape: bf16[128,128], index: 5, kind: input, shape index: {}]   ;;  %s5880_s6 = inlined_call_operand.vmem [shape: f32[1,128], index: 6, kind: input, shape index: {}]   ;;  %s5881_s7 = inlined_call_operand.vmem [shape: f32[2,256,128], index: 7, kind: output, shape index: {}]  }
   0x1 LB: > { %s3847_s25 = sadd.s32 4294967295, %s4471_s24   ;;  %p3851_p0 = scmp.ge.s32.totalorder %s4471_s24, 1  ;;  %s4471_s24 = sphi %s4515_s24, %s17_s24  }
   0x2   : > { %p237_p1 = scmp.lt.s32.totalorder %s4471_s24, 3 }
   0x4   : > { %p238_p2 = pnand %p3851_p0, %p237_p1 }
   0x6   : > { %241 = sbr.rel (%p238_p2) target bundleno = 1177 (0x499), region = 48 }
   0xb   : > { %v4315_v0 = vld [vmem:[%s5875_s1 + $0x38] sm:$0xff]  ;;  %v4314_v1 = vld [vmem:[%s5875_s1 + $0x30] sm:$0xff]  ;;  %v4313_v2 = vld [vmem:[%s5875_s1 + $0x28] sm:$0xff]  ;;  %p269_p3 = scmp.lt.s32.totalorder %s3847_s25, 1  ;;  %v4473_v47 = vmov 0.0  }
   0xc   : > { %395 = vmatpush.bf16.msra.mxu0 %v4315_v0  ;;  %4396 = vmatpush.bf16.msra.mxu3 %v4315_v0  ;;  %v4312_v3 = vld [vmem:[%s5875_s1 + $0x20] sm:$0xff]  ;;  %v4311_v4 = vld [vmem:[%s5875_s1 + $0x18] sm:$0xff]  ;;  %v4310_v5 = vld [vmem:[%s5875_s1 + $0x10] sm:$0xff]  ;;  %519 = vst [vmem:[#allocation2 + $0x18] sm:$0xff] %v4473_v47 }
   0xd   : > { %s5941_s25 = smov (!%p269_p3, %s3847_s25), 1  ;;  %v4309_v6 = vld [vmem:[%s5875_s1 + $0x8] sm:$0xff]  ;;  %v4308_v7 = vld [vmem:[%s5875_s1] sm:$0xff]  ;;  %v4580_v38 = vld [vmem:[%s5877_s3 + $0x138] sm:$0xff]  ;;  %520 = vst [vmem:[#allocation2 + $0x20] sm:$0xff] %v4473_v47 }
   0xe   : > { %s4306_s15 = sshll.u32 %s5941_s25, 8  ;;  %v4347_v39 = vld [vmem:[%s5877_s3 + $0xf8] sm:$0xff]  ;;  %1893 = vmatpush.bf16.msra.mxu2 %v4580_v38  ;;  %v4589_v40 = vld [vmem:[%s5877_s3 + $0x130] sm:$0xff]  ;;  %v4595_v41 = vld [vmem:[%s5877_s3 + $0x128] sm:$0xff]  ;;  %516 = vst [vmem:[#allocation2] sm:$0xff] %v4473_v47 }
   0xf   : > { %s4552_s20 = scalar_lea.vmem %s5874_s0, %s4306_s15  ;;  %1804 = vmatpush.bf16.msra.mxu1 %v4347_v39  ;;  %v4346_v44 = vld [vmem:[%s5877_s3 + $0xf0] sm:$0xff]  ;;  %v4345_v46 = vld [vmem:[%s5877_s3 + $0xe8] sm:$0xff]  ;;  %517 = vst [vmem:[#allocation2 + $0x8] sm:$0xff] %v4473_v47  ;;  %v4621_v50 = vld [vmem:[%s5877_s3 + $0x120] sm:$0xff]  ;;  %s5743_s19 = scalar_lea.vmem %s5881_s7, %s4306_s15 }
  0x10   : > { %396 = vmatpush.bf16.msra.mxu0 %v4314_v1  ;;  %4397 = vmatpush.bf16.msra.mxu3 %v4314_v1  ;;  %v279_v8 = vld [vmem:[%s4552_s20] sm:$0xff]  ;;  %v280_v9 = vld [vmem:[%s4552_s20 + $0x8] sm:$0xff]  ;;  %v281_v14 = vld [vmem:[%s4552_s20 + $0x10] sm:$0xff]  ;;  %518 = vst [vmem:[#allocation2 + $0x10] sm:$0x3] %v4473_v47 }
  0x11   : > { %v303_v10 = vld [vmem:[%s4552_s20 + $0xc0] sm:$0xff]  ;;  %v304_v11 = vld [vmem:[%s4552_s20 + $0xc8] sm:$0xff]  ;;  %v311_v12 = vpack.c.bf16 %v280_v9, %v279_v8  ;;  %v282_v15 = vld [vmem:[%s4552_s20 + $0x18] sm:$0xff]  ;;  %521 = vst [vmem:[#allocation2 + $0x28] sm:$0x3] %v4473_v47 }
  0x12   : > { %v323_v13 = vpack.c.bf16 %v304_v11, %v303_v10  ;;  %v305_v16 = vld [vmem:[%s4552_s20 + $0xd0] sm:$0xff]  ;;  %v306_v17 = vld [vmem:[%s4552_s20 + $0xd8] sm:$0xff]  ;;  %v312_v18 = vpack.c.bf16 %v282_v15, %v281_v14  ;;  %v283_v20 = vld [vmem:[%s4552_s20 + $0x20] sm:$0xff]  ;;  %1894 = vmatpush.bf16.msra.mxu2 %v4589_v40  ;;  %522 = vst [vmem:[#allocation2 + $0x30] sm:$0xff] %v4473_v47 }
  0x13   : > { %v324_v19 = vpack.c.bf16 %v306_v17, %v305_v16  ;;  %v284_v21 = vld [vmem:[%s4552_s20 + $0x28] sm:$0xff]  ;;  %v307_v22 = vld [vmem:[%s4552_s20 + $0xe0] sm:$0xff]  ;;  %v285_v26 = vld [vmem:[%s4552_s20 + $0x30] sm:$0xff]  ;;  %1805 = vmatpush.bf16.msra.mxu1 %v4346_v44  ;;  %523 = vst [vmem:[#allocation2 + $0x38] sm:$0xff] %v4473_v47 }
  0x14   : > { %397 = vmatpush.bf16.msra.mxu0 %v4313_v2  ;;  %4398 = vmatpush.bf16.msra.mxu3 %v4313_v2  ;;  %v308_v23 = vld [vmem:[%s4552_s20 + $0xe8] sm:$0xff]  ;;  %v313_v24 = vpack.c.bf16 %v284_v21, %v283_v20  ;;  %v286_v27 = vld [vmem:[%s4552_s20 + $0x38] sm:$0xff]  ;;  %v309_v28 = vld [vmem:[%s4552_s20 + $0xf0] sm:$0xff]  ;;  %524 = vst [vmem:[#allocation2 + $0x40] sm:$0x3] %v4473_v47 }
  0x15   : > { %v325_v25 = vpack.c.bf16 %v308_v23, %v307_v22  ;;  %v310_v29 = vld [vmem:[%s4552_s20 + $0xf8] sm:$0xff]  ;;  %v314_v30 = vpack.c.bf16 %v286_v27, %v285_v26  ;;  %v287_v32 = vld [vmem:[%s4552_s20 + $0x40] sm:$0xff]  ;;  %v288_v33 = vld [vmem:[%s4552_s20 + $0x48] sm:$0xff]  ;;  %525 = vst [vmem:[#allocation2 + $0x48] sm:$0xff] %v4473_v47 }
  0x16   : > { %v326_v31 = vpack.c.bf16 %v310_v29, %v309_v28  ;;  %v315_v34 = vpack.c.bf16 %v288_v33, %v287_v32  ;;  %v289_v35 = vld [vmem:[%s4552_s20 + $0x50] sm:$0xff]  ;;  %v290_v36 = vld [vmem:[%s4552_s20 + $0x58] sm:$0xff]  ;;  %v291_v42 = vld [vmem:[%s4552_s20 + $0x60] sm:$0xff]  ;;  %1895 = vmatpush.bf16.msra.mxu2 %v4595_v41  ;;  %526 = vst [vmem:[#allocation2 + $0x50] sm:$0xff] %v4473_v47 }
  0x17   : > { %v316_v37 = vpack.c.bf16 %v290_v36, %v289_v35  ;;  %v292_v43 = vld [vmem:[%s4552_s20 + $0x68] sm:$0xff]  ;;  %1806 = vmatpush.bf16.msra.mxu1 %v4345_v46  ;;  %v293_v48 = vld [vmem:[%s4552_s20 + $0x70] sm:$0xff]  ;;  %v294_v49 = vld [vmem:[%s4552_s20 + $0x78] sm:$0xff]  ;;  %527 = vst [vmem:[#allocation2 + $0x58] sm:$0x3] %v4473_v47 }
  0x18   : > { %398 = vmatpush.bf16.msra.mxu0 %v4312_v3  ;;  %4399 = vmatpush.bf16.msra.mxu3 %v4312_v3  ;;  %v317_v45 = vpack.c.bf16 %v292_v43, %v291_v42  ;;  %v318_v51 = vpack.c.bf16 %v294_v49, %v293_v48  ;;  %528 = vst [vmem:[#allocation2 + $0x60] sm:$0xff] %v4473_v47  ;;  %v4631_v52 = vld [vmem:[%s5877_s3 + $0x118] sm:$0xff]  ;;  %v4344_v53 = vld [vmem:[%s5877_s3 + $0xe0] sm:$0xff]  ;;  %v4644_v54 = vld [vmem:[%s5877_s3 + $0x110] sm:$0xff] }
  0x19   : > { %529 = vst [vmem:[#allocation2 + $0x68] sm:$0xff] %v4473_v47  ;;  %v4343_v55 = vld [vmem:[%s5877_s3 + $0xd8] sm:$0xff]  ;;  %v4657_v56 = vld [vmem:[%s5877_s3 + $0x108] sm:$0xff]  ;;  %v295_v57 = vld [vmem:[%s4552_s20 + $0x80] sm:$0xff] }
  0x1a   : > { %1896 = vmatpush.bf16.msra.mxu2 %v4621_v50  ;;  %530 = vst [vmem:[#allocation2 + $0x70] sm:$0x3] %v4473_v47  ;;  %v296_v58 = vld [vmem:[%s4552_s20 + $0x88] sm:$0xff]  ;;  %v4668_v59 = vld [vmem:[%s5876_s2] ss:$0 sm:$0xff]  ;;  %v4342_v60 = vld [vmem:[%s5877_s3 + $0xd0] sm:$0xff] }
  0x1b   : > { %531 = vst [vmem:[#allocation2 + $0x78] sm:$0xff] %v4473_v47  ;;  %1807 = vmatpush.bf16.msra.mxu1 %v4344_v53  ;;  %v4677_v61 = vld [vmem:[%s5877_s3 + $0x100] sm:$0xff]  ;;  %v319_v62 = vpack.c.bf16 %v296_v58, %v295_v57  ;;  %v4341_v63 = vld [vmem:[%s5877_s3 + $0xc8] sm:$0xff]  ;;  %v4323_v1 = vld [vmem:[%s5877_s3 + $0x38] sm:$0xff] }
  0x1c   : > { %399 = vmatpush.bf16.msra.mxu0 %v4311_v4  ;;  %4400 = vmatpush.bf16.msra.mxu3 %v4311_v4  ;;  %532 = vst [vmem:[#allocation2 + $0x80] sm:$0xff] %v4473_v47  ;;  %v4340_v4 = vld [vmem:[%s5877_s3 + $0xc0] sm:$0xff]  ;;  %v4331_v8 = vld [vmem:[%s5877_s3 + $0x78] sm:$0xff]  ;;  %v297_v11 = vld [vmem:[%s4552_s20 + $0x90] sm:$0xff] }
  0x1d   : > { %533 = vst [vmem:[#allocation2 + $0x88] sm:$0x3] %v4473_v47  ;;  %v4322_v14 = vld [vmem:[%s5877_s3 + $0x30] sm:$0xff]  ;;  %v4320_v35 = vld [vmem:[%s5877_s3 + $0x20] sm:$0xff] }
  0x1e   : > { %1897 = vmatpush.bf16.msra.mxu2 %v4631_v52  ;;  %534 = vst [vmem:[#allocation2 + $0x90] sm:$0xff] %v4473_v47  ;;  %v4330_v36 = vld [vmem:[%s5877_s3 + $0x70] sm:$0xff] }
  0x1f   : > { %535 = vst [vmem:[#allocation2 + $0x98] sm:$0xff] %v4473_v47  ;;  %1808 = vmatpush.bf16.msra.mxu1 %v4343_v55 }
  0x20   : > { %400 = vmatpush.bf16.msra.mxu0 %v4310_v5  ;;  %4401 = vmatpush.bf16.msra.mxu3 %v4310_v5  ;;  %536 = vst [vmem:[#allocation2 + $0xa0] sm:$0x3] %v4473_v47 }
  0x21   : > { %537 = vst [vmem:[#allocation2 + $0xa8] sm:$0xff] %v4473_v47 }
  0x22   : > { %1898 = vmatpush.bf16.msra.mxu2 %v4644_v54  ;;  %538 = vst [vmem:[#allocation2 + $0xb0] sm:$0xff] %v4473_v47 }
  0x23   : > { %539 = vst [vmem:[#allocation2 + $0xb8] sm:$0x3] %v4473_v47  ;;  %1809 = vmatpush.bf16.msra.mxu1 %v4342_v60 }
  0x24   : > { %401 = vmatpush.bf16.msra.mxu0 %v4309_v6  ;;  %4402 = vmatpush.bf16.msra.mxu3 %v4309_v6  ;;  %540 = vst [vmem:[#allocation2 + $0xc0] sm:$0xff] %v4473_v47 }
  0x25   : > { %541 = vst [vmem:[#allocation2 + $0xc8] sm:$0xff] %v4473_v47 }
  0x26   : > { %1899 = vmatpush.bf16.msra.mxu2 %v4657_v56  ;;  %542 = vst [vmem:[#allocation2 + $0xd0] sm:$0x3] %v4473_v47 }
  0x27   : > { %543 = vst [vmem:[#allocation2 + $0xd8] sm:$0xff] %v4473_v47  ;;  %1810 = vmatpush.bf16.msra.mxu1 %v4341_v63 }
  0x28   : > { %402 = vmatpush.bf16.msra.mxu0 %v4308_v7  ;;  %4403 = vmatpush.bf16.msra.mxu3 %v4308_v7  ;;  %544 = vst [vmem:[#allocation2 + $0xe0] sm:$0xff] %v4473_v47 }
  0x29   : > { %545 = vst [vmem:[#allocation2 + $0xe8] sm:$0x3] %v4473_v47 }
  0x2a   : > { %1900 = vmatpush.bf16.msra.mxu2 %v4677_v61  ;;  %546 = vst [vmem:[#allocation2 + $0xf0] sm:$0xff] %v4473_v47 }
  0x2b   : > { %403 = vmatmul.bf16.vlgmr.msra.gmra.mxu0 %v311_v12  ;;  %463 = vmatmul.bf16.vlgmr.msra.gmra.mxu3 %v323_v13  ;;  %547 = vst [vmem:[#allocation2 + $0xf8] sm:$0xff] %v4473_v47  ;;  %v298_v12 = vld [vmem:[%s4552_s20 + $0x98] sm:$0xff] }
  0x2c   : > { %4404 = vmatpush.bf16.msrb.mxu3 %v4347_v39  ;;  %2215 = vmatpush.bf16.msrb.mxu0 %v4323_v1  ;;  %548 = vst [vmem:[#allocation2 + $0x100] sm:$0x3] %v4473_v47  ;;  %v320_v16 = vpack.c.bf16 %v298_v12, %v297_v11 }
  0x2d   : > { %549 = vst [vmem:[#allocation2 + $0x108] sm:$0xff] %v4473_v47  ;;  %1811 = vmatpush.bf16.msra.mxu1 %v4340_v4 }
  0x2e   : > { %550 = vst [vmem:[#allocation2 + $0x110] sm:$0xff] %v4473_v47 }
  0x2f   : > { %551 = vst [vmem:[#allocation2 + $0x118] sm:$0x3] %v4473_v47 }
  0x30   : > { %4405 = vmatpush.bf16.msrb.mxu3 %v4346_v44  ;;  %552 = vst [vmem:[#allocation2 + $0x120] sm:$0xff] %v4473_v47  ;;  %2216 = vmatpush.bf16.msrb.mxu0 %v4322_v14 }
  0x31   : > { %553 = vst [vmem:[#allocation2 + $0x128] sm:$0xff] %v4473_v47  ;;  %2304 = vmatpush.bf16.msrb.mxu1 %v4331_v8 }
  0x32   : > { %554 = vst [vmem:[#allocation2 + $0x130] sm:$0x3] %v4473_v47 }
  0x33   : > { %555 = vst [vmem:[#allocation2 + $0x138] sm:$0xff] %v4473_v47 }
  0x34   : > { %4406 = vmatpush.bf16.msrb.mxu3 %v4345_v46  ;;  %556 = vst [vmem:[#allocation2 + $0x140] sm:$0xff] %v4473_v47 }
  0x35   : > { %557 = vst [vmem:[#allocation2 + $0x148] sm:$0x3] %v4473_v47  ;;  %2305 = vmatpush.bf16.msrb.mxu1 %v4330_v36 }
  0x36   : > { %558 = vst [vmem:[#allocation2 + $0x150] sm:$0xff] %v4473_v47 }
  0x37   : > { %559 = vst [vmem:[#allocation2 + $0x158] sm:$0xff] %v4473_v47 }
  0x38   : > { %4407 = vmatpush.bf16.msrb.mxu3 %v4344_v53  ;;  %560 = vst [vmem:[#allocation2 + $0x160] sm:$0x3] %v4473_v47 }
  0x39   : > { %561 = vst [vmem:[#allocation2 + $0x168] sm:$0xff] %v4473_v47 }
  0x3a   : > { %562 = vst [vmem:[#allocation2 + $0x170] sm:$0xff] %v4473_v47 }
  0x3b   : > { %408 = vmatmul.bf16.gmra.mxu0 %v312_v18  ;;  %468 = vmatmul.bf16.gmra.mxu3 %v324_v19  ;;  %563 = vst [vmem:[#allocation2 + $0x178] sm:$0x3] %v4473_v47 }
  0x3c   : > { %4408 = vmatpush.bf16.msrb.mxu3 %v4343_v55  ;;  %564 = vst [vmem:[#allocation2 + $0x180] sm:$0xff] %v4473_v47 }
  0x3d   : > { %565 = vst [vmem:[#allocation2 + $0x188] sm:$0xff] %v4473_v47 }
  0x3e   : > { %566 = vst [vmem:[#allocation2 + $0x190] sm:$0x3] %v4473_v47 }
  0x3f   : > { %567 = vst [vmem:[#allocation2 + $0x198] sm:$0xff] %v4473_v47 }
  0x40   : > { %4409 = vmatpush.bf16.msrb.mxu3 %v4342_v60  ;;  %568 = vst [vmem:[#allocation2 + $0x1a0] sm:$0xff] %v4473_v47  ;;  %v4318_v60 = vld [vmem:[%s5877_s3 + $0x10] sm:$0xff] }
  0x41   : > { %569 = vst [vmem:[#allocation2 + $0x1a8] sm:$0x3] %v4473_v47  ;;  %v4319_v47 = vld [vmem:[%s5877_s3 + $0x18] sm:$0xff] }
  0x44   : > { %4410 = vmatpush.bf16.msrb.mxu3 %v4341_v63 }
  0x48   : > { %4411 = vmatpush.bf16.msrb.mxu3 %v4340_v4 }
  0x4b   : > { %413 = vmatmul.bf16.gmra.mxu0 %v313_v24  ;;  %473 = vmatmul.bf16.gmra.mxu3 %v325_v25 }
  0x4c   : > { %4412 = vmatpush.bf16.msra.mxu3 %v4580_v38  ;;  %v300_v38 = vld [vmem:[%s4552_s20 + $0xa8] sm:$0xff] }
  0x50   : > { %4413 = vmatpush.bf16.msra.mxu3 %v4589_v40 }
  0x54   : > { %4414 = vmatpush.bf16.msra.mxu3 %v4595_v41 }
  0x58   : > { %4415 = vmatpush.bf16.msra.mxu3 %v4621_v50 }
  0x5b   : > { %418 = vmatmul.bf16.gmra.mxu0 %v314_v30  ;;  %478 = vmatmul.bf16.gmra.mxu3 %v326_v31  ;;  %v4321_v31 = vld [vmem:[%s5877_s3 + $0x28] sm:$0xff] }
  0x5c   : > { %4416 = vmatpush.bf16.msra.mxu3 %v4631_v52  ;;  %2217 = vmatpush.bf16.msrb.mxu0 %v4321_v31 }
  0x60   : > { %4417 = vmatpush.bf16.msra.mxu3 %v4644_v54  ;;  %2218 = vmatpush.bf16.msrb.mxu0 %v4320_v35 }
  0x64   : > { %4418 = vmatpush.bf16.msra.mxu3 %v4657_v56  ;;  %2219 = vmatpush.bf16.msrb.mxu0 %v4319_v47 }
  0x68   : > { %4419 = vmatpush.bf16.msra.mxu3 %v4677_v61  ;;  %2220 = vmatpush.bf16.msrb.mxu0 %v4318_v60  ;;  %v301_v61 = vld [vmem:[%s4552_s20 + $0xb0] sm:$0xff] }
  0x6b   : > { %423 = vmatmul.bf16.gmra.mxu0 %v315_v34 }
  0x7b   : > { %428 = vmatmul.bf16.gmra.mxu0 %v316_v37  ;;  %v299_v37 = vld [vmem:[%s4552_s20 + $0xa0] sm:$0xff] }
  0x7c   : > { %v321_v43 = vpack.c.bf16 %v300_v38, %v299_v37 }
  0x8b   : > { %433 = vmatmul.bf16.gmra.mxu0 %v317_v45 }
  0x9b   : > { %438 = vmatmul.bf16.gmra.mxu0 %v318_v51 }
  0xa8   : > { %v404_v0 = vpop.f32.mrf.mxu0 }
  0xa9   : > { %v405_v2 = vadd.f32 %v4668_v59, %v404_v0 }
  0xab   : > { %v484_v3 = vmax.f32 %v405_v2, 0.0  ;;  %443 = vmatmul.bf16.gmra.mxu0 %v319_v62 }
  0xad   : > { %571 = vst [vmem:[#allocation2 + $0x19] sm:$0xff] %v484_v3  ;;  %v1227_v10 = vpack.c.bf16 %v484_v3, %v484_v3 }
  0xae   : > { %v464_v5 = vpop.f32.mrf.mxu3 }
  0xaf   : > { %v1451_v17 = vunpack.c.l.b16 %v1227_v10  ;;  %v465_v21 = vadd.f32 %v4668_v59, %v464_v5  ;;  %v302_v10 = vld [vmem:[%s4552_s20 + $0xb8] sm:$0xff] }
  0xb0   : > { %v406_v6 = vpop.f32.mrf.mxu0 }
  0xb1   : > { %v407_v7 = vadd.f32 %v4668_v59, %v406_v6  ;;  %v4731_v25 = vmax.f32 %v465_v21, 0.0 }
  0xb3   : > { %v485_v9 = vmax.f32 %v407_v7, 0.0  ;;  %595 = vst [vmem:[#allocation2 + $0x139] sm:$0xff] %v4731_v25 }
  0xb4   : > { %v1131_v41 = vld [vmem:[#allocation2 + $0x18] sm:$0xff] }
  0xb5   : > { %v1228_v13 = vpack.c.bf16 %v485_v9, %v485_v9  ;;  %572 = vst [vmem:[#allocation2 + $0x21] sm:$0xff] %v485_v9  ;;  %v1163_v51 = vpack.c.bf16 %v1131_v41, %v1131_v41  ;;  %v4317_v9 = vld [vmem:[%s5877_s3 + $0x8] sm:$0xff] }
  0xb6   : > { %v466_v15 = vpop.f32.mrf.mxu3  ;;  %2221 = vmatpush.bf16.msrb.mxu0 %v4317_v9 }
  0xb7   : > { %v1452_v18 = vunpack.c.l.b16 %v1228_v13  ;;  %v467_v23 = vadd.f32 %v4668_v59, %v466_v15  ;;  %v1355_v63 = vunpack.c.l.b16 %v1163_v51  ;;  %v4474_v51 = vmov 0.0|0.0  }
  0xb8   : > { %v409_v19 = vpop.f32.mrf.mxu0 }
  0xb9   : > { %v1483_v20 = vpack.c.b16 %v1452_v18, %v1451_v17  ;;  %v410_v22 = vadd.f32 %v4668_v59, %v409_v19  ;;  %v4736_v29 = vmax.f32 %v467_v23, 0.0  ;;  %v1251_v17 = vpack.c.bf16 %v4731_v25, %v4731_v25 }
  0xba   : > { %v1155_v52 = vld [vmem:[#allocation2 + $0x138] sm:$0xff] }
  0xbb   : > { %448 = vmatmul.bf16.gmra.mxu0 %v320_v16  ;;  %1901 = vmatmul.bf16.vlgmr.msra.gmra.mxu2 %v1483_v20  ;;  %v486_v26 = vmax.f32 %v410_v22, 0.0  ;;  %596 = vst [vmem:[#allocation2 + $0x141] sm:$0xff] %v4736_v29  ;;  %v1187_v55 = vpack.c.bf16 %v1155_v52, %v1155_v52  ;;  %v4316_v16 = vld [vmem:[%s5877_s3] sm:$0xff]  ;;  %v1252_v18 = vpack.c.bf16 %v4736_v29, %v4736_v29  ;;  %v827_v52 = vunpack.c.l.b16 %v4474_v51 }
  0xbc   : > { %v1132_v53 = vld [vmem:[#allocation2 + $0x20] sm:$0xff]  ;;  %v322_v20 = vpack.c.bf16 %v302_v10, %v301_v61  ;;  %2222 = vmatpush.bf16.msrb.mxu0 %v4316_v16 }
  0xbd   : > { %v1229_v34 = vpack.c.bf16 %v486_v26, %v486_v26  ;;  %573 = vst [vmem:[#allocation2 + $0x31] sm:$0xff] %v486_v26  ;;  %v1164_v57 = vpack.c.bf16 %v1132_v53, %v1132_v53  ;;  %v1379_v56 = vunpack.c.l.b16 %v1187_v55  ;;  %v4791_v26 = vunpack.c.l.b16 %v1251_v17  ;;  %v4329_v53 = vld [vmem:[%s5877_s3 + $0x68] sm:$0xff] }
  0xbe   : > { %v469_v24 = vpop.f32.mrf.mxu3  ;;  %2306 = vmatpush.bf16.msrb.mxu1 %v4329_v53 }
  0xbf   : > { %v470_v27 = vadd.f32 %v4668_v59, %v469_v24  ;;  %v1453_v44 = vunpack.c.l.b16 %v1229_v34  ;;  %v1356_v0 = vunpack.c.l.b16 %v1164_v57 }
  0xc0   : > { %v411_v28 = vpop.f32.mrf.mxu0 }
  0xc1   : > { %v412_v30 = vadd.f32 %v4668_v59, %v411_v28  ;;  %v4745_v32 = vmax.f32 %v470_v27, 0.0  ;;  %v4772_v4 = vpack.c.b16 %v1356_v0, %v1355_v63  ;;  %v4793_v27 = vunpack.c.l.b16 %v1252_v18 }
  0xc2   : > { %v1156_v58 = vld [vmem:[#allocation2 + $0x140] sm:$0xff]  ;;  %v859_v0 = vpack.c.b16 %v827_v52, %v827_v52 }
  0xc3   : > { %v487_v33 = vmax.f32 %v412_v30, 0.0  ;;  %597 = vst [vmem:[#allocation2 + $0x151] sm:$0xff] %v4745_v32  ;;  %v1188_v62 = vpack.c.bf16 %v1156_v58, %v1156_v58  ;;  %1812 = vmatmul.bf16.vlgmr.msra.gmra.mxu1 %v4772_v4  ;;  %v1495_v29 = vpack.c.b16 %v4793_v27, %v4791_v26 }
  0xc4   : > { %v1133_v19 = vld [vmem:[#allocation2 + $0x30] sm:$0xff] }
  0xc5   : > { %v1230_v39 = vpack.c.bf16 %v487_v33, %v487_v33  ;;  %574 = vst [vmem:[#allocation2 + $0x39] sm:$0xff] %v487_v33  ;;  %v1380_v2 = vunpack.c.l.b16 %v1188_v62  ;;  %v1165_v25 = vpack.c.bf16 %v1133_v19, %v1133_v19  ;;  %v1253_v62 = vpack.c.bf16 %v4745_v32, %v4745_v32 }
  0xc6   : > { %v471_v40 = vpop.f32.mrf.mxu3 }
  0xc7   : > { %v472_v42 = vadd.f32 %v4668_v59, %v471_v40  ;;  %v1454_v45 = vunpack.c.l.b16 %v1230_v39  ;;  %v1399_v6 = vpack.c.b16 %v1380_v2, %v1379_v56 }
  0xc8   : > { %v414_v46 = vpop.f32.mrf.mxu0 }
  0xc9   : > { %v4762_v48 = vmax.f32 %v472_v42, 0.0  ;;  %v415_v49 = vadd.f32 %v4668_v59, %v414_v46  ;;  %v1484_v50 = vpack.c.b16 %v1454_v45, %v1453_v44  ;;  %1872 = vmatmul.bf16.vlgmr.msrb.gmra.mxu3 %v1399_v6  ;;  %v1357_v42 = vunpack.c.l.b16 %v1165_v25 }
  0xca   : > { %v1157_v13 = vld [vmem:[#allocation2 + $0x150] sm:$0xff]  ;;  %v4817_v6 = vunpack.c.l.b16 %v1253_v62 }
  0xcb   : > { %598 = vst [vmem:[#allocation2 + $0x159] sm:$0xff] %v4762_v48  ;;  %v488_v54 = vmax.f32 %v415_v49, 0.0  ;;  %453 = vmatmul.bf16.gmra.mxu0 %v321_v43  ;;  %1906 = vmatmul.bf16.gmra.mxu2 %v1484_v50  ;;  %v1189_v24 = vpack.c.bf16 %v1157_v13, %v1157_v13  ;;  %v1254_v56 = vpack.c.bf16 %v4762_v48, %v4762_v48 }
  0xcc   : > { %v1134_v12 = vld [vmem:[#allocation2 + $0x38] sm:$0xff] }
  0xcd   : > { %575 = vst [vmem:[#allocation2 + $0x49] sm:$0xff] %v488_v54  ;;  %v1231_v14 = vpack.c.bf16 %v488_v54, %v488_v54  ;;  %v1166_v22 = vpack.c.bf16 %v1134_v12, %v1134_v12  ;;  %v1381_v40 = vunpack.c.l.b16 %v1189_v24 }
  0xce   : > { %v474_v1 = vpop.f32.mrf.mxu3 }
  0xcf   : > { %v475_v3 = vadd.f32 %v4668_v59, %v474_v1  ;;  %v1455_v31 = vunpack.c.l.b16 %v1231_v14  ;;  %v1358_v38 = vunpack.c.l.b16 %v1166_v22 }
  0xd0   : > { %v416_v5 = vpop.f32.mrf.mxu0 }
  0xd1   : > { %v4774_v7 = vmax.f32 %v475_v3, 0.0  ;;  %v417_v8 = vadd.f32 %v4668_v59, %v416_v5  ;;  %v4802_v43 = vpack.c.b16 %v1358_v38, %v1357_v42 }
  0xd2   : > { %v1158_v15 = vld [vmem:[#allocation2 + $0x158] sm:$0xff] }
  0xd3   : > { %599 = vst [vmem:[#allocation2 + $0x169] sm:$0xff] %v4774_v7  ;;  %v489_v11 = vmax.f32 %v417_v8, 0.0  ;;  %v1190_v30 = vpack.c.bf16 %v1158_v15, %v1158_v15  ;;  %1817 = vmatmul.bf16.gmra.mxu1 %v4802_v43  ;;  %v4819_v8 = vunpack.c.l.b16 %v1254_v56 }
  0xd4   : > { %v1135_v63 = vld [vmem:[#allocation2 + $0x48] sm:$0xff] }
  0xd5   : > { %576 = vst [vmem:[#allocation2 + $0x51] sm:$0xff] %v489_v11  ;;  %v1232_v21 = vpack.c.bf16 %v489_v11, %v489_v11  ;;  %v1382_v41 = vunpack.c.l.b16 %v1190_v30  ;;  %v1167_v32 = vpack.c.bf16 %v1135_v63, %v1135_v63  ;;  %v1496_v48 = vpack.c.b16 %v4819_v8, %v4817_v6 }
  0xd6   : > { %v476_v23 = vpop.f32.mrf.mxu3 }
  0xd7   : > { %v477_v28 = vadd.f32 %v4668_v59, %v476_v23  ;;  %v1456_v33 = vunpack.c.l.b16 %v1232_v21  ;;  %v1400_v45 = vpack.c.b16 %v1382_v41, %v1381_v40 }
  0xd8   : > { %v419_v34 = vpop.f32.mrf.mxu0 }
  0xd9   : > { %v4798_v35 = vmax.f32 %v477_v28, 0.0  ;;  %v420_v36 = vadd.f32 %v4668_v59, %v419_v34  ;;  %v1485_v37 = vpack.c.b16 %v1456_v33, %v1455_v31  ;;  %1877 = vmatmul.bf16.gmra.mxu3 %v1400_v45  ;;  %v4328_v33 = vld [vmem:[%s5877_s3 + $0x60] sm:$0xff] }
  0xda   : > { %v1159_v57 = vld [vmem:[#allocation2 + $0x168] sm:$0xff]  ;;  %2307 = vmatpush.bf16.msrb.mxu1 %v4328_v33 }
  0xdb   : > { %600 = vst [vmem:[#allocation2 + $0x171] sm:$0xff] %v4798_v35  ;;  %v490_v39 = vmax.f32 %v420_v36, 0.0  ;;  %458 = vmatmul.bf16.gmra.mxu0 %v322_v20  ;;  %1911 = vmatmul.bf16.gmra.mxu2 %v1485_v37  ;;  %v1191_v5 = vpack.c.bf16 %v1159_v57, %v1159_v57  ;;  %v1359_v20 = vunpack.c.l.b16 %v1167_v32  ;;  %v1255_v36 = vpack.c.bf16 %v4774_v7, %v4774_v7 }
  0xdc   : > { %v1136_v55 = vld [vmem:[#allocation2 + $0x50] sm:$0xff]  ;;  %v1256_v37 = vpack.c.bf16 %v4798_v35, %v4798_v35 }
  0xdd   : > { %577 = vst [vmem:[#allocation2 + $0x61] sm:$0xff] %v490_v39  ;;  %v1233_v58 = vpack.c.bf16 %v490_v39, %v490_v39  ;;  %v1168_v2 = vpack.c.bf16 %v1136_v55, %v1136_v55  ;;  %v1383_v18 = vunpack.c.l.b16 %v1191_v5  ;;  %v4839_v41 = vunpack.c.l.b16 %v1255_v36 }
  0xde   : > { %v479_v44 = vpop.f32.mrf.mxu3  ;;  %v4841_v42 = vunpack.c.l.b16 %v1256_v37 }
  0xdf   : > { %v480_v46 = vadd.f32 %v4668_v59, %v479_v44  ;;  %v1457_v10 = vunpack.c.l.b16 %v1233_v58  ;;  %v1360_v16 = vunpack.c.l.b16 %v1168_v2 }
  0xe0   : > { %v421_v47 = vpop.f32.mrf.mxu0  ;;  %v1497_v7 = vpack.c.b16 %v4841_v42, %v4839_v41 }
  0xe1   : > { %v4805_v49 = vmax.f32 %v480_v46, 0.0  ;;  %v422_v50 = vadd.f32 %v4668_v59, %v421_v47  ;;  %v4828_v21 = vpack.c.b16 %v1360_v16, %v1359_v20 }
  0xe2   : > { %v1160_v60 = vld [vmem:[#allocation2 + $0x170] sm:$0xff] }
  0xe3   : > { %601 = vst [vmem:[#allocation2 + $0x181] sm:$0xff] %v4805_v49  ;;  %v491_v54 = vmax.f32 %v422_v50, 0.0  ;;  %v1192_v61 = vpack.c.bf16 %v1160_v60, %v1160_v60  ;;  %1822 = vmatmul.bf16.gmra.mxu1 %v4828_v21 }
  0xe4   : > { %v1137_v38 = vld [vmem:[#allocation2 + $0x60] sm:$0xff] }
  0xe5   : > { %578 = vst [vmem:[#allocation2 + $0x69] sm:$0xff] %v491_v54  ;;  %v1234_v1 = vpack.c.bf16 %v491_v54, %v491_v54  ;;  %v1384_v19 = vunpack.c.l.b16 %v1192_v61  ;;  %v1169_v50 = vpack.c.bf16 %v1137_v38, %v1137_v38 }
  0xe6   : > { %v481_v3 = vpop.f32.mrf.mxu3 }
  0xe7   : > { %v482_v9 = vadd.f32 %v4668_v59, %v481_v3  ;;  %v1458_v11 = vunpack.c.l.b16 %v1234_v1  ;;  %v1401_v22 = vpack.c.b16 %v1384_v19, %v1383_v18  ;;  %v1361_v58 = vunpack.c.l.b16 %v1169_v50 }
  0xe8   : > { %v424_v12 = vpop.f32.mrf.mxu0  ;;  %v1257_v3 = vpack.c.bf16 %v4805_v49, %v4805_v49 }
  0xe9   : > { %v4824_v13 = vmax.f32 %v482_v9, 0.0  ;;  %v425_v14 = vadd.f32 %v4668_v59, %v424_v12  ;;  %v1486_v15 = vpack.c.b16 %v1458_v11, %v1457_v10  ;;  %1882 = vmatmul.bf16.gmra.mxu3 %v1401_v22 }
  0xea   : > { %v1161_v25 = vld [vmem:[#allocation2 + $0x180] sm:$0xff]  ;;  %v4855_v10 = vunpack.c.l.b16 %v1257_v3 }
  0xeb   : > { %602 = vst [vmem:[#allocation2 + $0x189] sm:$0xff] %v4824_v13  ;;  %v492_v17 = vmax.f32 %v425_v14, 0.0  ;;  %2223 = vmatmul.bf16.vlgmr.msrb.gmra.mxu0 %v859_v0  ;;  %1916 = vmatmul.bf16.gmra.mxu2 %v1486_v15  ;;  %v1193_v44 = vpack.c.bf16 %v1161_v25, %v1161_v25 }
  0xec   : > { %v1138_v30 = vld [vmem:[#allocation2 + $0x68] sm:$0xff] }
  0xed   : > { %579 = vst [vmem:[#allocation2 + $0x79] sm:$0xff] %v492_v17  ;;  %v1235_v31 = vpack.c.bf16 %v492_v17, %v492_v17  ;;  %v1170_v40 = vpack.c.bf16 %v1138_v30, %v1138_v30  ;;  %v1385_v55 = vunpack.c.l.b16 %v1193_v44 }
  0xef   : > { %v1459_v46 = vunpack.c.l.b16 %v1235_v31  ;;  %v1362_v53 = vunpack.c.l.b16 %v1170_v40  ;;  %v4363_v31 = vld [vmem:[%s5877_s3 + $0x178] sm:$0xff]  ;;  %v4361_v40 = vld [vmem:[%s5877_s3 + $0x168] sm:$0xff] }
  0xf0   : > { %v426_v23 = vpop.f32.mrf.mxu0  ;;  %1982 = vmatpush.bf16.msrb.mxu3 %v4363_v31 }
  0xf1   : > { %v427_v24 = vadd.f32 %v4668_v59, %v426_v23  ;;  %v4847_v60 = vpack.c.b16 %v1362_v53, %v1361_v58 }
  0xf2   : > { %v1162_v34 = vld [vmem:[#allocation2 + $0x188] sm:$0xff] }
  0xf3   : > { %v493_v28 = vmax.f32 %v427_v24, 0.0  ;;  %v1194_v45 = vpack.c.bf16 %v1162_v34, %v1162_v34  ;;  %1827 = vmatmul.bf16.gmra.mxu1 %v4847_v60  ;;  %v4327_v24 = vld [vmem:[%s5877_s3 + $0x58] sm:$0xff]  ;;  %v4362_v34 = vld [vmem:[%s5877_s3 + $0x170] sm:$0xff] }
  0xf4   : > { %v1139_v5 = vld [vmem:[#allocation2 + $0x78] sm:$0xff]  ;;  %2308 = vmatpush.bf16.msrb.mxu1 %v4327_v24  ;;  %1983 = vmatpush.bf16.msrb.mxu3 %v4362_v34 }
  0xf5   : > { %580 = vst [vmem:[#allocation2 + $0x81] sm:$0xff] %v493_v28  ;;  %v1236_v39 = vpack.c.bf16 %v493_v28, %v493_v28  ;;  %v1386_v57 = vunpack.c.l.b16 %v1194_v45  ;;  %v1171_v14 = vpack.c.bf16 %v1139_v5, %v1139_v5  ;;  %v4339_v34 = vld [vmem:[%s5877_s3 + $0xb8] sm:$0xff] }
  0xf6   : > { %2393 = vmatpush.bf16.msrb.mxu2 %v4339_v34 }
  0xf7   : > { %v1460_v47 = vunpack.c.l.b16 %v1236_v39  ;;  %v1402_v62 = vpack.c.b16 %v1386_v57, %v1385_v55  ;;  %v1363_v19 = vunpack.c.l.b16 %v1171_v14  ;;  %v4359_v55 = vld [vmem:[%s5877_s3 + $0x158] sm:$0xff] }
  0xf8   : > { %v429_v51 = vpop.f32.mrf.mxu0  ;;  %1984 = vmatpush.bf16.msrb.mxu3 %v4361_v40 }
  0xf9   : > { %v430_v35 = vadd.f32 %v4668_v59, %v429_v51  ;;  %v1487_v52 = vpack.c.b16 %v1460_v47, %v1459_v46  ;;  %1887 = vmatmul.bf16.gmra.mxu3 %v1402_v62 }
  0xfb   : > { %v494_v54 = vmax.f32 %v430_v35, 0.0  ;;  %2228 = vmatmul.bf16.gmra.mxu0 %v4772_v4  ;;  %1921 = vmatmul.bf16.gmra.mxu2 %v1487_v52  ;;  %v1258_v4 = vpack.c.bf16 %v4824_v13, %v4824_v13  ;;  %v4360_v35 = vld [vmem:[%s5877_s3 + $0x160] sm:$0xff] }
  0xfc   : > { %v1140_v1 = vld [vmem:[#allocation2 + $0x80] sm:$0xff]  ;;  %1985 = vmatpush.bf16.msrb.mxu3 %v4360_v35 }
  0xfd   : > { %581 = vst [vmem:[#allocation2 + $0x91] sm:$0xff] %v494_v54  ;;  %v1237_v2 = vpack.c.bf16 %v494_v54, %v494_v54  ;;  %v1172_v61 = vpack.c.bf16 %v1140_v1, %v1140_v1  ;;  %v4857_v11 = vunpack.c.l.b16 %v1258_v4  ;;  %v4326_v54 = vld [vmem:[%s5877_s3 + $0x50] sm:$0xff] }
  0xfe   : > { %2309 = vmatpush.bf16.msrb.mxu1 %v4326_v54 }
  0xff   : > { %v1461_v32 = vunpack.c.l.b16 %v1237_v2  ;;  %v1498_v16 = vpack.c.b16 %v4857_v11, %v4855_v10  ;;  %v1364_v18 = vunpack.c.l.b16 %v1172_v61 }
 0x100   : > { %v431_v56 = vpop.f32.mrf.mxu0  ;;  %1986 = vmatpush.bf16.msrb.mxu3 %v4359_v55  ;;  %v4338_v55 = vld [vmem:[%s5877_s3 + $0xb0] sm:$0xff] }
 0x101   : > { %v432_v63 = vadd.f32 %v4668_v59, %v431_v56  ;;  %v4863_v20 = vpack.c.b16 %v1364_v18, %v1363_v19  ;;  %2394 = vmatpush.bf16.msrb.mxu2 %v4338_v55 }
 0x103   : > { %v495_v0 = vmax.f32 %v432_v63, 0.0  ;;  %1832 = vmatmul.bf16.gmra.mxu1 %v4863_v20  ;;  %v4358_v63 = vld [vmem:[%s5877_s3 + $0x150] sm:$0xff] }
 0x104   : > { %v1141_v33 = vld [vmem:[#allocation2 + $0x90] sm:$0xff]  ;;  %1987 = vmatpush.bf16.msrb.mxu3 %v4358_v63 }
 0x105   : > { %582 = vst [vmem:[#allocation2 + $0x99] sm:$0xff] %v495_v0  ;;  %v1238_v9 = vpack.c.bf16 %v495_v0, %v495_v0  ;;  %v1173_v27 = vpack.c.bf16 %v1141_v33, %v1141_v33 }
 0x107   : > { %v1462_v12 = vunpack.c.l.b16 %v1238_v9  ;;  %v1365_v46 = vunpack.c.l.b16 %v1173_v27  ;;  %v4357_v9 = vld [vmem:[%s5877_s3 + $0x148] sm:$0xff] }
 0x108   : > { %v434_v15 = vpop.f32.mrf.mxu0  ;;  %1988 = vmatpush.bf16.msrb.mxu3 %v4357_v9 }
 0x109   : > { %v435_v49 = vadd.f32 %v4668_v59, %v434_v15  ;;  %v1488_v17 = vpack.c.b16 %v1462_v12, %v1461_v32  ;;  %1961 = vmatmul.bf16.vlgmr.msra.gmra.mxu3 %v1495_v29 }
 0x10b   : > { %v496_v13 = vmax.f32 %v435_v49, 0.0  ;;  %2233 = vmatmul.bf16.gmra.mxu0 %v4802_v43  ;;  %1926 = vmatmul.bf16.gmra.mxu2 %v1488_v17 }
 0x10c   : > { %v1142_v43 = vld [vmem:[#allocation2 + $0x98] sm:$0xff] }
 0x10d   : > { %583 = vst [vmem:[#allocation2 + $0xa9] sm:$0xff] %v496_v13  ;;  %v1239_v30 = vpack.c.bf16 %v496_v13, %v496_v13  ;;  %v1174_v36 = vpack.c.bf16 %v1142_v43, %v1142_v43 }
 0x10f   : > { %v1463_v37 = vunpack.c.l.b16 %v1239_v30  ;;  %v1366_v44 = vunpack.c.l.b16 %v1174_v36 }
 0x110   : > { %v436_v22 = vpop.f32.mrf.mxu0 }
 0x111   : > { %v437_v23 = vadd.f32 %v4668_v59, %v436_v22  ;;  %v4884_v47 = vpack.c.b16 %v1366_v44, %v1365_v46 }
 0x113   : > { %v497_v28 = vmax.f32 %v437_v23, 0.0  ;;  %1837 = vmatmul.bf16.gmra.mxu1 %v4884_v47 }
 0x114   : > { %v1143_v57 = vld [vmem:[#allocation2 + $0xa8] sm:$0xff] }
 0x115   : > { %584 = vst [vmem:[#allocation2 + $0xb1] sm:$0xff] %v497_v28  ;;  %v1240_v25 = vpack.c.bf16 %v497_v28, %v497_v28  ;;  %v1175_v8 = vpack.c.bf16 %v1143_v57, %v1143_v57 }
 0x117   : > { %v1464_v26 = vunpack.c.l.b16 %v1240_v25  ;;  %v1367_v4 = vunpack.c.l.b16 %v1175_v8  ;;  %v4325_v25 = vld [vmem:[%s5877_s3 + $0x48] sm:$0xff] }
 0x118   : > { %v439_v29 = vpop.f32.mrf.mxu0  ;;  %2310 = vmatpush.bf16.msrb.mxu1 %v4325_v25  ;;  %v4334_v25 = vld [vmem:[%s5877_s3 + $0x90] sm:$0xff] }
 0x119   : > { %v440_v38 = vadd.f32 %v4668_v59, %v439_v29  ;;  %v1489_v39 = vpack.c.b16 %v1464_v26, %v1463_v37  ;;  %1966 = vmatmul.bf16.gmra.mxu3 %v1496_v48 }
 0x11b   : > { %v498_v45 = vmax.f32 %v440_v38, 0.0  ;;  %2238 = vmatmul.bf16.gmra.mxu0 %v4828_v21  ;;  %1931 = vmatmul.bf16.gmra.mxu2 %v1489_v39  ;;  %v1259_v38 = vld [vmem:[#allocation2 + $0x1a] sm:$0xff]  ;;  %v1260_v39 = vld [vmem:[#allocation2 + $0x22] sm:$0xff] }
 0x11c   : > { %v1144_v52 = vld [vmem:[#allocation2 + $0xb0] sm:$0xff]  ;;  %v1291_v10 = vpack.c.bf16 %v1259_v38, %v1259_v38  ;;  %v1292_v11 = vpack.c.bf16 %v1260_v39, %v1260_v39  ;;  %v4333_v38 = vld [vmem:[%s5877_s3 + $0x88] sm:$0xff] }
 0x11d   : > { %585 = vst [vmem:[#allocation2 + $0xc1] sm:$0xff] %v498_v45  ;;  %v1241_v53 = vpack.c.bf16 %v498_v45, %v498_v45  ;;  %v1176_v62 = vpack.c.bf16 %v1144_v52, %v1144_v52 }
 0x11e   : > { %v1548_v54 = vunpack.c.l.b16 %v1292_v11  ;;  %v1264_v11 = vld [vmem:[#allocation2 + $0x52] sm:$0xff] }
 0x11f   : > { %v1465_v56 = vunpack.c.l.b16 %v1241_v53  ;;  %v1368_v2 = vunpack.c.l.b16 %v1176_v62  ;;  %v1547_v53 = vunpack.c.l.b16 %v1291_v10  ;;  %v1263_v10 = vld [vmem:[#allocation2 + $0x4a] sm:$0xff] }
 0x120   : > { %v441_v50 = vpop.f32.mrf.mxu0 }
 0x121   : > { %v442_v51 = vadd.f32 %v4668_v59, %v441_v50  ;;  %v4905_v5 = vpack.c.b16 %v1368_v2, %v1367_v4  ;;  %v4942_v8 = vpack.c.b16 %v1548_v54, %v1547_v53  ;;  %v4336_v4 = vld [vmem:[%s5877_s3 + $0xa0] sm:$0xff]  ;;  %v4371_v53 = vld [vmem:[%s5877_s3 + $0x1b8] sm:$0xff] }
 0x123   : > { %v499_v21 = vmax.f32 %v442_v51, 0.0  ;;  %1842 = vmatmul.bf16.gmra.mxu1 %v4905_v5 }
 0x124   : > { %v1145_v49 = vld [vmem:[#allocation2 + $0xc0] sm:$0xff] }
 0x125   : > { %586 = vst [vmem:[#allocation2 + $0xc9] sm:$0xff] %v499_v21  ;;  %v1242_v58 = vpack.c.bf16 %v499_v21, %v499_v21  ;;  %v1177_v22 = vpack.c.bf16 %v1145_v49, %v1145_v49 }
 0x127   : > { %v1466_v6 = vunpack.c.l.b16 %v1242_v58  ;;  %v1369_v41 = vunpack.c.l.b16 %v1177_v22 }
 0x128   : > { %v444_v48 = vpop.f32.mrf.mxu0 }
 0x129   : > { %v445_v0 = vadd.f32 %v4668_v59, %v444_v48  ;;  %v1490_v1 = vpack.c.b16 %v1466_v6, %v1465_v56  ;;  %1971 = vmatmul.bf16.gmra.mxu3 %v1497_v7  ;;  %v4337_v48 = vld [vmem:[%s5877_s3 + $0xa8] sm:$0xff] }
 0x12a   : > { %2395 = vmatpush.bf16.msrb.mxu2 %v4337_v48 }
 0x12b   : > { %v500_v3 = vmax.f32 %v445_v0, 0.0  ;;  %2243 = vmatmul.bf16.gmra.mxu0 %v4847_v60  ;;  %1936 = vmatmul.bf16.gmra.mxu2 %v1490_v1  ;;  %v4356_v60 = vld [vmem:[%s5877_s3 + $0x140] sm:$0xff] }
 0x12c   : > { %v1146_v14 = vld [vmem:[#allocation2 + $0xc8] sm:$0xff]  ;;  %1989 = vmatpush.bf16.msrb.mxu3 %v4356_v60  ;;  %v1262_v60 = vld [vmem:[#allocation2 + $0x3a] sm:$0xff] }
 0x12d   : > { %587 = vst [vmem:[#allocation2 + $0xd9] sm:$0xff] %v500_v3  ;;  %v1243_v15 = vpack.c.bf16 %v500_v3, %v500_v3  ;;  %v1178_v18 = vpack.c.bf16 %v1146_v14, %v1146_v14 }
 0x12e   : > { %2396 = vmatpush.bf16.msrb.mxu2 %v4336_v4 }
 0x12f   : > { %v1467_v13 = vunpack.c.l.b16 %v1243_v15  ;;  %v1370_v43 = vunpack.c.l.b16 %v1178_v18 }
 0x130   : > { %v446_v61 = vpop.f32.mrf.mxu0  ;;  %3156 = vmatpush.bf16.msra.mxu3 %v4371_v53 }
 0x131   : > { %v447_v32 = vadd.f32 %v4668_v59, %v446_v61  ;;  %v4920_v42 = vpack.c.b16 %v1370_v43, %v1369_v41  ;;  %v4335_v43 = vld [vmem:[%s5877_s3 + $0x98] sm:$0xff] }
 0x132   : > { %2397 = vmatpush.bf16.msrb.mxu2 %v4335_v43 }
 0x133   : > { %v501_v12 = vmax.f32 %v447_v32, 0.0  ;;  %1847 = vmatmul.bf16.gmra.mxu1 %v4920_v42  ;;  %v1261_v32 = vld [vmem:[#allocation2 + $0x32] sm:$0xff] }
 0x134   : > { %v1147_v26 = vld [vmem:[#allocation2 + $0xd8] sm:$0xff] }
 0x135   : > { %588 = vst [vmem:[#allocation2 + $0xe1] sm:$0xff] %v501_v12  ;;  %v1244_v17 = vpack.c.bf16 %v501_v12, %v501_v12  ;;  %v1179_v46 = vpack.c.bf16 %v1147_v26, %v1147_v26 }
 0x136   : > { %2398 = vmatpush.bf16.msrb.mxu2 %v4334_v25 }
 0x137   : > { %v1468_v19 = vunpack.c.l.b16 %v1244_v17  ;;  %v1371_v52 = vunpack.c.l.b16 %v1179_v46  ;;  %v4324_v17 = vld [vmem:[%s5877_s3 + $0x40] sm:$0xff] }
 0x138   : > { %v449_v23 = vpop.f32.mrf.mxu0  ;;  %2311 = vmatpush.bf16.msrb.mxu1 %v4324_v17 }
 0x139   : > { %v450_v24 = vadd.f32 %v4668_v59, %v449_v23  ;;  %v1491_v28 = vpack.c.b16 %v1468_v19, %v1467_v13  ;;  %1976 = vmatmul.bf16.gmra.mxu3 %v1498_v16  ;;  %v1293_v23 = vpack.c.bf16 %v1261_v32, %v1261_v32 }
 0x13a   : > { %2399 = vmatpush.bf16.msrb.mxu2 %v4333_v38 }
 0x13b   : > { %v502_v30 = vmax.f32 %v450_v24, 0.0  ;;  %2248 = vmatmul.bf16.gmra.mxu0 %v4863_v20  ;;  %1941 = vmatmul.bf16.gmra.mxu2 %v1491_v28  ;;  %v1294_v24 = vpack.c.bf16 %v1262_v60, %v1262_v60 }
 0x13c   : > { %v1148_v36 = vld [vmem:[#allocation2 + $0xe0] sm:$0xff] }
 0x13d   : > { %589 = vst [vmem:[#allocation2 + $0xf1] sm:$0xff] %v502_v30  ;;  %v1245_v37 = vpack.c.bf16 %v502_v30, %v502_v30  ;;  %v1180_v29 = vpack.c.bf16 %v1148_v36, %v1148_v36 }
 0x13e   : > { %v1902_v7 = vpop.f32.mrf.mxu2 }
 0x13f   : > { %v1469_v44 = vunpack.c.l.b16 %v1245_v37  ;;  %v1372_v35 = vunpack.c.l.b16 %v1180_v29 }
 0x140   : > { %v451_v31 = vpop.f32.mrf.mxu0  ;;  %v1813_v62 = vpop.f32.mrf.mxu1 }
 0x141   : > { %v452_v33 = vadd.f32 %v4668_v59, %v451_v31  ;;  %v4938_v57 = vpack.c.b16 %v1372_v35, %v1371_v52  ;;  %v4940_v56 = vadd.f32 %v1902_v7, %v1813_v62  ;;  %v1549_v31 = vunpack.c.l.b16 %v1293_v23 }
 0x142   : > { %v1295_v62 = vpack.c.bf16 %v1263_v10, %v1263_v10 }
 0x143   : > { %v503_v20 = vmax.f32 %v452_v33, 0.0  ;;  %1852 = vmatmul.bf16.gmra.mxu1 %v4938_v57  ;;  %v1550_v33 = vunpack.c.l.b16 %v1294_v24 }
 0x144   : > { %v1149_v2 = vld [vmem:[#allocation2 + $0xf0] sm:$0xff] }
 0x145   : > { %590 = vst [vmem:[#allocation2 + $0xf9] sm:$0xff] %v503_v20  ;;  %v1246_v27 = vpack.c.bf16 %v503_v20, %v503_v20  ;;  %v1181_v13 = vpack.c.bf16 %v1149_v2, %v1149_v2  ;;  %v1551_v2 = vunpack.c.l.b16 %v1295_v62  ;;  %v1268_v62 = vld [vmem:[#allocation2 + $0x82] sm:$0xff] }
 0x146   : > { %v1904_v40 = vpop.f32.mrf.mxu2 }
 0x147   : > { %v1470_v45 = vunpack.c.l.b16 %v1246_v27  ;;  %v1373_v7 = vunpack.c.l.b16 %v1181_v13  ;;  %v4387_v13 = vld [vmem:[%s5877_s3 + $0x238] sm:$0xff] }
 0x148   : > { %v454_v50 = vpop.f32.mrf.mxu0  ;;  %v1815_v14 = vpop.f32.mrf.mxu1  ;;  %3334 = vmatpush.bf16.msra.mxu1 %v4387_v13 }
 0x149   : > { %v455_v51 = vadd.f32 %v4668_v59, %v454_v50  ;;  %v1492_v16 = vpack.c.b16 %v1470_v45, %v1469_v44  ;;  %1990 = vmatmul.bf16.vlgmr.msrb.gmra.mxu3 %v4942_v8  ;;  %v4958_v18 = vadd.f32 %v1904_v40, %v1815_v14  ;;  %v4332_v50 = vld [vmem:[%s5877_s3 + $0x80] sm:$0xff] }
 0x14a   : > { %2400 = vmatpush.bf16.msrb.mxu2 %v4332_v50 }
 0x14b   : > { %v504_v21 = vmax.f32 %v455_v51, 0.0  ;;  %2253 = vmatmul.bf16.gmra.mxu0 %v4884_v47  ;;  %1946 = vmatmul.bf16.gmra.mxu2 %v1492_v16 }
 0x14c   : > { %v1150_v0 = vld [vmem:[#allocation2 + $0xf8] sm:$0xff]  ;;  %v4953_v9 = vpop.f32.mrf.mxu3 }
 0x14d   : > { %591 = vst [vmem:[#allocation2 + $0x109] sm:$0xff] %v504_v21  ;;  %v1247_v1 = vpack.c.bf16 %v504_v21, %v504_v21  ;;  %v1182_v61 = vpack.c.bf16 %v1150_v0, %v1150_v0  ;;  %v731_v0 = vld [vmem:[#allocation2 + $0x2] sm:$0xff] }
 0x14e   : > { %v1907_v58 = vpop.f32.mrf.mxu2  ;;  %v763_v14 = vpack.c.bf16 %v731_v0, %v731_v0 }
 0x14f   : > { %v1471_v15 = vunpack.c.l.b16 %v1247_v1  ;;  %v1374_v30 = vunpack.c.l.b16 %v1182_v61  ;;  %v732_v1 = vld [vmem:[#allocation2 + $0xa] sm:$0xff] }
 0x150   : > { %v456_v6 = vpop.f32.mrf.mxu0  ;;  %v1818_v37 = vpop.f32.mrf.mxu1 }
 0x151   : > { %v457_v47 = vadd.f32 %v4668_v59, %v456_v6  ;;  %v4968_v34 = vpack.c.b16 %v1374_v30, %v1373_v7  ;;  %v4972_v26 = vadd.f32 %v1907_v58, %v1818_v37  ;;  %v1296_v6 = vpack.c.bf16 %v1264_v11, %v1264_v11  ;;  %v1265_v30 = vld [vmem:[#allocation2 + $0x62] sm:$0xff] }
 0x153   : > { %v505_v63 = vmax.f32 %v457_v47, 0.0  ;;  %1857 = vmatmul.bf16.gmra.mxu1 %v4968_v34 }
 0x154   : > { %v4970_v20 = vpop.f32.mrf.mxu3  ;;  %v1151_v45 = vld [vmem:[#allocation2 + $0x108] sm:$0xff] }
 0x155   : > { %592 = vst [vmem:[#allocation2 + $0x111] sm:$0xff] %v505_v63  ;;  %v1248_v3 = vpack.c.bf16 %v505_v63, %v505_v63  ;;  %v1183_v55 = vpack.c.bf16 %v1151_v45, %v1151_v45 }
 0x156   : > { %v1909_v12 = vpop.f32.mrf.mxu2 }
 0x157   : > { %v1472_v49 = vunpack.c.l.b16 %v1248_v3  ;;  %v1375_v63 = vunpack.c.l.b16 %v1183_v55  ;;  %v1552_v3 = vunpack.c.l.b16 %v1296_v6  ;;  %v1267_v55 = vld [vmem:[#allocation2 + $0x7a] sm:$0xff] }
 0x158   : > { %v459_v19 = vpop.f32.mrf.mxu0  ;;  %v1820_v35 = vpop.f32.mrf.mxu1 }
 0x159   : > { %v460_v22 = vadd.f32 %v4668_v59, %v459_v19  ;;  %v1493_v28 = vpack.c.b16 %v1472_v49, %v1471_v15  ;;  %v4990_v54 = vadd.f32 %v1909_v12, %v1820_v35  ;;  %v4379_v12 = vld [vmem:[%s5877_s3 + $0x1f8] sm:$0xff]  ;;  %v764_v15 = vpack.c.bf16 %v732_v1, %v732_v1  ;;  %v668_v35 = vld [vmem:[#allocation2 + $0x9] sm:$0xff] }
 0x15a   : > { %v5006_v17 = vpack.c.b16 %v1552_v3, %v1551_v2  ;;  %3245 = vmatpush.bf16.msra.mxu0 %v4379_v12  ;;  %v700_v53 = vpack.c.bf16 %v668_v35, %v668_v35  ;;  %v1299_v1 = vpack.c.bf16 %v1267_v55, %v1267_v55  ;;  %v1300_v2 = vpack.c.bf16 %v1268_v62, %v1268_v62 }
 0x15b   : > { %v506_v41 = vmax.f32 %v460_v22, 0.0  ;;  %2258 = vmatmul.bf16.gmra.mxu0 %v4905_v5  ;;  %1951 = vmatmul.bf16.gmra.mxu2 %v1493_v28  ;;  %v4974_v5 = vpack.c.b16 %v1550_v33, %v1549_v31  ;;  %v1019_v22 = vunpack.c.l.b16 %v763_v14  ;;  %v1020_v23 = vunpack.c.l.b16 %v764_v15 }
 0x15c   : > { %v1152_v40 = vld [vmem:[#allocation2 + $0x110] sm:$0xff]  ;;  %v1556_v12 = vunpack.c.l.b16 %v1300_v2 }
 0x15d   : > { %593 = vst [vmem:[#allocation2 + $0x121] sm:$0xff] %v506_v41  ;;  %1995 = vmatmul.bf16.gmra.mxu3 %v4974_v5  ;;  %v1249_v44 = vpack.c.bf16 %v506_v41, %v506_v41  ;;  %v1184_v51 = vpack.c.bf16 %v1152_v40, %v1152_v40  ;;  %v1266_v41 = vld [vmem:[#allocation2 + $0x6a] sm:$0xff]  ;;  %v1051_v33 = vpack.c.b16 %v1020_v23, %v1019_v22 }
 0x15e   : > { %v1912_v36 = vpop.f32.mrf.mxu2  ;;  %v4378_v22 = vld [vmem:[%s5877_s3 + $0x1f0] sm:$0xff] }
 0x15f   : > { %v1473_v21 = vunpack.c.l.b16 %v1249_v44  ;;  %v1376_v48 = vunpack.c.l.b16 %v1184_v51  ;;  %3246 = vmatpush.bf16.msra.mxu0 %v4378_v22  ;;  %v1271_v2 = vld [vmem:[#allocation2 + $0xaa] sm:$0xff] }
 0x160   : > { %v461_v27 = vpop.f32.mrf.mxu0  ;;  %v1823_v60 = vpop.f32.mrf.mxu1 }
 0x161   : > { %v462_v29 = vadd.f32 %v4668_v59, %v461_v27  ;;  %v4985_v59 = vpop.f32.mrf.mxu3  ;;  %v4995_v4 = vpack.c.b16 %v1376_v48, %v1375_v63  ;;  %v5002_v49 = vadd.f32 %v1912_v36, %v1823_v60  ;;  %v1297_v27 = vpack.c.bf16 %v1265_v30, %v1265_v30  ;;  %v4370_v48 = vld [vmem:[%s5877_s3 + $0x1b0] sm:$0xff] }
 0x162   : > { %3157 = vmatpush.bf16.msra.mxu3 %v4370_v48  ;;  %v1555_v60 = vunpack.c.l.b16 %v1299_v1 }
 0x163   : > { %v507_v39 = vmax.f32 %v462_v29, 0.0  ;;  %1862 = vmatmul.bf16.gmra.mxu1 %v4995_v4  ;;  %v1298_v29 = vpack.c.bf16 %v1266_v41, %v1266_v41  ;;  %v1553_v40 = vunpack.c.l.b16 %v1297_v27  ;;  %v1269_v41 = vld [vmem:[#allocation2 + $0x92] sm:$0xff] }
 0x164   : > { %v1153_v24 = vld [vmem:[#allocation2 + $0x120] sm:$0xff] }
 0x165   : > { %594 = vst [vmem:[#allocation2 + $0x129] sm:$0xff] %v507_v39  ;;  %v1250_v46 = vpack.c.bf16 %v507_v39, %v507_v39  ;;  %v1185_v36 = vpack.c.bf16 %v1153_v24, %v1153_v24  ;;  %v1554_v44 = vunpack.c.l.b16 %v1298_v29  ;;  %v669_v27 = vld [vmem:[#allocation2 + $0x19] sm:$0xff] }
 0x166   : > { %v1914_v16 = vpop.f32.mrf.mxu2 }
 0x167   : > { %v1474_v52 = vunpack.c.l.b16 %v1250_v46  ;;  %v1377_v39 = vunpack.c.l.b16 %v1185_v36 }
 0x168   : > { %v4992_v58 = vpop.f32.mrf.mxu0  ;;  %v1825_v31 = vpop.f32.mrf.mxu1 }
 0x169   : > { %v1494_v47 = vpack.c.b16 %v1474_v52, %v1473_v21  ;;  %v4997_v61 = vpop.f32.mrf.mxu3  ;;  %v5015_v25 = vadd.f32 %v1914_v16, %v1825_v31  ;;  %v5028_v16 = vpack.c.b16 %v1554_v44, %v1553_v40  ;;  %v1301_v40 = vpack.c.bf16 %v1269_v41, %v1269_v41 }
 0x16b   : > { %2263 = vmatmul.bf16.gmra.mxu0 %v4920_v42  ;;  %1956 = vmatmul.bf16.gmra.mxu2 %v1494_v47 }
 0x16c   : > { %v1154_v19 = vld [vmem:[#allocation2 + $0x128] sm:$0xff] }
 0x16d   : > { %2000 = vmatmul.bf16.gmra.mxu3 %v5006_v17  ;;  %v1186_v43 = vpack.c.bf16 %v1154_v19, %v1154_v19 }
 0x16e   : > { %v1917_v32 = vpop.f32.mrf.mxu2 }
 0x16f   : > { %v1378_v38 = vunpack.c.l.b16 %v1186_v43  ;;  %v5052_v43 = vpack.c.b16 %v1556_v12, %v1555_v60 }
 0x170   : > { %v5004_v42 = vpop.f32.mrf.mxu0  ;;  %v1828_v51 = vpop.f32.mrf.mxu1 }
 0x171   : > { %v5013_v28 = vpop.f32.mrf.mxu3  ;;  %v5020_v45 = vpack.c.b16 %v1378_v38, %v1377_v39  ;;  %v5024_v10 = vadd.f32 %v1917_v32, %v1828_v51  ;;  %v924_v32 = vunpack.c.l.b16 %v700_v53 }
 0x173   : > { %1867 = vmatmul.bf16.gmra.mxu1 %v5020_v45 }
 0x176   : > { %v1919_v7 = vpop.f32.mrf.mxu2 }
 0x178   : > { %v5017_v37 = vpop.f32.mrf.mxu0  ;;  %v1830_v47 = vpop.f32.mrf.mxu1 }
 0x179   : > { %v5022_v46 = vpop.f32.mrf.mxu3  ;;  %v5037_v63 = vadd.f32 %v1919_v7, %v1830_v47  ;;  %v1270_v7 = vld [vmem:[#allocation2 + $0x9a] sm:$0xff] }
 0x17a   : > { %v1302_v44 = vpack.c.bf16 %v1270_v7, %v1270_v7 }
 0x17b   : > { %2268 = vmatmul.bf16.gmra.mxu0 %v4938_v57  ;;  %2401 = vmatmul.bf16.vlgmr.msrb.gmra.mxu2 %v1051_v33  ;;  %v667_v57 = vld [vmem:[#allocation2 + $0x1] sm:$0xff] }
 0x17c   : > { %v699_v52 = vpack.c.bf16 %v667_v57, %v667_v57  ;;  %v1557_v57 = vunpack.c.l.b16 %v1301_v40  ;;  %v1558_v35 = vunpack.c.l.b16 %v1302_v44  ;;  %v629_v40 = vld [vmem:[#allocation2 + $0x138] sm:$0xff] }
 0x17d   : > { %2005 = vmatmul.bf16.gmra.mxu3 %v5028_v16 }
 0x17e   : > { %v1922_v50 = vpop.f32.mrf.mxu2  ;;  %v923_v3 = vunpack.c.l.b16 %v699_v52  ;;  %v5074_v1 = vpack.c.b16 %v1558_v35, %v1557_v57  ;;  %v661_v35 = vpack.c.bf16 %v629_v40, %v629_v40 }
 0x180   : > { %v5026_v11 = vpop.f32.mrf.mxu0  ;;  %v955_v14 = vpack.c.b16 %v924_v32, %v923_v3  ;;  %v1833_v19 = vpop.f32.mrf.mxu1  ;;  %v1272_v3 = vld [vmem:[#allocation2 + $0xb2] sm:$0xff] }
 0x181   : > { %v5032_v21 = vpop.f32.mrf.mxu3  ;;  %v5048_v23 = vadd.f32 %v1922_v50, %v1833_v19  ;;  %v701_v50 = vpack.c.bf16 %v669_v27, %v669_v27 }
 0x183   : > { %2312 = vmatmul.bf16.vlgmr.msrb.gmra.mxu1 %v955_v14  ;;  %v925_v52 = vunpack.c.l.b16 %v701_v50  ;;  %v4369_v14 = vld [vmem:[%s5877_s3 + $0x1a8] sm:$0xff] }
 0x184   : > { %3158 = vmatpush.bf16.msra.mxu3 %v4369_v14  ;;  %v673_v14 = vld [vmem:[#allocation2 + $0x49] sm:$0xff] }
 0x186   : > { %v1924_v6 = vpop.f32.mrf.mxu2 }
 0x188   : > { %v5039_v0 = vpop.f32.mrf.mxu0  ;;  %v1835_v33 = vpop.f32.mrf.mxu1 }
 0x189   : > { %v5043_v15 = vpop.f32.mrf.mxu3  ;;  %v5061_v29 = vadd.f32 %v1924_v6, %v1835_v33 }
 0x18b   : > { %2273 = vmatmul.bf16.gmra.mxu0 %v4968_v34  ;;  %2406 = vmatmul.bf16.gmra.mxu2 %v4942_v8  ;;  %v4386_v8 = vld [vmem:[%s5877_s3 + $0x230] sm:$0xff]  ;;  %v670_v34 = vld [vmem:[#allocation2 + $0x21] sm:$0xff] }
 0x18c   : > { %3335 = vmatpush.bf16.msra.mxu1 %v4386_v8  ;;  %v702_v38 = vpack.c.bf16 %v670_v34, %v670_v34  ;;  %v1303_v8 = vpack.c.bf16 %v1271_v2, %v1271_v2  ;;  %v1304_v34 = vpack.c.bf16 %v1272_v3, %v1272_v3  ;;  %v1274_v2 = vld [vmem:[#allocation2 + $0xca] sm:$0xff] }
 0x18d   : > { %2010 = vmatmul.bf16.gmra.mxu3 %v5052_v43 }
 0x18e   : > { %v1927_v13 = vpop.f32.mrf.mxu2  ;;  %v926_v51 = vunpack.c.l.b16 %v702_v38  ;;  %v1559_v41 = vunpack.c.l.b16 %v1303_v8  ;;  %v1560_v7 = vunpack.c.l.b16 %v1304_v34 }
 0x190   : > { %v5050_v24 = vpop.f32.mrf.mxu0  ;;  %v1838_v55 = vpop.f32.mrf.mxu1  ;;  %v956_v6 = vpack.c.b16 %v926_v51, %v925_v52  ;;  %v4377_v51 = vld [vmem:[%s5877_s3 + $0x1e8] sm:$0xff] }
 0x191   : > { %v1962_v30 = vpop.f32.mrf.mxu3  ;;  %v5070_v47 = vadd.f32 %v1927_v13, %v1838_v55  ;;  %3247 = vmatpush.bf16.msra.mxu0 %v4377_v51  ;;  %v674_v55 = vld [vmem:[#allocation2 + $0x51] sm:$0xff] }
 0x192   : > { %v5059_v36 = vadd.f32 %v1962_v30, %v4953_v9  ;;  %v706_v8 = vpack.c.bf16 %v674_v55, %v674_v55  ;;  %v631_v51 = vld [vmem:[#allocation2 + $0x150] sm:$0xff] }
 0x193   : > { %2317 = vmatmul.bf16.gmra.mxu1 %v956_v6  ;;  %v853_v6 = vunpack.c.l.b16 %v661_v35  ;;  %v632_v35 = vld [vmem:[#allocation2 + $0x158] sm:$0xff] }
 0x194   : > { %5882 = vst [vmem:[#allocation3_spill] sm:$0xff] %v5059_v36 }
 0x196   : > { %v1929_v31 = vpop.f32.mrf.mxu2 }
 0x198   : > { %v5063_v39 = vpop.f32.mrf.mxu0  ;;  %v1840_v60 = vpop.f32.mrf.mxu1 }
 0x199   : > { %v1964_v53 = vpop.f32.mrf.mxu3  ;;  %v5083_v13 = vadd.f32 %v1929_v31, %v1840_v60  ;;  %v630_v31 = vld [vmem:[#allocation2 + $0x140] sm:$0xff] }
 0x19a   : > { %v5068_v62 = vadd.f32 %v1964_v53, %v4970_v20  ;;  %v671_v20 = vld [vmem:[#allocation2 + $0x31] sm:$0xff]  ;;  %v662_v52 = vpack.c.bf16 %v630_v31, %v630_v31 }
 0x19b   : > { %2278 = vmatmul.bf16.gmra.mxu0 %v4995_v4  ;;  %2411 = vmatmul.bf16.gmra.mxu2 %v4974_v5  ;;  %v672_v5 = vld [vmem:[#allocation2 + $0x39] sm:$0xff]  ;;  %v703_v30 = vpack.c.bf16 %v671_v20, %v671_v20 }
 0x19c   : > { %5883 = vst [vmem:[#allocation4_spill] sm:$0xff] %v5068_v62  ;;  %v704_v19 = vpack.c.bf16 %v672_v5, %v672_v5 }
 0x19d   : > { %2015 = vmatmul.bf16.gmra.mxu3 %v5074_v1  ;;  %v927_v33 = vunpack.c.l.b16 %v703_v30  ;;  %v1306_v30 = vpack.c.bf16 %v1274_v2, %v1274_v2 }
 0x19e   : > { %v1932_v9 = vpop.f32.mrf.mxu2 }
 0x19f   : > { %v1562_v40 = vunpack.c.l.b16 %v1306_v30 }
 0x1a0   : > { %v5072_v48 = vpop.f32.mrf.mxu0  ;;  %v1843_v44 = vpop.f32.mrf.mxu1 }
 0x1a1   : > { %v1967_v4 = vpop.f32.mrf.mxu3 }
 0x1a2   : > { %v5078_v12 = vadd.f32 %v1967_v4, %v4985_v59  ;;  %v928_v59 = vunpack.c.l.b16 %v704_v19  ;;  %v1273_v4 = vld [vmem:[#allocation2 + $0xc2] sm:$0xff] }
 0x1a3   : > { %v1305_v34 = vpack.c.bf16 %v1273_v4, %v1273_v4 }
 0x1a4   : > { %5884 = vst [vmem:[#allocation5_spill] sm:$0xff] %v5078_v12  ;;  %v5095_v57 = vpack.c.b16 %v928_v59, %v927_v33 }
 0x1a6   : > { %v1934_v32 = vpop.f32.mrf.mxu2  ;;  %2322 = vmatmul.bf16.gmra.mxu1 %v5095_v57 }
 0x1a8   : > { %v5085_v22 = vpop.f32.mrf.mxu0  ;;  %v1845_v60 = vpop.f32.mrf.mxu1 }
 0x1a9   : > { %v1969_v27 = vpop.f32.mrf.mxu3  ;;  %v5111_v19 = vadd.f32 %v1934_v32, %v1845_v60 }
 0x1aa   : > { %v5090_v50 = vadd.f32 %v1969_v27, %v4997_v61  ;;  %v4385_v61 = vld [vmem:[%s5877_s3 + $0x228] sm:$0xff]  ;;  %v1561_v27 = vunpack.c.l.b16 %v1305_v34 }
 0x1ab   : > { %2283 = vmatmul.bf16.gmra.mxu0 %v5020_v45  ;;  %2416 = vmatmul.bf16.gmra.mxu2 %v5006_v17  ;;  %v5097_v45 = vadd.f32 %v1932_v9, %v1843_v44  ;;  %v5099_v17 = vpack.c.b16 %v1560_v7, %v1559_v41  ;;  %v854_v9 = vunpack.c.l.b16 %v662_v52  ;;  %v705_v41 = vpack.c.bf16 %v673_v14, %v673_v14  ;;  %v1275_v14 = vld [vmem:[#allocation2 + $0xda] sm:$0xff] }
 0x1ac   : > { %5885 = vst [vmem:[#allocation6_spill] sm:$0xff] %v5090_v50  ;;  %3336 = vmatpush.bf16.msra.mxu1 %v4385_v61  ;;  %v930_v7 = vunpack.c.l.b16 %v706_v8  ;;  %v1276_v8 = vld [vmem:[#allocation2 + $0xe2] sm:$0xff] }
 0x1ad   : > { %2020 = vmatmul.bf16.gmra.mxu3 %v5099_v17  ;;  %v872_v59 = vpack.c.b16 %v854_v9, %v853_v6  ;;  %v929_v31 = vunpack.c.l.b16 %v705_v41  ;;  %v5123_v6 = vpack.c.b16 %v1562_v40, %v1561_v27  ;;  %v664_v9 = vpack.c.bf16 %v632_v35, %v632_v35  ;;  %v4376_v41 = vld [vmem:[%s5877_s3 + $0x1e0] sm:$0xff] }
 0x1ae   : > { %v1937_v38 = vpop.f32.mrf.mxu2  ;;  %3248 = vmatpush.bf16.msra.mxu0 %v4376_v41 }
 0x1af   : > { %v5119_v61 = vpack.c.b16 %v930_v7, %v929_v31  ;;  %v856_v2 = vunpack.c.l.b16 %v664_v9  ;;  %v4368_v7 = vld [vmem:[%s5877_s3 + $0x1a0] sm:$0xff]  ;;  %v1307_v31 = vpack.c.bf16 %v1275_v14, %v1275_v14  ;;  %v633_v14 = vld [vmem:[#allocation2 + $0x168] sm:$0xff] }
 0x1b0   : > { %v5106_v53 = vpop.f32.mrf.mxu0  ;;  %v1848_v32 = vpop.f32.mrf.mxu1  ;;  %3159 = vmatpush.bf16.msra.mxu3 %v4368_v7 }
 0x1b1   : > { %v1972_v5 = vpop.f32.mrf.mxu3  ;;  %v5121_v55 = vadd.f32 %v1937_v38, %v1848_v32 }
 0x1b2   : > { %v5109_v20 = vadd.f32 %v1972_v5, %v5013_v28  ;;  %v676_v5 = vld [vmem:[#allocation2 + $0x69] sm:$0xff] }
 0x1b3   : > { %v708_v40 = vpack.c.bf16 %v676_v5, %v676_v5 }
 0x1b4   : > { %5886 = vst [vmem:[#allocation7_spill] sm:$0xff] %v5109_v20 }
 0x1b5   : > { %v932_v32 = vunpack.c.l.b16 %v708_v40  ;;  %v665_v40 = vpack.c.bf16 %v633_v14, %v633_v14  ;;  %v677_v14 = vld [vmem:[#allocation2 + $0x79] sm:$0xff] }
 0x1b6   : > { %v1939_v3 = vpop.f32.mrf.mxu2  ;;  %2327 = vmatmul.bf16.gmra.mxu1 %v5119_v61 }
 0x1b8   : > { %v5114_v33 = vpop.f32.mrf.mxu0  ;;  %v1850_v34 = vpop.f32.mrf.mxu1 }
 0x1b9   : > { %v1974_v44 = vpop.f32.mrf.mxu3  ;;  %v5138_v27 = vadd.f32 %v1939_v3, %v1850_v34  ;;  %v4374_v34 = vld [vmem:[%s5877_s3 + $0x1d0] sm:$0xff] }
 0x1ba   : > { %v5117_v52 = vadd.f32 %v1974_v44, %v5022_v46  ;;  %v1308_v44 = vpack.c.bf16 %v1276_v8, %v1276_v8  ;;  %v634_v8 = vld [vmem:[#allocation2 + $0x170] sm:$0xff] }
 0x1bb   : > { %2288 = vmatmul.bf16.gmra.mxu0 %v872_v59  ;;  %2421 = vmatmul.bf16.gmra.mxu2 %v5028_v16  ;;  %v663_v16 = vpack.c.bf16 %v631_v51, %v631_v51  ;;  %v675_v59 = vld [vmem:[#allocation2 + $0x61] sm:$0xff] }
 0x1bc   : > { %5887 = vst [vmem:[#allocation8_spill] sm:$0xff] %v5117_v52  ;;  %v707_v35 = vpack.c.bf16 %v675_v59, %v675_v59  ;;  %v1564_v9 = vunpack.c.l.b16 %v1308_v44  ;;  %v4373_v44 = vld [vmem:[%s5877_s3 + $0x1c8] sm:$0xff] }
 0x1bd   : > { %2025 = vmatmul.bf16.gmra.mxu3 %v5123_v6  ;;  %v855_v4 = vunpack.c.l.b16 %v663_v16  ;;  %v1563_v16 = vunpack.c.l.b16 %v1307_v31  ;;  %v666_v31 = vpack.c.bf16 %v634_v8, %v634_v8  ;;  %v4372_v8 = vld [vmem:[%s5877_s3 + $0x1c0] sm:$0xff] }
 0x1be   : > { %v1942_v28 = vpop.f32.mrf.mxu2  ;;  %v931_v3 = vunpack.c.l.b16 %v707_v35 }
 0x1bf   : > { %v873_v51 = vpack.c.b16 %v856_v2, %v855_v4  ;;  %v5156_v7 = vpack.c.b16 %v1564_v9, %v1563_v16  ;;  %v1278_v16 = vld [vmem:[#allocation2 + $0xfa] sm:$0xff] }
 0x1c0   : > { %v5130_v38 = vpop.f32.mrf.mxu0  ;;  %v1853_v4 = vpop.f32.mrf.mxu1  ;;  %v5150_v59 = vpack.c.b16 %v932_v32, %v931_v3  ;;  %v1277_v32 = vld [vmem:[#allocation2 + $0xf2] sm:$0xff] }
 0x1c1   : > { %v1977_v60 = vpop.f32.mrf.mxu3 }
 0x1c2   : > { %v5128_v30 = vadd.f32 %v1977_v60, %v5032_v21  ;;  %v4375_v21 = vld [vmem:[%s5877_s3 + $0x1d8] sm:$0xff] }
 0x1c3   : > { %3249 = vmatpush.bf16.msra.mxu0 %v4375_v21  ;;  %v858_v21 = vunpack.c.l.b16 %v666_v31 }
 0x1c4   : > { %5888 = vst [vmem:[#allocation9_spill] sm:$0xff] %v5128_v30 }
 0x1c6   : > { %v1944_v46 = vpop.f32.mrf.mxu2  ;;  %2332 = vmatmul.bf16.gmra.mxu1 %v5150_v59 }
 0x1c7   : > { %3250 = vmatpush.bf16.msra.mxu0 %v4374_v34 }
 0x1c8   : > { %v5154_v41 = vpop.f32.mrf.mxu0  ;;  %v1855_v3 = vpop.f32.mrf.mxu1 }
 0x1c9   : > { %v1979_v60 = vpop.f32.mrf.mxu3 }
 0x1ca   : > { %v5145_v2 = vadd.f32 %v1979_v60, %v5043_v15  ;;  %v4384_v15 = vld [vmem:[%s5877_s3 + $0x220] sm:$0xff] }
 0x1cb   : > { %2293 = vmatmul.bf16.gmra.mxu0 %v873_v51  ;;  %2426 = vmatmul.bf16.gmra.mxu2 %v5052_v43  ;;  %v5152_v43 = vadd.f32 %v1942_v28, %v1853_v4  ;;  %v678_v28 = vld [vmem:[#allocation2 + $0x81] sm:$0xff]  ;;  %v857_v51 = vunpack.c.l.b16 %v665_v40  ;;  %v5172_v4 = vadd.f32 %v1944_v46, %v1855_v3  ;;  %v1310_v40 = vpack.c.bf16 %v1278_v16, %v1278_v16  ;;  %v1279_v3 = vld [vmem:[#allocation2 + $0x10a] sm:$0xff] }
 0x1cc   : > { %5889 = vst [vmem:[#allocation10_spill] sm:$0xff] %v5145_v2  ;;  %3337 = vmatpush.bf16.msra.mxu1 %v4384_v15  ;;  %3251 = vmatpush.bf16.msra.mxu0 %v4373_v44  ;;  %v710_v34 = vpack.c.bf16 %v678_v28, %v678_v28  ;;  %v1309_v15 = vpack.c.bf16 %v1277_v32, %v1277_v32  ;;  %v680_v32 = vld [vmem:[#allocation2 + $0x99] sm:$0xff] }
 0x1cd   : > { %2030 = vmatmul.bf16.gmra.mxu3 %v5156_v7  ;;  %v874_v31 = vpack.c.b16 %v858_v21, %v857_v51  ;;  %v709_v44 = vpack.c.bf16 %v677_v14, %v677_v14  ;;  %v1566_v30 = vunpack.c.l.b16 %v1310_v40  ;;  %v1280_v14 = vld [vmem:[#allocation2 + $0x112] sm:$0xff] }
 0x1ce   : > { %v1947_v5 = vpop.f32.mrf.mxu2 }
 0x1cf   : > { %v933_v52 = vunpack.c.l.b16 %v709_v44 }
 0x1d0   : > { %3252 = vmatpush.bf16.msra.mxu0 %v4372_v8  ;;  %v5174_v2 = vpop.f32.mrf.mxu0  ;;  %v1858_v12 = vpop.f32.mrf.mxu1 }
 0x1d1   : > { %v1991_v35 = vpop.f32.mrf.mxu3  ;;  %v5182_v51 = vadd.f32 %v1947_v5, %v1858_v12  ;;  %v4367_v12 = vld [vmem:[%s5877_s3 + $0x198] sm:$0xff]  ;;  %v1311_v5 = vpack.c.bf16 %v1279_v3, %v1279_v3 }
 0x1d2   : > { %v5167_v60 = vadd.f32 %v1991_v35, %v4940_v56  ;;  %v934_v56 = vunpack.c.l.b16 %v710_v34  ;;  %v1565_v35 = vunpack.c.l.b16 %v1309_v15  ;;  %v1312_v15 = vpack.c.bf16 %v1280_v14, %v1280_v14  ;;  %3160 = vmatpush.bf16.msra.mxu3 %v4367_v12 }
 0x1d3   : > { %v1567_v44 = vunpack.c.l.b16 %v1311_v5 }
 0x1d4   : > { %v5180_v28 = vpack.c.b16 %v934_v56, %v933_v52  ;;  %v5184_v21 = vpack.c.b16 %v1566_v30, %v1565_v35  ;;  %v712_v30 = vpack.c.bf16 %v680_v32, %v680_v32 }
 0x1d6   : > { %v1949_v9 = vpop.f32.mrf.mxu2  ;;  %2337 = vmatmul.bf16.gmra.mxu1 %v5180_v28 }
 0x1d8   : > { %v1860_v34 = vpop.f32.mrf.mxu1 }
 0x1d9   : > { %v1993_v20 = vpop.f32.mrf.mxu3  ;;  %v5196_v52 = vadd.f32 %v1949_v9, %v1860_v34 }
 0x1da   : > { %v5178_v46 = vadd.f32 %v1993_v20, %v4958_v18  ;;  %v679_v20 = vld [vmem:[#allocation2 + $0x91] sm:$0xff] }
 0x1db   : > { %2298 = vmatmul.bf16.gmra.mxu0 %v874_v31  ;;  %2431 = vmatmul.bf16.gmra.mxu2 %v5074_v1  ;;  %v5188_v1 = vpop.f32.mrf.mxu0  ;;  %v711_v40 = vpack.c.bf16 %v679_v20, %v679_v20  ;;  %v936_v31 = vunpack.c.l.b16 %v712_v30  ;;  %v1281_v20 = vld [vmem:[#allocation2 + $0x122] sm:$0xff] }
 0x1dc   : > { %5890 = vst [vmem:[#allocation11_spill] sm:$0xff] %v5188_v1 }
 0x1dd   : > { %2035 = vmatmul.bf16.gmra.mxu3 %v5184_v21  ;;  %v935_v56 = vunpack.c.l.b16 %v711_v40 }
 0x1de   : > { %v1952_v50 = vpop.f32.mrf.mxu2 }
 0x1df   : > { %v5205_v32 = vpack.c.b16 %v936_v31, %v935_v56  ;;  %v1313_v31 = vpack.c.bf16 %v1281_v20, %v1281_v20 }
 0x1e0   : > { %v1863_v62 = vpop.f32.mrf.mxu1 }
 0x1e1   : > { %v1996_v16 = vpop.f32.mrf.mxu3  ;;  %v5207_v3 = vadd.f32 %v1952_v50, %v1863_v62  ;;  %v681_v50 = vld [vmem:[#allocation2 + $0xa9] sm:$0xff] }
 0x1e2   : > { %v5191_v18 = vadd.f32 %v1996_v16, %v4972_v26  ;;  %v1568_v26 = vunpack.c.l.b16 %v1312_v15 }
 0x1e3   : > { %v5200_v36 = vpop.f32.mrf.mxu0 }
 0x1e4   : > { %5891 = vst [vmem:[#allocation12_spill] sm:$0xff] %v5200_v36  ;;  %v5209_v14 = vpack.c.b16 %v1568_v26, %v1567_v44  ;;  %v713_v26 = vpack.c.bf16 %v681_v50, %v681_v50 }
 0x1e6   : > { %v1954_v8 = vpop.f32.mrf.mxu2  ;;  %2342 = vmatmul.bf16.gmra.mxu1 %v5205_v32  ;;  %v937_v36 = vunpack.c.l.b16 %v713_v26 }
 0x1e8   : > { %v1865_v30 = vpop.f32.mrf.mxu1 }
 0x1e9   : > { %v1998_v35 = vpop.f32.mrf.mxu3  ;;  %v5219_v5 = vadd.f32 %v1954_v8, %v1865_v30 }
 0x1ea   : > { %v5203_v9 = vadd.f32 %v1998_v35, %v4990_v54  ;;  %v1282_v54 = vld [vmem:[#allocation2 + $0x12a] sm:$0xff]  ;;  %v1569_v35 = vunpack.c.l.b16 %v1313_v31  ;;  %v683_v31 = vld [vmem:[#allocation2 + $0xc1] sm:$0xff] }
 0x1eb   : > { %3253 = vmatmul.bf16.vlgmr.msra.gmra.mxu0 %v5095_v57  ;;  %2436 = vmatmul.bf16.gmra.mxu2 %v5099_v17  ;;  %v4383_v57 = vld [vmem:[%s5877_s3 + $0x218] sm:$0xff]  ;;  %v5221_v40 = vpop.f32.mrf.mxu0  ;;  %v1314_v44 = vpack.c.bf16 %v1282_v54, %v1282_v54  ;;  %v684_v54 = vld [vmem:[#allocation2 + $0xc9] sm:$0xff] }
 0x1ec   : > { %3338 = vmatpush.bf16.msra.mxu1 %v4383_v57  ;;  %v682_v17 = vld [vmem:[#allocation2 + $0xb1] sm:$0xff]  ;;  %5892 = vst [vmem:[#allocation13_spill] sm:$0xff] %v5221_v40  ;;  %v716_v26 = vpack.c.bf16 %v684_v54, %v684_v54 }
 0x1ed   : > { %2040 = vmatmul.bf16.gmra.mxu3 %v5209_v14  ;;  %v714_v15 = vpack.c.bf16 %v682_v17, %v682_v17  ;;  %v1570_v57 = vunpack.c.l.b16 %v1314_v44 }
 0x1ee   : > { %v1957_v16 = vpop.f32.mrf.mxu2 }
 0x1ef   : > { %v938_v56 = vunpack.c.l.b16 %v714_v15  ;;  %v5232_v20 = vpack.c.b16 %v1570_v57, %v1569_v35 }
 0x1f1   : > { %v2001_v34 = vpop.f32.mrf.mxu3  ;;  %v5228_v17 = vpack.c.b16 %v938_v56, %v937_v36  ;;  %v1284_v36 = vld [vmem:[#allocation2 + $0x142] sm:$0xff]  ;;  %v4366_v56 = vld [vmem:[%s5877_s3 + $0x190] sm:$0xff] }
 0x1f2   : > { %v5217_v62 = vadd.f32 %v2001_v34, %v5002_v49  ;;  %v1868_v34 = vpop.f32.mrf.mxu1  ;;  %v1316_v57 = vpack.c.bf16 %v1284_v36, %v1284_v36  ;;  %3161 = vmatpush.bf16.msra.mxu3 %v4366_v56  ;;  %v1286_v56 = vld [vmem:[#allocation2 + $0x15a] sm:$0xff] }
 0x1f3   : > { %v5230_v30 = vadd.f32 %v1957_v16, %v1868_v34  ;;  %v715_v34 = vpack.c.bf16 %v683_v31, %v683_v31 }
 0x1f5   : > { %v939_v54 = vunpack.c.l.b16 %v715_v34 }
 0x1f6   : > { %v1959_v12 = vpop.f32.mrf.mxu2  ;;  %2347 = vmatmul.bf16.gmra.mxu1 %v5228_v17 }
 0x1f9   : > { %v2003_v1 = vpop.f32.mrf.mxu3 }
 0x1fa   : > { %v5226_v8 = vadd.f32 %v2003_v1, %v5015_v25  ;;  %v1283_v1 = vld [vmem:[#allocation2 + $0x13a] sm:$0xff]  ;;  %v1870_v16 = vpop.f32.mrf.mxu1 }
 0x1fb   : > { %3258 = vmatmul.bf16.gmra.mxu0 %v5119_v61  ;;  %2441 = vmatmul.bf16.gmra.mxu2 %v5123_v6  ;;  %v4395_v61 = vld [vmem:[%s5879_s5 + $0x38] sm:$0xff]  ;;  %v5238_v6 = vpop.f32.mrf.mxu0  ;;  %v5244_v44 = vadd.f32 %v1959_v12, %v1870_v16  ;;  %v1315_v35 = vpack.c.bf16 %v1283_v1, %v1283_v1  ;;  %v2225_v12 = vadd.f32 %v4992_v58, %v5167_v60  ;;  %v4382_v58 = vld [vmem:[%s5877_s3 + $0x210] sm:$0xff]  ;;  %v686_v60 = vld [vmem:[#allocation2 + $0xe1] sm:$0xff] }
 0x1fc   : > { %5893 = vst [vmem:[#allocation14_spill] sm:$0xff] %v5238_v6  ;;  %3607 = vmatpush.bf16.msra.mxu2 %v4395_v61  ;;  %v940_v61 = vunpack.c.l.b16 %v716_v26  ;;  %3339 = vmatpush.bf16.msra.mxu1 %v4382_v58  ;;  %v1285_v26 = vld [vmem:[#allocation2 + $0x152] sm:$0xff] }
 0x1fd   : > { %2045 = vmatmul.bf16.gmra.mxu3 %v5232_v20  ;;  %5894 = vst [vmem:[#allocation15_spill] sm:$0xff] %v5244_v44 }
 0x1fe   : > { %v2402_v49 = vpop.f32.mrf.mxu2  ;;  %v5258_v31 = vpack.c.b16 %v940_v61, %v939_v54  ;;  %v685_v61 = vld [vmem:[#allocation2 + $0xd9] sm:$0xff]  ;;  %v1318_v54 = vpack.c.bf16 %v1286_v56, %v1286_v56 }
 0x200   : > { %v1574_v58 = vunpack.c.l.b16 %v1318_v54 }
 0x201   : > { %v2006_v25 = vpop.f32.mrf.mxu3 }
 0x202   : > { %v5242_v15 = vadd.f32 %v2006_v25, %v5024_v10  ;;  %v1571_v10 = vunpack.c.l.b16 %v1315_v35  ;;  %v1572_v25 = vunpack.c.l.b16 %v1316_v57  ;;  %v2313_v40 = vpop.f32.mrf.mxu1 }
 0x203   : > { %v5251_v6 = vpop.f32.mrf.mxu0  ;;  %v2314_v36 = vadd.f32 %v2313_v40, %v2225_v12  ;;  %v1317_v12 = vpack.c.bf16 %v1285_v26, %v1285_v26 }
 0x206   : > { %v2404_v50 = vpop.f32.mrf.mxu2  ;;  %2352 = vmatmul.bf16.gmra.mxu1 %v5258_v31 }
 0x209   : > { %v2008_v16 = vpop.f32.mrf.mxu3 }
 0x20a   : > { %v5256_v1 = vadd.f32 %v2008_v16, %v5037_v63  ;;  %v2227_v63 = vadd.f32 %v5004_v42, %v5178_v46  ;;  %v2315_v34 = vpop.f32.mrf.mxu1  ;;  %v1573_v46 = vunpack.c.l.b16 %v1317_v12 }
 0x20b   : > { %3263 = vmatmul.bf16.gmra.mxu0 %v5150_v59  ;;  %2446 = vmatmul.bf16.gmra.mxu2 %v5156_v7  ;;  %v5260_v59 = vpack.c.b16 %v1572_v25, %v1571_v10  ;;  %v5263_v7 = vadd.f32 %v2402_v49, %v2314_v36  ;;  %v5271_v57 = vpop.f32.mrf.mxu0  ;;  %v718_v25 = vpack.c.bf16 %v686_v60, %v686_v60 }
 0x20c   : > { %5896 = vst [vmem:[#allocation17_spill] sm:$0xff] %v5271_v57  ;;  %v2316_v10 = vadd.f32 %v2315_v34, %v2227_v63  ;;  %v717_v36 = vpack.c.bf16 %v685_v61, %v685_v61  ;;  %v1287_v34 = vld [vmem:[#allocation2 + $0x16a] sm:$0xff]  ;;  %v1288_v61 = vld [vmem:[#allocation2 + $0x172] sm:$0xff] }
 0x20d   : > { %5895 = vst [vmem:[#allocation16_spill] sm:$0xff] %v5263_v7  ;;  %2050 = vmatmul.bf16.gmra.mxu3 %v5260_v59  ;;  %v942_v42 = vunpack.c.l.b16 %v718_v25  ;;  %v2230_v7 = vadd.f32 %v5017_v37, %v5191_v18  ;;  %v4394_v37 = vld [vmem:[%s5879_s5 + $0x30] sm:$0xff]  ;;  %v2232_v18 = vadd.f32 %v5026_v11, %v5203_v9 }
 0x20e   : > { %v2407_v44 = vpop.f32.mrf.mxu2  ;;  %v5276_v16 = vadd.f32 %v2404_v50, %v2316_v10  ;;  %3608 = vmatpush.bf16.msra.mxu2 %v4394_v37 }
 0x211   : > { %v2011_v40 = vpop.f32.mrf.mxu3 }
 0x212   : > { %v5274_v49 = vadd.f32 %v2011_v40, %v5048_v23  ;;  %v941_v23 = vunpack.c.l.b16 %v717_v36  ;;  %v2318_v63 = vpop.f32.mrf.mxu1 }
 0x213   : > { %v2319_v50 = vadd.f32 %v2318_v63, %v2230_v7  ;;  %v5287_v56 = vpop.f32.mrf.mxu0 }
 0x214   : > { %v5285_v26 = vpack.c.b16 %v942_v42, %v941_v23  ;;  %v4365_v42 = vld [vmem:[%s5877_s3 + $0x188] sm:$0xff] }
 0x215   : > { %3162 = vmatpush.bf16.msra.mxu3 %v4365_v42 }
 0x216   : > { %v2409_v35 = vpop.f32.mrf.mxu2  ;;  %2357 = vmatmul.bf16.gmra.mxu1 %v5285_v26 }
 0x219   : > { %v2013_v40 = vpop.f32.mrf.mxu3 }
 0x21a   : > { %v5283_v60 = vadd.f32 %v2013_v40, %v5061_v29  ;;  %v688_v29 = vld [vmem:[#allocation2 + $0xf9] sm:$0xff]  ;;  %v2320_v25 = vpop.f32.mrf.mxu1 }
 0x21b   : > { %3268 = vmatmul.bf16.gmra.mxu0 %v5180_v28  ;;  %2451 = vmatmul.bf16.gmra.mxu2 %v5184_v21  ;;  %v5289_v28 = vpack.c.b16 %v1574_v58, %v1573_v46  ;;  %v5292_v21 = vadd.f32 %v2407_v44, %v2319_v50  ;;  %v687_v44 = vld [vmem:[#allocation2 + $0xf1] sm:$0xff]  ;;  %v2321_v54 = vadd.f32 %v2320_v25, %v2232_v18  ;;  %v5308_v9 = vpop.f32.mrf.mxu0 }
 0x21c   : > { %v720_v36 = vpack.c.bf16 %v688_v29, %v688_v29  ;;  %v1319_v46 = vpack.c.bf16 %v1287_v34, %v1287_v34  ;;  %v1320_v58 = vpack.c.bf16 %v1288_v61, %v1288_v61  ;;  %v719_v11 = vpack.c.bf16 %v687_v44, %v687_v44 }
 0x21d   : > { %2055 = vmatmul.bf16.gmra.mxu3 %v5289_v28  ;;  %v5306_v23 = vadd.f32 %v2409_v35, %v2321_v54  ;;  %v2235_v50 = vadd.f32 %v5039_v0, %v5217_v62  ;;  %v4381_v0 = vld [vmem:[%s5877_s3 + $0x208] sm:$0xff]  ;;  %v690_v62 = vld [vmem:[#allocation2 + $0x111] sm:$0xff]  ;;  %v2237_v44 = vadd.f32 %v5050_v24, %v5226_v8 }
 0x21e   : > { %v2412_v57 = vpop.f32.mrf.mxu2  ;;  %v1575_v40 = vunpack.c.l.b16 %v1319_v46  ;;  %v1576_v63 = vunpack.c.l.b16 %v1320_v58  ;;  %v943_v37 = vunpack.c.l.b16 %v719_v11  ;;  %3340 = vmatpush.bf16.msra.mxu1 %v4381_v0  ;;  %v1289_v54 = vld [vmem:[#allocation2 + $0x182] sm:$0xff] }
 0x21f   : > { %v689_v11 = vld [vmem:[#allocation2 + $0x109] sm:$0xff] }
 0x220   : > { %v5319_v25 = vpack.c.b16 %v1576_v63, %v1575_v40  ;;  %v722_v40 = vpack.c.bf16 %v690_v62, %v690_v62  ;;  %v1321_v63 = vpack.c.bf16 %v1289_v54, %v1289_v54 }
 0x221   : > { %v2016_v7 = vpop.f32.mrf.mxu3 }
 0x222   : > { %v5301_v12 = vadd.f32 %v2016_v7, %v5070_v47  ;;  %v944_v47 = vunpack.c.l.b16 %v720_v36  ;;  %v1290_v36 = vld [vmem:[#allocation2 + $0x18a] sm:$0xff]  ;;  %v946_v24 = vunpack.c.l.b16 %v722_v40  ;;  %v1577_v8 = vunpack.c.l.b16 %v1321_v63 }
 0x223   : > { %v2323_v7 = vpop.f32.mrf.mxu1 }
 0x224   : > { %v2324_v34 = vadd.f32 %v2323_v7, %v2235_v50  ;;  %v5317_v61 = vpack.c.b16 %v944_v47, %v943_v37  ;;  %v1322_v50 = vpack.c.bf16 %v1290_v36, %v1290_v36  ;;  %v2242_v36 = vadd.f32 %v5072_v48, %v5256_v1 }
 0x226   : > { %v2414_v10 = vpop.f32.mrf.mxu2  ;;  %2362 = vmatmul.bf16.gmra.mxu1 %v5317_v61  ;;  %v1578_v7 = vunpack.c.l.b16 %v1322_v50 }
 0x229   : > { %v2018_v29 = vpop.f32.mrf.mxu3 }
 0x22a   : > { %v5315_v35 = vadd.f32 %v2018_v29, %v5083_v13  ;;  %v5331_v13 = vpop.f32.mrf.mxu0  ;;  %v721_v29 = vpack.c.bf16 %v689_v11, %v689_v11 }
 0x22b   : > { %3273 = vmatmul.bf16.gmra.mxu0 %v5205_v32  ;;  %2456 = vmatmul.bf16.gmra.mxu2 %v5209_v14  ;;  %v5322_v32 = vadd.f32 %v2412_v57, %v2324_v34  ;;  %v4364_v14 = vld [vmem:[%s5877_s3 + $0x180] sm:$0xff]  ;;  %v2325_v46 = vpop.f32.mrf.mxu1  ;;  %v2240_v34 = vadd.f32 %v5063_v39, %v5242_v15  ;;  %v4393_v39 = vld [vmem:[%s5879_s5 + $0x28] sm:$0xff] }
 0x22c   : > { %3163 = vmatpush.bf16.msra.mxu3 %v4364_v14  ;;  %v2326_v47 = vadd.f32 %v2325_v46, %v2237_v44  ;;  %3609 = vmatpush.bf16.msra.mxu2 %v4393_v39  ;;  %v692_v15 = vld [vmem:[#allocation2 + $0x129] sm:$0xff]  ;;  %v2484_v46 = vld [vmem:[#allocation2 + $0x38] sm:$0xff] }
 0x22d   : > { %2060 = vmatmul.bf16.gmra.mxu3 %v5319_v25  ;;  %v724_v50 = vpack.c.bf16 %v692_v15, %v692_v15 }
 0x22e   : > { %v2417_v18 = vpop.f32.mrf.mxu2  ;;  %v5338_v37 = vadd.f32 %v2414_v10, %v2326_v47 }
 0x22f   : > { %v948_v48 = vunpack.c.l.b16 %v724_v50 }
 0x231   : > { %v2021_v57 = vpop.f32.mrf.mxu3 }
 0x232   : > { %v5336_v58 = vadd.f32 %v2021_v57, %v5097_v45  ;;  %v945_v45 = vunpack.c.l.b16 %v721_v29  ;;  %v5344_v44 = vpop.f32.mrf.mxu0  ;;  %v2483_v29 = vld [vmem:[#allocation2 + $0x30] sm:$0xff] }
 0x233   : > { %v2328_v62 = vpop.f32.mrf.mxu1 }
 0x234   : > { %v2329_v57 = vadd.f32 %v2328_v62, %v2240_v34  ;;  %v5349_v54 = vpack.c.b16 %v946_v24, %v945_v45  ;;  %v2515_v45 = vpack.c.bf16 %v2483_v29, %v2483_v29 }
 0x236   : > { %v2419_v42 = vpop.f32.mrf.mxu2  ;;  %2367 = vmatmul.bf16.gmra.mxu1 %v5349_v54 }
 0x239   : > { %v2023_v0 = vpop.f32.mrf.mxu3 }
 0x23a   : > { %v5347_v10 = vadd.f32 %v2023_v0, %v5111_v19  ;;  %v5364_v24 = vpop.f32.mrf.mxu0 }
 0x23b   : > { %3278 = vmatmul.bf16.gmra.mxu0 %v5228_v17  ;;  %2461 = vmatmul.bf16.gmra.mxu2 %v5232_v20  ;;  %v1594_v17 = vpack.c.b16 %v1578_v7, %v1577_v8  ;;  %v5352_v20 = vadd.f32 %v2417_v18, %v2329_v57  ;;  %v2330_v47 = vpop.f32.mrf.mxu1  ;;  %v691_v18 = vld [vmem:[#allocation2 + $0x121] sm:$0xff]  ;;  %v2516_v8 = vpack.c.bf16 %v2484_v46, %v2484_v46 }
 0x23c   : > { %v2331_v63 = vadd.f32 %v2330_v47, %v2242_v36  ;;  %v723_v34 = vpack.c.bf16 %v691_v18, %v691_v18  ;;  %v2247_v46 = vadd.f32 %v5106_v53, %v5283_v60  ;;  %v2486_v18 = vld [vmem:[#allocation2 + $0x50] sm:$0xff] }
 0x23d   : > { %2065 = vmatmul.bf16.gmra.mxu3 %v1594_v17  ;;  %v2708_v1 = vunpack.c.l.b16 %v2516_v8 }
 0x23e   : > { %v2422_v14 = vpop.f32.mrf.mxu2  ;;  %v5366_v7 = vadd.f32 %v2419_v42, %v2331_v63  ;;  %v947_v0 = vunpack.c.l.b16 %v723_v34  ;;  %v2707_v42 = vunpack.c.l.b16 %v2515_v45  ;;  %v2485_v45 = vld [vmem:[#allocation2 + $0x48] sm:$0xff] }
 0x240   : > { %v5375_v36 = vpack.c.b16 %v948_v48, %v947_v0  ;;  %v2518_v48 = vpack.c.bf16 %v2486_v18, %v2486_v18 }
 0x241   : > { %v2026_v19 = vpop.f32.mrf.mxu3 }
 0x242   : > { %v5362_v40 = vadd.f32 %v2026_v19, %v5121_v55  ;;  %v2245_v55 = vadd.f32 %v5085_v22, %v5274_v49  ;;  %v2739_v19 = vpack.c.b16 %v2708_v1, %v2707_v42  ;;  %v4380_v22 = vld [vmem:[%s5877_s3 + $0x200] sm:$0xff]  ;;  %v2517_v1 = vpack.c.bf16 %v2485_v45, %v2485_v45 }
 0x243   : > { %v2333_v17 = vpop.f32.mrf.mxu1  ;;  %3341 = vmatpush.bf16.msra.mxu1 %v4380_v22  ;;  %v693_v49 = vld [vmem:[#allocation2 + $0x139] sm:$0xff]  ;;  %v2710_v0 = vunpack.c.l.b16 %v2518_v48 }
 0x244   : > { %v2334_v15 = vadd.f32 %v2333_v17, %v2245_v55  ;;  %v725_v8 = vpack.c.bf16 %v693_v49, %v693_v49 }
 0x246   : > { %v5359_v11 = vpop.f32.mrf.mxu2  ;;  %2372 = vmatmul.bf16.gmra.mxu1 %v5375_v36  ;;  %v949_v53 = vunpack.c.l.b16 %v725_v8 }
 0x249   : > { %v2028_v62 = vpop.f32.mrf.mxu3 }
 0x24a   : > { %v5373_v39 = vadd.f32 %v2028_v62, %v5138_v27  ;;  %v694_v27 = vld [vmem:[#allocation2 + $0x141] sm:$0xff] }
 0x24b   : > { %3283 = vmatmul.bf16.gmra.mxu0 %v5258_v31  ;;  %2466 = vmatmul.bf16.gmra.mxu2 %v5260_v59  ;;  %v5378_v31 = vadd.f32 %v2422_v14, %v2334_v15  ;;  %v5383_v59 = vpop.f32.mrf.mxu0  ;;  %v2335_v50 = vpop.f32.mrf.mxu1  ;;  %v726_v34 = vpack.c.bf16 %v694_v27, %v694_v27  ;;  %v4392_v27 = vld [vmem:[%s5879_s5 + $0x20] sm:$0xff] }
 0x24c   : > { %v5392_v29 = vadd.f32 %v2335_v50, %v2247_v46  ;;  %3610 = vmatpush.bf16.msra.mxu2 %v4392_v27 }
 0x24d   : > { %3164 = vmatmul.bf16.vlgmr.msra.gmra.mxu3 %v2739_v19  ;;  %v950_v60 = vunpack.c.l.b16 %v726_v34  ;;  %v2709_v19 = vunpack.c.l.b16 %v2517_v1  ;;  %v2487_v1 = vld [vmem:[#allocation2 + $0x60] sm:$0xff] }
 0x24e   : > { %v2427_v57 = vpop.f32.mrf.mxu2 }
 0x24f   : > { %v5403_v49 = vpack.c.b16 %v950_v60, %v949_v53  ;;  %v2519_v60 = vpack.c.bf16 %v2487_v1, %v2487_v1 }
 0x251   : > { %v2031_v47 = vpop.f32.mrf.mxu3 }
 0x252   : > { %v5390_v14 = vadd.f32 %v2031_v47, %v5152_v43  ;;  %v2250_v43 = vadd.f32 %v5114_v33, %v5301_v12  ;;  %v695_v33 = vld [vmem:[#allocation2 + $0x151] sm:$0xff]  ;;  %v696_v12 = vld [vmem:[#allocation2 + $0x159] sm:$0xff]  ;;  %v2488_v47 = vld [vmem:[#allocation2 + $0x68] sm:$0xff] }
 0x253   : > { %v5396_v55 = vpop.f32.mrf.mxu0  ;;  %v2338_v42 = vpop.f32.mrf.mxu1  ;;  %v727_v45 = vpack.c.bf16 %v695_v33, %v695_v33  ;;  %v728_v48 = vpack.c.bf16 %v696_v12, %v696_v12  ;;  %v2520_v53 = vpack.c.bf16 %v2488_v47, %v2488_v47  ;;  %v697_v12 = vld [vmem:[#allocation2 + $0x169] sm:$0xff] }
 0x254   : > { %v2339_v22 = vadd.f32 %v2338_v42, %v2250_v43  ;;  %v2255_v43 = vadd.f32 %v5154_v41, %v5336_v58  ;;  %v698_v41 = vld [vmem:[#allocation2 + $0x171] sm:$0xff]  ;;  %v2257_v58 = vadd.f32 %v5174_v2, %v5347_v10 }
 0x255   : > { %v730_v1 = vpack.c.bf16 %v698_v41, %v698_v41 }
 0x256   : > { %v5387_v63 = vpop.f32.mrf.mxu2  ;;  %2377 = vmatmul.bf16.gmra.mxu1 %v5403_v49 }
 0x257   : > { %v954_v10 = vunpack.c.l.b16 %v730_v1  ;;  %v2492_v1 = vld [vmem:[#allocation2 + $0x98] sm:$0xff] }
 0x259   : > { %v2033_v62 = vpop.f32.mrf.mxu3 }
 0x25a   : > { %v5401_v15 = vadd.f32 %v2033_v62, %v5172_v4  ;;  %v2252_v4 = vadd.f32 %v5130_v38, %v5315_v35  ;;  %v951_v38 = vunpack.c.l.b16 %v727_v45  ;;  %v952_v35 = vunpack.c.l.b16 %v728_v48 }
 0x25b   : > { %3288 = vmatmul.bf16.gmra.mxu0 %v5285_v26  ;;  %2471 = vmatmul.bf16.gmra.mxu2 %v5289_v28  ;;  %v2740_v26 = vpack.c.b16 %v2710_v0, %v2709_v19  ;;  %v5406_v28 = vadd.f32 %v2427_v57, %v2339_v22  ;;  %v5415_v50 = vpop.f32.mrf.mxu0  ;;  %v2340_v8 = vpop.f32.mrf.mxu1  ;;  %v2712_v0 = vunpack.c.l.b16 %v2520_v53  ;;  %v2711_v22 = vunpack.c.l.b16 %v2519_v60 }
 0x25c   : > { %v5420_v34 = vadd.f32 %v2340_v8, %v2252_v4  ;;  %v5429_v27 = vpack.c.b16 %v952_v35, %v951_v38  ;;  %v729_v48 = vpack.c.bf16 %v697_v12, %v697_v12 }
 0x25d   : > { %3169 = vmatmul.bf16.gmra.mxu3 %v2740_v26 }
 0x25e   : > { %v2432_v17 = vpop.f32.mrf.mxu2  ;;  %v953_v2 = vunpack.c.l.b16 %v729_v48 }
 0x260   : > { %v5453_v12 = vpack.c.b16 %v954_v10, %v953_v2 }
 0x261   : > { %v2036_v46 = vpop.f32.mrf.mxu3 }
 0x262   : > { %v5418_v57 = vadd.f32 %v2036_v46, %v5182_v51 }
 0x263   : > { %v2343_v42 = vpop.f32.mrf.mxu1  ;;  %v5431_v33 = vpop.f32.mrf.mxu0 }
 0x264   : > { %v2344_v26 = vadd.f32 %v2343_v42, %v2255_v43 }
 0x266   : > { %v5413_v18 = vpop.f32.mrf.mxu2  ;;  %2382 = vmatmul.bf16.gmra.mxu1 %v5429_v27 }
 0x269   : > { %v2038_v62 = vpop.f32.mrf.mxu3 }
 0x26a   : > { %v5427_v19 = vadd.f32 %v2038_v62, %v5196_v52  ;;  %v2490_v52 = vld [vmem:[#allocation2 + $0x80] sm:$0xff] }
 0x26b   : > { %3293 = vmatmul.bf16.gmra.mxu0 %v5317_v61  ;;  %2476 = vmatmul.bf16.gmra.mxu2 %v5319_v25  ;;  %v2741_v61 = vpack.c.b16 %v2712_v0, %v2711_v22  ;;  %v5434_v25 = vadd.f32 %v2432_v17, %v2344_v26  ;;  %v2345_v47 = vpop.f32.mrf.mxu1  ;;  %v2489_v17 = vld [vmem:[#allocation2 + $0x78] sm:$0xff]  ;;  %v2522_v53 = vpack.c.bf16 %v2490_v52, %v2490_v52  ;;  %v5445_v60 = vpop.f32.mrf.mxu0  ;;  %v5898_v0 = vld [vmem:[#allocation11_spill] sm:$0xff] }
 0x26c   : > { %v5443_v45 = vadd.f32 %v2345_v47, %v2257_v58  ;;  %v2521_v38 = vpack.c.bf16 %v2489_v17, %v2489_v17  ;;  %v2260_v43 = vadd.f32 %v5898_v0, %v5362_v40  ;;  %v4391_v58 = vld [vmem:[%s5879_s5 + $0x18] sm:$0xff]  ;;  %v2524_v0 = vpack.c.bf16 %v2492_v1, %v2492_v1 }
 0x26d   : > { %3174 = vmatmul.bf16.gmra.mxu3 %v2741_v61  ;;  %v2714_v35 = vunpack.c.l.b16 %v2522_v53  ;;  %3611 = vmatpush.bf16.msra.mxu2 %v4391_v58  ;;  %v5899_v52 = vld [vmem:[#allocation12_spill] sm:$0xff] }
 0x26e   : > { %v2437_v51 = vpop.f32.mrf.mxu2  ;;  %v2713_v26 = vunpack.c.l.b16 %v2521_v38  ;;  %v2262_v47 = vadd.f32 %v5899_v52, %v5373_v39  ;;  %v2716_v39 = vunpack.c.l.b16 %v2524_v0 }
 0x270   : > { %v2742_v41 = vpack.c.b16 %v2714_v35, %v2713_v26  ;;  %v2491_v35 = vld [vmem:[#allocation2 + $0x90] sm:$0xff]  ;;  %v5901_v26 = vld [vmem:[#allocation13_spill] sm:$0xff] }
 0x271   : > { %v2041_v4 = vpop.f32.mrf.mxu3 }
 0x272   : > { %v5441_v8 = vadd.f32 %v2041_v4, %v5207_v3  ;;  %v2611_v4 = vld [vmem:[#allocation2 + $0x32] sm:$0xff] }
 0x273   : > { %v2348_v42 = vpop.f32.mrf.mxu1  ;;  %v5461_v40 = vpop.f32.mrf.mxu0  ;;  %v2643_v2 = vpack.c.bf16 %v2611_v4, %v2611_v4 }
 0x274   : > { %v2349_v61 = vadd.f32 %v2348_v42, %v2260_v43  ;;  %v2523_v43 = vpack.c.bf16 %v2491_v35, %v2491_v35 }
 0x276   : > { %v5438_v46 = vpop.f32.mrf.mxu2  ;;  %2387 = vmatmul.bf16.gmra.mxu1 %v5453_v12  ;;  %v2715_v4 = vunpack.c.l.b16 %v2523_v43 }
 0x277   : > { %5897 = vst [vmem:[#allocation18_spill] sm:$0xff] %v5438_v46 }
 0x279   : > { %v2043_v62 = vpop.f32.mrf.mxu3 }
 0x27a   : > { %v5451_v22 = vadd.f32 %v2043_v62, %v5219_v5  ;;  %v2612_v5 = vld [vmem:[#allocation2 + $0x3a] sm:$0xff]  ;;  %v2899_v62 = vunpack.c.l.b16 %v2643_v2  ;;  %v2613_v2 = vld [vmem:[#allocation2 + $0x4a] sm:$0xff] }
 0x27b   : > { %3298 = vmatmul.bf16.gmra.mxu0 %v5349_v54  ;;  %v5456_v54 = vadd.f32 %v2437_v51, %v2349_v61  ;;  %v2350_v53 = vpop.f32.mrf.mxu1  ;;  %v2644_v10 = vpack.c.bf16 %v2612_v5, %v2612_v5  ;;  %v2265_v61 = vadd.f32 %v5901_v26, %v5390_v14  ;;  %v5475_v52 = vpop.f32.mrf.mxu0  ;;  %v5903_v14 = vld [vmem:[#allocation14_spill] sm:$0xff]  ;;  %v2494_v26 = vld [vmem:[#allocation2 + $0xb0] sm:$0xff] }
 0x27c   : > { %v5470_v38 = vadd.f32 %v2350_v53, %v2262_v47  ;;  %v5902_v47 = vld [vmem:[#allocation15_spill] sm:$0xff]  ;;  %v2743_v53 = vpack.c.b16 %v2716_v39, %v2715_v4  ;;  %v2267_v35 = vadd.f32 %v5903_v14, %v5401_v15 }
 0x27d   : > { %3179 = vmatmul.bf16.gmra.mxu3 %v2742_v41  ;;  %v2900_v42 = vunpack.c.l.b16 %v2644_v10  ;;  %v2614_v10 = vld [vmem:[#allocation2 + $0x52] sm:$0xff] }
 0x27e   : > { %v2442_v3 = vpop.f32.mrf.mxu2 }
 0x27f   : > { %v2931_v1 = vpack.c.b16 %v2900_v42, %v2899_v62  ;;  %v2645_v62 = vpack.c.bf16 %v2613_v2, %v2613_v2  ;;  %v2646_v42 = vpack.c.bf16 %v2614_v10, %v2614_v10 }
 0x281   : > { %v2046_v48 = vpop.f32.mrf.mxu3  ;;  %v2901_v15 = vunpack.c.l.b16 %v2645_v62  ;;  %v2902_v4 = vunpack.c.l.b16 %v2646_v42  ;;  %v5907_v42 = vld [vmem:[#allocation17_spill] sm:$0xff] }
 0x282   : > { %v5468_v51 = vadd.f32 %v2046_v48, %v5230_v30 }
 0x283   : > { %v2353_v30 = vpop.f32.mrf.mxu1  ;;  %v5491_v39 = vpop.f32.mrf.mxu0 }
 0x284   : > { %v2354_v5 = vadd.f32 %v2353_v30, %v2265_v61  ;;  %v2526_v61 = vpack.c.bf16 %v2494_v26, %v2494_v26 }
 0x286   : > { %v5465_v17 = vpop.f32.mrf.mxu2  ;;  %3342 = vmatmul.bf16.vlgmr.msra.gmra.mxu1 %v2931_v1  ;;  %v2270_v1 = vadd.f32 %v5251_v6, %v5418_v57  ;;  %v2615_v6 = vld [vmem:[#allocation2 + $0x62] sm:$0xff]  ;;  %v2616_v57 = vld [vmem:[#allocation2 + $0x6a] sm:$0xff] }
 0x287   : > { %5900 = vst [vmem:[#allocation11_spill] sm:$0xff] %v5465_v17 }
 0x289   : > { %v2048_v41 = vpop.f32.mrf.mxu3 }
 0x28a   : > { %v5478_v48 = vadd.f32 %v2048_v41, %v5902_v47  ;;  %v5905_v41 = vld [vmem:[#allocation3_spill] sm:$0xff] }
 0x28b   : > { %3303 = vmatmul.bf16.gmra.mxu0 %v5375_v36  ;;  %v5480_v36 = vadd.f32 %v2442_v3, %v2354_v5  ;;  %v2355_v46 = vpop.f32.mrf.mxu1  ;;  %v2493_v3 = vld [vmem:[#allocation2 + $0xa8] sm:$0xff]  ;;  %v2718_v5 = vunpack.c.l.b16 %v2526_v61  ;;  %v5504_v62 = vpop.f32.mrf.mxu0 }
 0x28c   : > { %v5489_v43 = vadd.f32 %v2355_v46, %v2267_v35  ;;  %v2525_v30 = vpack.c.bf16 %v2493_v3, %v2493_v3  ;;  %v5906_v46 = vld [vmem:[#allocation4_spill] sm:$0xff]  ;;  %v2272_v3 = vadd.f32 %v5907_v42, %v5427_v19  ;;  %v2275_v42 = vadd.f32 %v5287_v56, %v5441_v8  ;;  %v2498_v8 = vld [vmem:[#allocation2 + $0xe0] sm:$0xff] }
 0x28d   : > { %3184 = vmatmul.bf16.gmra.mxu3 %v2743_v53 }
 0x28e   : > { %v2447_v58 = vpop.f32.mrf.mxu2  ;;  %v2717_v2 = vunpack.c.l.b16 %v2525_v30  ;;  %v2496_v30 = vld [vmem:[#allocation2 + $0xc8] sm:$0xff] }
 0x291   : > { %v2051_v0 = vpop.f32.mrf.mxu3 }
 0x292   : > { %v5487_v47 = vadd.f32 %v2051_v0, %v5905_v41  ;;  %v2932_v41 = vpack.c.b16 %v2902_v4, %v2901_v15 }
 0x293   : > { %v2358_v0 = vpop.f32.mrf.mxu1  ;;  %v5516_v19 = vpop.f32.mrf.mxu0 }
 0x294   : > { %v2359_v10 = vadd.f32 %v2358_v0, %v2270_v1  ;;  %v2648_v0 = vpack.c.bf16 %v2616_v57, %v2616_v57 }
 0x296   : > { %v5484_v17 = vpop.f32.mrf.mxu2  ;;  %3347 = vmatmul.bf16.gmra.mxu1 %v2932_v41  ;;  %v5499_v26 = vadd.f32 %v2447_v58, %v2359_v10  ;;  %v5909_v58 = vld [vmem:[#allocation5_spill] sm:$0xff]  ;;  %v2904_v41 = vunpack.c.l.b16 %v2648_v0 }
 0x297   : > { %5904 = vst [vmem:[#allocation12_spill] sm:$0xff] %v5484_v17  ;;  %v2744_v17 = vpack.c.b16 %v2718_v5, %v2717_v2  ;;  %v2618_v0 = vld [vmem:[#allocation2 + $0x82] sm:$0xff] }
 0x299   : > { %v2053_v53 = vpop.f32.mrf.mxu3 }
 0x29a   : > { %v5497_v35 = vadd.f32 %v2053_v53, %v5906_v46  ;;  %v2647_v53 = vpack.c.bf16 %v2615_v6, %v2615_v6  ;;  %v2495_v46 = vld [vmem:[#allocation2 + $0xc0] sm:$0xff] }
 0x29b   : > { %3308 = vmatmul.bf16.gmra.mxu0 %v5403_v49  ;;  %v4390_v49 = vld [vmem:[%s5879_s5 + $0x10] sm:$0xff]  ;;  %v2360_v4 = vpop.f32.mrf.mxu1  ;;  %v2527_v2 = vpack.c.bf16 %v2495_v46, %v2495_v46 }
 0x29c   : > { %3612 = vmatpush.bf16.msra.mxu2 %v4390_v49  ;;  %v5513_v1 = vadd.f32 %v2360_v4, %v2272_v3  ;;  %v2903_v10 = vunpack.c.l.b16 %v2647_v53  ;;  %v2617_v53 = vld [vmem:[#allocation2 + $0x7a] sm:$0xff] }
 0x29d   : > { %3189 = vmatmul.bf16.gmra.mxu3 %v2744_v17  ;;  %v2528_v17 = vpack.c.bf16 %v2496_v30, %v2496_v30  ;;  %v2719_v6 = vunpack.c.l.b16 %v2527_v2 }
 0x29e   : > { %v2452_v14 = vpop.f32.mrf.mxu2  ;;  %5910 = vst [vmem:[#allocation15_spill] sm:$0xff] %v5513_v1  ;;  %v2933_v4 = vpack.c.b16 %v2904_v41, %v2903_v10  ;;  %v5527_v1 = vpop.f32.mrf.mxu0  ;;  %v2649_v41 = vpack.c.bf16 %v2617_v53, %v2617_v53 }
 0x29f   : > { %v2720_v49 = vunpack.c.l.b16 %v2528_v17  ;;  %v2277_v17 = vadd.f32 %v5308_v9, %v5451_v22 }
 0x2a0   : > { %v2905_v9 = vunpack.c.l.b16 %v2649_v41 }
 0x2a1   : > { %v2056_v61 = vpop.f32.mrf.mxu3  ;;  %v2745_v46 = vpack.c.b16 %v2720_v49, %v2719_v6  ;;  %v2650_v49 = vpack.c.bf16 %v2618_v0, %v2618_v0 }
 0x2a2   : > { %v5511_v5 = vadd.f32 %v2056_v61, %v5909_v58  ;;  %v5911_v58 = vld [vmem:[#allocation6_spill] sm:$0xff] }
 0x2a3   : > { %v2363_v61 = vpop.f32.mrf.mxu1  ;;  %v2906_v22 = vunpack.c.l.b16 %v2650_v49 }
 0x2a4   : > { %v2364_v57 = vadd.f32 %v2363_v61, %v2275_v42  ;;  %v2530_v42 = vpack.c.bf16 %v2498_v8, %v2498_v8 }
 0x2a6   : > { %v5508_v15 = vpop.f32.mrf.mxu2  ;;  %3352 = vmatmul.bf16.gmra.mxu1 %v2933_v4  ;;  %v2280_v4 = vadd.f32 %v5331_v13, %v5468_v51  ;;  %v4389_v13 = vld [vmem:[%s5879_s5 + $0x8] sm:$0xff] }
 0x2a7   : > { %5908 = vst [vmem:[#allocation13_spill] sm:$0xff] %v5508_v15  ;;  %3613 = vmatpush.bf16.msra.mxu2 %v4389_v13 }
 0x2a9   : > { %v2058_v15 = vpop.f32.mrf.mxu3 }
 0x2aa   : > { %v5521_v3 = vadd.f32 %v2058_v15, %v5911_v58  ;;  %v5913_v58 = vld [vmem:[#allocation7_spill] sm:$0xff] }
 0x2ab   : > { %3313 = vmatmul.bf16.gmra.mxu0 %v5429_v27  ;;  %v5523_v27 = vadd.f32 %v2452_v14, %v2364_v57  ;;  %v2365_v15 = vpop.f32.mrf.mxu1  ;;  %v2497_v14 = vld [vmem:[#allocation2 + $0xd8] sm:$0xff]  ;;  %v2722_v57 = vunpack.c.l.b16 %v2530_v42 }
 0x2ac   : > { %v5532_v10 = vadd.f32 %v2365_v15, %v2277_v17  ;;  %v2529_v6 = vpack.c.bf16 %v2497_v14, %v2497_v14  ;;  %v5916_v15 = vld [vmem:[#allocation8_spill] sm:$0xff] }
 0x2ad   : > { %5912 = vst [vmem:[#allocation14_spill] sm:$0xff] %v5523_v27  ;;  %3194 = vmatmul.bf16.gmra.mxu3 %v2745_v46  ;;  %v2619_v42 = vld [vmem:[#allocation2 + $0x92] sm:$0xff] }
 0x2ae   : > { %v2457_v30 = vpop.f32.mrf.mxu2  ;;  %5914 = vst [vmem:[#allocation3_spill] sm:$0xff] %v5532_v10  ;;  %v2721_v0 = vunpack.c.l.b16 %v2529_v6  ;;  %v2934_v10 = vpack.c.b16 %v2906_v22, %v2905_v9  ;;  %v2282_v9 = vadd.f32 %v5344_v44, %v5478_v48  ;;  %v2285_v48 = vadd.f32 %v5364_v24, %v5487_v47 }
 0x2af   : > { %v2287_v24 = vadd.f32 %v5383_v59, %v5497_v35 }
 0x2b0   : > { %v2746_v14 = vpack.c.b16 %v2722_v57, %v2721_v0  ;;  %v2500_v57 = vld [vmem:[#allocation2 + $0xf8] sm:$0xff]  ;;  %v2499_v0 = vld [vmem:[#allocation2 + $0xf0] sm:$0xff] }
 0x2b1   : > { %v2061_v56 = vpop.f32.mrf.mxu3 }
 0x2b2   : > { %v5530_v2 = vadd.f32 %v2061_v56, %v5913_v58  ;;  %v2575_v56 = vld [vmem:[#allocation2 + $0x181] sm:$0xff]  ;;  %v2576_v58 = vld [vmem:[#allocation2 + $0x189] sm:$0xff] }
 0x2b3   : > { %v2368_v17 = vpop.f32.mrf.mxu1  ;;  %v2608_v41 = vpack.c.bf16 %v2576_v58, %v2576_v58 }
 0x2b4   : > { %v2369_v8 = vadd.f32 %v2368_v17, %v2280_v4  ;;  %v2651_v17 = vpack.c.bf16 %v2619_v42, %v2619_v42 }
 0x2b5   : > { %v2832_v4 = vunpack.c.l.b16 %v2608_v41 }
 0x2b6   : > { %v5534_v61 = vpop.f32.mrf.mxu2  ;;  %3357 = vmatmul.bf16.gmra.mxu1 %v2934_v10  ;;  %v5544_v49 = vadd.f32 %v2457_v30, %v2369_v8  ;;  %v5918_v10 = vld [vmem:[#allocation9_spill] sm:$0xff]  ;;  %v2532_v8 = vpack.c.bf16 %v2500_v57, %v2500_v57  ;;  %v2907_v41 = vunpack.c.l.b16 %v2651_v17  ;;  %v2621_v17 = vld [vmem:[#allocation2 + $0xaa] sm:$0xff] }
 0x2b7   : > { %5915 = vst [vmem:[#allocation4_spill] sm:$0xff] %v5534_v61  ;;  %v5542_v61 = vpop.f32.mrf.mxu0 }
 0x2b8   : > { %5917 = vst [vmem:[#allocation17_spill] sm:$0xff] %v5544_v49  ;;  %v2724_v44 = vunpack.c.l.b16 %v2532_v8 }
 0x2b9   : > { %v2063_v46 = vpop.f32.mrf.mxu3 }
 0x2ba   : > { %v5540_v53 = vadd.f32 %v2063_v46, %v5916_v15  ;;  %v2620_v46 = vld [vmem:[#allocation2 + $0x9a] sm:$0xff] }
 0x2bb   : > { %3318 = vmatmul.bf16.gmra.mxu0 %v5453_v12  ;;  %v2607_v12 = vpack.c.bf16 %v2575_v56, %v2575_v56  ;;  %v2370_v56 = vpop.f32.mrf.mxu1  ;;  %v2652_v15 = vpack.c.bf16 %v2620_v46, %v2620_v46 }
 0x2bc   : > { %v5554_v58 = vadd.f32 %v2370_v56, %v2282_v9  ;;  %v5919_v56 = vld [vmem:[#allocation10_spill] sm:$0xff] }
 0x2bd   : > { %3199 = vmatmul.bf16.gmra.mxu3 %v2746_v14  ;;  %v2831_v6 = vunpack.c.l.b16 %v2607_v12  ;;  %v2531_v12 = vpack.c.bf16 %v2499_v0, %v2499_v0  ;;  %v2908_v49 = vunpack.c.l.b16 %v2652_v15  ;;  %v2622_v15 = vld [vmem:[#allocation2 + $0xb2] sm:$0xff] }
 0x2be   : > { %v2462_v51 = vpop.f32.mrf.mxu2  ;;  %v2502_v0 = vld [vmem:[#allocation2 + $0x110] sm:$0xff] }
 0x2bf   : > { %v2849_v14 = vpack.c.b16 %v2832_v4, %v2831_v6  ;;  %v5556_v13 = vpop.f32.mrf.mxu0  ;;  %v2723_v46 = vunpack.c.l.b16 %v2531_v12  ;;  %v2935_v6 = vpack.c.b16 %v2908_v49, %v2907_v41  ;;  %v2654_v12 = vpack.c.bf16 %v2622_v15, %v2622_v15  ;;  %v2501_v49 = vld [vmem:[#allocation2 + $0x108] sm:$0xff] }
 0x2c0   : > { %v2534_v41 = vpack.c.bf16 %v2502_v0, %v2502_v0  ;;  %v4388_v0 = vld [vmem:[%s5879_s5] sm:$0xff] }
 0x2c1   : > { %v2066_v22 = vpop.f32.mrf.mxu3  ;;  %v2747_v4 = vpack.c.b16 %v2724_v44, %v2723_v46  ;;  %v2533_v44 = vpack.c.bf16 %v2501_v49, %v2501_v49  ;;  %v2290_v46 = vadd.f32 %v5396_v55, %v5511_v5  ;;  %3614 = vmatpush.bf16.msra.mxu2 %v4388_v0  ;;  %v2624_v55 = vld [vmem:[#allocation2 + $0xca] sm:$0xff]  ;;  %v2292_v5 = vadd.f32 %v5415_v50, %v5521_v3 }
 0x2c2   : > { %v5552_v30 = vadd.f32 %v2066_v22, %v5918_v10 }
 0x2c3   : > { %v2373_v9 = vpop.f32.mrf.mxu1  ;;  %v2725_v35 = vunpack.c.l.b16 %v2533_v44  ;;  %v2656_v44 = vpack.c.bf16 %v2624_v55, %v2624_v55  ;;  %v2625_v55 = vld [vmem:[#allocation2 + $0xda] sm:$0xff] }
 0x2c4   : > { %v2374_v57 = vadd.f32 %v2373_v9, %v2285_v48  ;;  %v2910_v9 = vunpack.c.l.b16 %v2654_v12  ;;  %v2504_v12 = vld [vmem:[#allocation2 + $0x128] sm:$0xff] }
 0x2c6   : > { %v5560_v22 = vpop.f32.mrf.mxu2  ;;  %3362 = vmatmul.bf16.gmra.mxu1 %v2935_v6  ;;  %v5565_v10 = vadd.f32 %v2462_v51, %v2374_v57 }
 0x2c9   : > { %v2068_v27 = vpop.f32.mrf.mxu3 }
 0x2ca   : > { %v5563_v42 = vadd.f32 %v2068_v27, %v5919_v56  ;;  %v2653_v27 = vpack.c.bf16 %v2621_v17, %v2621_v17  ;;  %v2726_v56 = vunpack.c.l.b16 %v2534_v41 }
 0x2cb   : > { %3323 = vmatmul.bf16.gmra.mxu0 %v2849_v14  ;;  %v2375_v8 = vpop.f32.mrf.mxu1 }
 0x2cc   : > { %v5571_v14 = vadd.f32 %v2375_v8, %v2287_v24  ;;  %v2909_v51 = vunpack.c.l.b16 %v2653_v27  ;;  %v2748_v24 = vpack.c.b16 %v2726_v56, %v2725_v35  ;;  %v2623_v8 = vld [vmem:[#allocation2 + $0xc2] sm:$0xff] }
 0x2cd   : > { %3204 = vmatmul.bf16.gmra.mxu3 %v2747_v4 }
 0x2ce   : > { %v2467_v48 = vpop.f32.mrf.mxu2  ;;  %v2936_v4 = vpack.c.b16 %v2910_v9, %v2909_v51  ;;  %v2503_v51 = vld [vmem:[#allocation2 + $0x120] sm:$0xff]  ;;  %v2536_v9 = vpack.c.bf16 %v2504_v12, %v2504_v12 }
 0x2cf   : > { %v2535_v56 = vpack.c.bf16 %v2503_v51, %v2503_v51  ;;  %v2626_v12 = vld [vmem:[#allocation2 + $0xe2] sm:$0xff] }
 0x2d1   : > { %v5569_v47 = vpop.f32.mrf.mxu3  ;;  %v2727_v3 = vunpack.c.l.b16 %v2535_v56  ;;  %v2657_v56 = vpack.c.bf16 %v2625_v55, %v2625_v55  ;;  %v2627_v55 = vld [vmem:[#allocation2 + $0xf2] sm:$0xff] }
 0x2d3   : > { %v2378_v59 = vpop.f32.mrf.mxu1 }
 0x2d4   : > { %v2379_v6 = vadd.f32 %v2378_v59, %v2290_v46  ;;  %v2912_v59 = vunpack.c.l.b16 %v2656_v44  ;;  %v2505_v44 = vld [vmem:[#allocation2 + $0x138] sm:$0xff] }
 0x2d6   : > { %3367 = vmatmul.bf16.gmra.mxu1 %v2936_v4  ;;  %v5577_v17 = vadd.f32 %v2467_v48, %v2379_v6  ;;  %v5579_v15 = vpop.f32.mrf.mxu2  ;;  %v2655_v48 = vpack.c.bf16 %v2623_v8, %v2623_v8  ;;  %v2728_v6 = vunpack.c.l.b16 %v2536_v9  ;;  %v2295_v4 = vadd.f32 %v5431_v33, %v5530_v2  ;;  %v2506_v33 = vld [vmem:[#allocation2 + $0x140] sm:$0xff] }
 0x2d7   : > { %5920 = vst [vmem:[#allocation5_spill] sm:$0xff] %v5579_v15 }
 0x2d8   : > { %v2911_v46 = vunpack.c.l.b16 %v2655_v48 }
 0x2d9   : > { %v5575_v57 = vpop.f32.mrf.mxu3 }
 0x2da   : > { %v2937_v15 = vpack.c.b16 %v2912_v59, %v2911_v46  ;;  %v2658_v46 = vpack.c.bf16 %v2626_v12, %v2626_v12  ;;  %v2538_v59 = vpack.c.bf16 %v2506_v33, %v2506_v33  ;;  %v2628_v12 = vld [vmem:[#allocation2 + $0xfa] sm:$0xff]  ;;  %v2507_v33 = vld [vmem:[#allocation2 + $0x150] sm:$0xff] }
 0x2db   : > { %v2380_v49 = vpop.f32.mrf.mxu1 }
 0x2dc   : > { %v5588_v41 = vadd.f32 %v2380_v49, %v2292_v5  ;;  %v2749_v5 = vpack.c.b16 %v2728_v6, %v2727_v3  ;;  %v2297_v49 = vadd.f32 %v5445_v60, %v5540_v53  ;;  %v2914_v6 = vunpack.c.l.b16 %v2658_v46 }
 0x2dd   : > { %3209 = vmatmul.bf16.gmra.mxu3 %v2748_v24  ;;  %v2300_v60 = vadd.f32 %v5461_v40, %v5552_v30  ;;  %v2659_v30 = vpack.c.bf16 %v2627_v55, %v2627_v55  ;;  %v2660_v46 = vpack.c.bf16 %v2628_v12, %v2628_v12  ;;  %v2629_v12 = vld [vmem:[#allocation2 + $0x10a] sm:$0xff] }
 0x2de   : > { %v2472_v35 = vpop.f32.mrf.mxu2 }
 0x2e1   : > { %v5586_v27 = vpop.f32.mrf.mxu3 }
 0x2e3   : > { %v2383_v50 = vpop.f32.mrf.mxu1 }
 0x2e4   : > { %v2384_v0 = vadd.f32 %v2383_v50, %v2295_v4  ;;  %v2730_v50 = vunpack.c.l.b16 %v2538_v59 }
 0x2e6   : > { %3372 = vmatmul.bf16.gmra.mxu1 %v2937_v15  ;;  %v5594_v8 = vadd.f32 %v2472_v35, %v2384_v0  ;;  %v5598_v48 = vpop.f32.mrf.mxu2  ;;  %v2537_v15 = vpack.c.bf16 %v2505_v44, %v2505_v44  ;;  %v2913_v35 = vunpack.c.l.b16 %v2657_v56  ;;  %v2302_v44 = vadd.f32 %v5475_v52, %v5563_v42 }
 0x2e7   : > { %5922 = vst [vmem:[#allocation7_spill] sm:$0xff] %v5598_v48  ;;  %v3255_v52 = vadd.f32 %v5491_v39, %v5569_v47  ;;  %v5630_v39 = vld [vmem:[%s5878_s4] ss:$0 sm:$0xff]  ;;  %v2509_v47 = vld [vmem:[#allocation2 + $0x168] sm:$0xff] }
 0x2e8   : > { %5921 = vst [vmem:[#allocation6_spill] sm:$0xff] %v5594_v8  ;;  %v2729_v4 = vunpack.c.l.b16 %v2537_v15  ;;  %v2938_v0 = vpack.c.b16 %v2914_v6, %v2913_v35  ;;  %v2539_v15 = vpack.c.bf16 %v2507_v33, %v2507_v33  ;;  %v5614_v35 = vpop.f32.mrf.mxu0  ;;  %v3257_v33 = vadd.f32 %v5504_v62, %v5575_v57 }
 0x2e9   : > { %v5592_v24 = vpop.f32.mrf.mxu3 }
 0x2ea   : > { %v2750_v8 = vpack.c.b16 %v2730_v50, %v2729_v4  ;;  %v2731_v4 = vunpack.c.l.b16 %v2539_v15 }
 0x2eb   : > { %v2385_v2 = vpop.f32.mrf.mxu1 }
 0x2ec   : > { %v5602_v9 = vadd.f32 %v2385_v2, %v2297_v49  ;;  %v2508_v2 = vld [vmem:[#allocation2 + $0x158] sm:$0xff] }
 0x2ed   : > { %3214 = vmatmul.bf16.gmra.mxu3 %v2749_v5  ;;  %v2540_v59 = vpack.c.bf16 %v2508_v2, %v2508_v2  ;;  %v5925_v2 = vld [vmem:[#allocation16_spill] sm:$0xff] }
 0x2ee   : > { %v2477_v48 = vpop.f32.mrf.mxu2 }
 0x2ef   : > { %v2732_v50 = vunpack.c.l.b16 %v2540_v59  ;;  %v2661_v59 = vpack.c.bf16 %v2629_v12, %v2629_v12 }
 0x2f1   : > { %v5600_v51 = vpop.f32.mrf.mxu3  ;;  %v2917_v57 = vunpack.c.l.b16 %v2661_v59 }
 0x2f3   : > { %v2388_v53 = vpop.f32.mrf.mxu1 }
 0x2f4   : > { %v2389_v3 = vadd.f32 %v2388_v53, %v2300_v60  ;;  %v2751_v53 = vpack.c.b16 %v2732_v50, %v2731_v4 }
 0x2f6   : > { %3377 = vmatmul.bf16.gmra.mxu1 %v2938_v0  ;;  %v5608_v49 = vadd.f32 %v2477_v48, %v2389_v3  ;;  %v2915_v48 = vunpack.c.l.b16 %v2659_v30  ;;  %v5620_v0 = vpop.f32.mrf.mxu0  ;;  %v2510_v30 = vld [vmem:[#allocation2 + $0x170] sm:$0xff] }
 0x2f7   : > { %v2542_v4 = vpack.c.bf16 %v2510_v30, %v2510_v30  ;;  %v2631_v30 = vld [vmem:[#allocation2 + $0x122] sm:$0xff] }
 0x2f8   : > { %5923 = vst [vmem:[#allocation8_spill] sm:$0xff] %v5608_v49 }
 0x2f9   : > { %v5606_v5 = vpop.f32.mrf.mxu3 }
 0x2fb   : > { %v2390_v56 = vpop.f32.mrf.mxu1 }
 0x2fc   : > { %v5612_v40 = vadd.f32 %v2390_v56, %v2302_v44  ;;  %v2630_v44 = vld [vmem:[#allocation2 + $0x112] sm:$0xff] }
 0x2fd   : > { %3219 = vmatmul.bf16.gmra.mxu3 %v2750_v8  ;;  %v2916_v8 = vunpack.c.l.b16 %v2660_v46 }
 0x2fe   : > { %5924 = vst [vmem:[#allocation9_spill] sm:$0xff] %v5612_v40 }
 0x2ff   : > { %v2939_v42 = vpack.c.b16 %v2916_v8, %v2915_v48  ;;  %v2662_v48 = vpack.c.bf16 %v2630_v44, %v2630_v44  ;;  %v2541_v8 = vpack.c.bf16 %v2509_v47, %v2509_v47  ;;  %v3260_v44 = vadd.f32 %v5516_v19, %v5586_v27 }
 0x300   : > { %v2663_v27 = vpack.c.bf16 %v2631_v30, %v2631_v30 }
 0x301   : > { %v5616_v6 = vpop.f32.mrf.mxu3 }
 0x303   : > { %v3343_v60 = vpop.f32.mrf.mxu1 }
 0x304   : > { %v3344_v3 = vadd.f32 %v3343_v60, %v3255_v52  ;;  %v2918_v52 = vunpack.c.l.b16 %v2662_v48  ;;  %v2511_v48 = vld [vmem:[#allocation2 + $0x180] sm:$0xff] }
 0x306   : > { %3382 = vmatmul.bf16.gmra.mxu1 %v2939_v42  ;;  %v3423_v56 = vadd.f32 %v3344_v3, %v5925_v2  ;;  %v2733_v42 = vunpack.c.l.b16 %v2541_v8  ;;  %v5635_v3 = vpop.f32.mrf.mxu0  ;;  %v2512_v8 = vld [vmem:[#allocation2 + $0x188] sm:$0xff] }
 0x308   : > { %v3459_v50 = vadd.f32 %v5630_v39, %v3423_v56  ;;  %v2940_v56 = vpack.c.b16 %v2918_v52, %v2917_v57  ;;  %v2544_v57 = vpack.c.bf16 %v2512_v8, %v2512_v8  ;;  %v3267_v8 = vadd.f32 %v5556_v13, %v5606_v5 }
 0x309   : > { %v5622_v55 = vpop.f32.mrf.mxu3 }
 0x30a   : > { %v3491_v2 = vmax.f32 %v3459_v50, 0.0 }
 0x30b   : > { %v3345_v46 = vpop.f32.mrf.mxu1 }
 0x30c   : > { %v3346_v15 = vadd.f32 %v3345_v46, %v3257_v33  ;;  %v2632_v46 = vld [vmem:[#allocation2 + $0x12a] sm:$0xff] }
 0x30d   : > { %3224 = vmatmul.bf16.gmra.mxu3 %v2751_v53  ;;  %v2734_v53 = vunpack.c.l.b16 %v2542_v4 }
 0x30e   : > { %v3424_v60 = vadd.f32 %v3346_v15, %v5276_v16  ;;  %v3262_v15 = vadd.f32 %v5527_v1, %v5592_v24  ;;  %v5644_v50 = vpop.f32.mrf.mxu0  ;;  %v2919_v24 = vunpack.c.l.b16 %v2663_v27 }
 0x30f   : > { %v2752_v47 = vpack.c.b16 %v2734_v53, %v2733_v42 }
 0x310   : > { %v3460_v62 = vadd.f32 %v5630_v39, %v3424_v60 }
 0x311   : > { %v5637_v49 = vpop.f32.mrf.mxu3 }
 0x312   : > { %v3492_v40 = vmax.f32 %v3460_v62, 0.0  ;;  %v2543_v62 = vpack.c.bf16 %v2511_v48, %v2511_v48  ;;  %v2634_v48 = vld [vmem:[#allocation2 + $0x142] sm:$0xff] }
 0x313   : > { %v3348_v12 = vpop.f32.mrf.mxu1  ;;  %v2666_v27 = vpack.c.bf16 %v2634_v48, %v2634_v48 }
 0x314   : > { %v3523_v33 = vpack.c.bf16 %v3492_v40, %v3491_v2  ;;  %v3349_v16 = vadd.f32 %v3348_v12, %v3260_v44  ;;  %v2664_v40 = vpack.c.bf16 %v2632_v46, %v2632_v46  ;;  %v2735_v53 = vunpack.c.l.b16 %v2543_v62 }
 0x315   : > { %v2736_v2 = vunpack.c.l.b16 %v2544_v57 }
 0x316   : > { %3387 = vmatmul.bf16.gmra.mxu1 %v2940_v56  ;;  %3615 = vmatmul.bf16.vlgmr.msra.gmra.mxu2 %v3523_v33  ;;  %v3425_v59 = vadd.f32 %v3349_v16, %v5292_v21  ;;  %v2920_v21 = vunpack.c.l.b16 %v2664_v40  ;;  %v3265_v56 = vadd.f32 %v5542_v61, %v5600_v51  ;;  %v5653_v46 = vpop.f32.mrf.mxu0 }
 0x317   : > { %v2753_v30 = vpack.c.b16 %v2736_v2, %v2735_v53 }
 0x318   : > { %v3461_v52 = vadd.f32 %v5630_v39, %v3425_v59  ;;  %v2633_v59 = vld [vmem:[#allocation2 + $0x13a] sm:$0xff] }
 0x319   : > { %v5646_v60 = vpop.f32.mrf.mxu3  ;;  %v2665_v51 = vpack.c.bf16 %v2633_v59, %v2633_v59 }
 0x31a   : > { %v3493_v12 = vmax.f32 %v3461_v52, 0.0 }
 0x31b   : > { %v3350_v4 = vpop.f32.mrf.mxu1 }
 0x31c   : > { %v3351_v19 = vadd.f32 %v3350_v4, %v3262_v15 }
 0x31d   : > { %3229 = vmatmul.bf16.gmra.mxu3 %v2752_v47  ;;  %v2941_v47 = vpack.c.b16 %v2920_v21, %v2919_v24 }
 0x31e   : > { %v3426_v42 = vadd.f32 %v3351_v19, %v5306_v23  ;;  %v5662_v57 = vpop.f32.mrf.mxu0 }
 0x320   : > { %v3462_v1 = vadd.f32 %v5630_v39, %v3426_v42  ;;  %v2921_v42 = vunpack.c.l.b16 %v2665_v51 }
 0x321   : > { %v5655_v23 = vpop.f32.mrf.mxu3 }
 0x322   : > { %v3494_v44 = vmax.f32 %v3462_v1, 0.0  ;;  %v2922_v1 = vunpack.c.l.b16 %v2666_v27 }
 0x323   : > { %v3353_v33 = vpop.f32.mrf.mxu1 }
 0x324   : > { %v3524_v16 = vpack.c.bf16 %v3494_v44, %v3493_v12  ;;  %v3354_v15 = vadd.f32 %v3353_v33, %v3265_v56  ;;  %v2942_v53 = vpack.c.b16 %v2922_v1, %v2921_v42  ;;  %v2636_v44 = vld [vmem:[#allocation2 + $0x15a] sm:$0xff]  ;;  %v3272_v56 = vadd.f32 %v5620_v0, %v5622_v55  ;;  %v2638_v42 = vld [vmem:[#allocation2 + $0x172] sm:$0xff] }
 0x325   : > { %v3277_v1 = vadd.f32 %v5644_v50, %v5646_v60 }
 0x326   : > { %3392 = vmatmul.bf16.gmra.mxu1 %v2941_v47  ;;  %3620 = vmatmul.bf16.gmra.mxu2 %v3524_v16  ;;  %v3427_v4 = vadd.f32 %v3354_v15, %v5322_v32  ;;  %v3270_v32 = vadd.f32 %v5614_v35, %v5616_v6  ;;  %v5669_v33 = vpop.f32.mrf.mxu0  ;;  %v2668_v35 = vpack.c.bf16 %v2636_v44, %v2636_v44 }
 0x328   : > { %v3463_v40 = vadd.f32 %v5630_v39, %v3427_v4 }
 0x329   : > { %v5665_v24 = vpop.f32.mrf.mxu3 }
 0x32a   : > { %v3495_v21 = vmax.f32 %v3463_v40, 0.0 }
 0x32b   : > { %v3355_v19 = vpop.f32.mrf.mxu1 }
 0x32c   : > { %v3356_v61 = vadd.f32 %v3355_v19, %v3267_v8  ;;  %v2924_v19 = vunpack.c.l.b16 %v2668_v35  ;;  %v2577_v35 = vld [vmem:[#allocation2 + $0x199] sm:$0xff] }
 0x32d   : > { %3234 = vmatmul.bf16.gmra.mxu3 %v2753_v30 }
 0x32e   : > { %v3428_v62 = vadd.f32 %v3356_v61, %v5338_v37  ;;  %v2635_v37 = vld [vmem:[#allocation2 + $0x152] sm:$0xff]  ;;  %v5679_v0 = vpop.f32.mrf.mxu0 }
 0x32f   : > { %v2667_v59 = vpack.c.bf16 %v2635_v37, %v2635_v37 }
 0x330   : > { %v3464_v52 = vadd.f32 %v5630_v39, %v3428_v62 }
 0x331   : > { %v5674_v16 = vpop.f32.mrf.mxu3  ;;  %v2923_v4 = vunpack.c.l.b16 %v2667_v59 }
 0x332   : > { %v3496_v13 = vmax.f32 %v3464_v52, 0.0 }
 0x333   : > { %v3358_v5 = vpop.f32.mrf.mxu1  ;;  %v2943_v55 = vpack.c.b16 %v2924_v19, %v2923_v4 }
 0x334   : > { %v3525_v2 = vpack.c.bf16 %v3496_v13, %v3495_v21  ;;  %v3359_v12 = vadd.f32 %v3358_v5, %v3270_v32  ;;  %v4432_v13 = vld [vmem:[#allocation2] sm:$0xff] }
 0x335   : > { %v2545_v5 = vpack.c.bf16 %v4432_v13, %v4432_v13 }
 0x336   : > { %3397 = vmatmul.bf16.gmra.mxu1 %v2942_v53  ;;  %3625 = vmatmul.bf16.gmra.mxu2 %v3525_v2  ;;  %v3429_v47 = vadd.f32 %v3359_v12, %v5352_v20  ;;  %v3275_v20 = vadd.f32 %v5635_v3, %v5637_v49  ;;  %v2425_v49 = vadd.f32 %v5359_v11, %v5392_v29  ;;  %v5690_v37 = vpop.f32.mrf.mxu0  ;;  %v2578_v11 = vld [vmem:[#allocation2 + $0x1a1] sm:$0xff] }
 0x337   : > { %v2670_v2 = vpack.c.bf16 %v2638_v42, %v2638_v42  ;;  %v2737_v12 = vunpack.c.l.b16 %v2545_v5  ;;  %v3282_v42 = vadd.f32 %v5662_v57, %v5665_v24 }
 0x338   : > { %v3465_v6 = vadd.f32 %v5630_v39, %v3429_v47 }
 0x339   : > { %v5683_v62 = vpop.f32.mrf.mxu3  ;;  %v2754_v47 = vpack.c.b16 %v2737_v12, %v2737_v12  ;;  %v2926_v60 = vunpack.c.l.b16 %v2670_v2 }
 0x33a   : > { %v3497_v61 = vmax.f32 %v3465_v6, 0.0  ;;  %v2609_v6 = vpack.c.bf16 %v2577_v35, %v2577_v35 }
 0x33b   : > { %v3360_v30 = vpop.f32.mrf.mxu1 }
 0x33c   : > { %v3361_v15 = vadd.f32 %v3360_v30, %v3272_v56 }
 0x33d   : > { %3239 = vmatmul.bf16.gmra.mxu3 %v2754_v47 }
 0x33e   : > { %v3430_v48 = vadd.f32 %v3361_v15, %v5366_v7  ;;  %v2637_v7 = vld [vmem:[#allocation2 + $0x16a] sm:$0xff] }
 0x33f   : > { %v2669_v53 = vpack.c.bf16 %v2637_v7, %v2637_v7  ;;  %v2640_v7 = vld [vmem:[#allocation2 + $0x18a] sm:$0xff] }
 0x340   : > { %v3466_v8 = vadd.f32 %v5630_v39, %v3430_v48  ;;  %v2610_v48 = vpack.c.bf16 %v2578_v11, %v2578_v11  ;;  %v2672_v5 = vpack.c.bf16 %v2640_v7, %v2640_v7 }
 0x341   : > { %v5693_v30 = vpop.f32.mrf.mxu3  ;;  %v2925_v50 = vunpack.c.l.b16 %v2669_v53 }
 0x342   : > { %v3498_v51 = vmax.f32 %v3466_v8, 0.0  ;;  %v3280_v8 = vadd.f32 %v5653_v46, %v5655_v23  ;;  %v2430_v46 = vadd.f32 %v5387_v63, %v5420_v34  ;;  %v2928_v2 = vunpack.c.l.b16 %v2672_v5 }
 0x343   : > { %v3363_v27 = vpop.f32.mrf.mxu1  ;;  %v2944_v4 = vpack.c.b16 %v2926_v60, %v2925_v50  ;;  %v2642_v50 = vld [vmem:[#allocation2 + $0x1a2] sm:$0xff]  ;;  %v3287_v60 = vadd.f32 %v5679_v0, %v5683_v62 }
 0x344   : > { %v3526_v40 = vpack.c.bf16 %v3498_v51, %v3497_v61  ;;  %v3364_v52 = vadd.f32 %v3363_v27, %v3275_v20  ;;  %v2833_v61 = vunpack.c.l.b16 %v2609_v6  ;;  %v2834_v51 = vunpack.c.l.b16 %v2610_v48 }
 0x345   : > { %v2674_v35 = vpack.c.bf16 %v2642_v50, %v2642_v50 }
 0x346   : > { %3402 = vmatmul.bf16.gmra.mxu1 %v2943_v55  ;;  %3630 = vmatmul.bf16.gmra.mxu2 %v3526_v40  ;;  %v3431_v21 = vadd.f32 %v3364_v52, %v5378_v31  ;;  %v2850_v20 = vpack.c.b16 %v2834_v51, %v2833_v61  ;;  %v3291_v55 = vpop.f32.mrf.mxu0  ;;  %v2639_v52 = vld [vmem:[#allocation2 + $0x182] sm:$0xff] }
 0x347   : > { %v2671_v13 = vpack.c.bf16 %v2639_v52, %v2639_v52 }
 0x348   : > { %v3467_v44 = vadd.f32 %v5630_v39, %v3431_v21  ;;  %3328 = vmatmul.bf16.gmra.mxu0 %v2850_v20 }
 0x349   : > { %v3202_v40 = vpop.f32.mrf.mxu3 }
 0x34a   : > { %v3499_v15 = vmax.f32 %v3467_v44, 0.0  ;;  %v3292_v7 = vadd.f32 %v3291_v55, %v3202_v40 }
 0x34b   : > { %v3365_v32 = vpop.f32.mrf.mxu1 }
 0x34c   : > { %v3366_v3 = vadd.f32 %v3365_v32, %v3277_v1 }
 0x34e   : > { %v3432_v56 = vadd.f32 %v3366_v3, %v2425_v49  ;;  %v2927_v3 = vunpack.c.l.b16 %v2671_v13  ;;  %v3294_v12 = vpop.f32.mrf.mxu0 }
 0x350   : > { %v3468_v31 = vadd.f32 %v5630_v39, %v3432_v56  ;;  %v2945_v47 = vpack.c.b16 %v2928_v2, %v2927_v3 }
 0x351   : > { %v3205_v57 = vpop.f32.mrf.mxu3 }
 0x352   : > { %v3500_v59 = vmax.f32 %v3468_v31, 0.0  ;;  %v2641_v31 = vld [vmem:[#allocation2 + $0x19a] sm:$0xff]  ;;  %v3295_v2 = vadd.f32 %v3294_v12, %v3205_v57 }
 0x353   : > { %v3368_v29 = vpop.f32.mrf.mxu1 }
 0x354   : > { %v3527_v19 = vpack.c.bf16 %v3500_v59, %v3499_v15  ;;  %v3369_v27 = vadd.f32 %v3368_v29, %v3280_v8  ;;  %v2673_v59 = vpack.c.bf16 %v2641_v31, %v2641_v31  ;;  %v2435_v29 = vadd.f32 %v5413_v18, %v5443_v45 }
 0x356   : > { %3407 = vmatmul.bf16.gmra.mxu1 %v2944_v4  ;;  %3635 = vmatmul.bf16.gmra.mxu2 %v3527_v19  ;;  %v3433_v1 = vadd.f32 %v3369_v27, %v5406_v28  ;;  %v3285_v28 = vadd.f32 %v5669_v33, %v5674_v16  ;;  %v3296_v6 = vpop.f32.mrf.mxu0  ;;  %v2929_v4 = vunpack.c.l.b16 %v2673_v59  ;;  %v2930_v19 = vunpack.c.l.b16 %v2674_v35 }
 0x357   : > { %v3290_v27 = vadd.f32 %v5690_v37, %v5693_v30 }
 0x358   : > { %v3469_v32 = vadd.f32 %v5630_v39, %v3433_v1  ;;  %v2946_v62 = vpack.c.b16 %v2930_v19, %v2929_v4  ;;  %v5928_v4 = vld [vmem:[#allocation15_spill] sm:$0xff]  ;;  %v5929_v19 = vld [vmem:[#allocation12_spill] sm:$0xff] }
 0x359   : > { %v3207_v16 = vpop.f32.mrf.mxu3 }
 0x35a   : > { %v3501_v44 = vmax.f32 %v3469_v32, 0.0  ;;  %v3297_v40 = vadd.f32 %v3296_v6, %v3207_v16 }
 0x35b   : > { %v3370_v21 = vpop.f32.mrf.mxu1 }
 0x35c   : > { %v3371_v23 = vadd.f32 %v3370_v21, %v3282_v42  ;;  %v5926_v21 = vld [vmem:[#allocation18_spill] sm:$0xff] }
 0x35e   : > { %v3434_v53 = vadd.f32 %v3371_v23, %v2430_v46  ;;  %v3299_v52 = vpop.f32.mrf.mxu0  ;;  %v2440_v46 = vadd.f32 %v5926_v21, %v5470_v38 }
 0x360   : > { %v3470_v49 = vadd.f32 %v5630_v39, %v3434_v53 }
 0x361   : > { %v3210_v45 = vpop.f32.mrf.mxu3 }
 0x362   : > { %v3502_v56 = vmax.f32 %v3470_v49, 0.0 }
 0x363   : > { %v3373_v24 = vpop.f32.mrf.mxu1 }
 0x364   : > { %v3528_v63 = vpack.c.bf16 %v3502_v56, %v3501_v44  ;;  %v3374_v34 = vadd.f32 %v3373_v24, %v3285_v28  ;;  %v5927_v28 = vld [vmem:[#allocation11_spill] sm:$0xff] }
 0x366   : > { %3412 = vmatmul.bf16.gmra.mxu1 %v2945_v47  ;;  %3640 = vmatmul.bf16.gmra.mxu2 %v3528_v63  ;;  %v3435_v15 = vadd.f32 %v3374_v34, %v5434_v25  ;;  %v3301_v32 = vpop.f32.mrf.mxu0  ;;  %v2445_v47 = vadd.f32 %v5927_v28, %v5489_v43  ;;  %v5731_v43 = vld [vmem:[%s5880_s6] ss:$0 sm:$0xff] }
 0x368   : > { %v3471_v48 = vadd.f32 %v5630_v39, %v3435_v15 }
 0x369   : > { %v3212_v30 = vpop.f32.mrf.mxu3 }
 0x36a   : > { %v3503_v51 = vmax.f32 %v3471_v48, 0.0 }
 0x36b   : > { %v3375_v11 = vpop.f32.mrf.mxu1 }
 0x36c   : > { %v3376_v33 = vadd.f32 %v3375_v11, %v3287_v60  ;;  %v5726_v60 = vpop.f32.mrf.mxu2 }
 0x36e   : > { %v3436_v8 = vadd.f32 %v3376_v33, %v2435_v29  ;;  %v3302_v33 = vadd.f32 %v3301_v32, %v3212_v30 }
 0x370   : > { %v3472_v61 = vadd.f32 %v5630_v39, %v3436_v8 }
 0x371   : > { %v3215_v38 = vpop.f32.mrf.mxu3 }
 0x372   : > { %v3504_v0 = vmax.f32 %v3472_v61, 0.0  ;;  %v2450_v61 = vadd.f32 %v5929_v19, %v5928_v4 }
 0x373   : > { %v3378_v25 = vpop.f32.mrf.mxu1 }
 0x374   : > { %v3529_v20 = vpack.c.bf16 %v3504_v0, %v3503_v51  ;;  %v3379_v18 = vadd.f32 %v3378_v25, %v3290_v27  ;;  %v4433_v51 = vld [vmem:[%s4552_s20] sm:$0xff] }
 0x376   : > { %3417 = vmatmul.bf16.gmra.mxu1 %v2946_v62  ;;  %3645 = vmatmul.bf16.gmra.mxu2 %v3529_v20  ;;  %v3437_v42 = vadd.f32 %v3379_v18, %v5456_v54  ;;  %v3304_v54 = vpop.f32.mrf.mxu0 }
 0x378   : > { %v3473_v13 = vadd.f32 %v5630_v39, %v3437_v42 }
 0x379   : > { %v3217_v11 = vpop.f32.mrf.mxu3 }
 0x37a   : > { %v3505_v53 = vmax.f32 %v3473_v13, 0.0 }
 0x37b   : > { %v3380_v1 = vpop.f32.mrf.mxu1 }
 0x37c   : > { %v3381_v23 = vadd.f32 %v3380_v1, %v3292_v7 }
 0x37e   : > { %v3438_v5 = vadd.f32 %v3381_v23, %v2440_v46  ;;  %v3306_v59 = vpop.f32.mrf.mxu0  ;;  %v3305_v46 = vadd.f32 %v3304_v54, %v3215_v38  ;;  %v4434_v23 = vld [vmem:[%s4552_s20 + $0x8] sm:$0xff]  ;;  %v5932_v54 = vld [vmem:[#allocation13_spill] sm:$0xff] }
 0x380   : > { %v3474_v37 = vadd.f32 %v5630_v39, %v3438_v5 }
 0x382   : > { %v3506_v49 = vmax.f32 %v3474_v37, 0.0 }
 0x383   : > { %v3383_v3 = vpop.f32.mrf.mxu1 }
 0x384   : > { %v3530_v44 = vpack.c.bf16 %v3506_v49, %v3505_v53  ;;  %v3384_v55 = vadd.f32 %v3383_v3, %v3295_v2  ;;  %v3307_v3 = vadd.f32 %v3306_v59, %v3217_v11  ;;  %v5930_v2 = vld [vmem:[#allocation14_spill] sm:$0xff] }
 0x386   : > { %3650 = vmatmul.bf16.gmra.mxu2 %v3530_v44  ;;  %v3439_v56 = vadd.f32 %v3384_v55, %v5480_v36  ;;  %v3300_v36 = vadd.f32 %v3299_v52, %v3210_v45  ;;  %v3309_v25 = vpop.f32.mrf.mxu0  ;;  %v3220_v52 = vpop.f32.mrf.mxu3 }
 0x388   : > { %v3475_v34 = vadd.f32 %v5630_v39, %v3439_v56  ;;  %v5931_v56 = vld [vmem:[#allocation3_spill] sm:$0xff] }
 0x389   : > { %v2455_v38 = vadd.f32 %v5932_v54, %v5931_v56 }
 0x38a   : > { %v3507_v12 = vmax.f32 %v3475_v34, 0.0 }
 0x38b   : > { %v3385_v24 = vpop.f32.mrf.mxu1 }
 0x38c   : > { %v3386_v63 = vadd.f32 %v3385_v24, %v3297_v40  ;;  %v4435_v24 = vld [vmem:[%s4552_s20 + $0x10] sm:$0xff] }
 0x38e   : > { %v3440_v31 = vadd.f32 %v3386_v63, %v2445_v47  ;;  %v3311_v30 = vpop.f32.mrf.mxu0  ;;  %v3222_v53 = vpop.f32.mrf.mxu3 }
 0x38f   : > { %v3312_v19 = vadd.f32 %v3311_v30, %v3222_v53 }
 0x390   : > { %v3476_v50 = vadd.f32 %v5630_v39, %v3440_v31 }
 0x392   : > { %v3508_v57 = vmax.f32 %v3476_v50, 0.0 }
 0x393   : > { %v3388_v15 = vpop.f32.mrf.mxu1 }
 0x394   : > { %v3531_v35 = vpack.c.bf16 %v3508_v57, %v3507_v12  ;;  %v3389_v29 = vadd.f32 %v3388_v15, %v3300_v36 }
 0x396   : > { %3655 = vmatmul.bf16.gmra.mxu2 %v3531_v35  ;;  %v3441_v16 = vadd.f32 %v3389_v29, %v5499_v26  ;;  %v3314_v57 = vpop.f32.mrf.mxu0  ;;  %v3225_v35 = vpop.f32.mrf.mxu3  ;;  %v3310_v29 = vadd.f32 %v3309_v25, %v3220_v52  ;;  %v4437_v25 = vld [vmem:[%s4552_s20 + $0x20] sm:$0xff] }
 0x398   : > { %v3477_v26 = vadd.f32 %v5630_v39, %v3441_v16 }
 0x399   : > { %v3616_v6 = vpop.f32.mrf.mxu2 }
 0x39a   : > { %v3617_v48 = vadd.f32 %v5731_v43, %v3616_v6  ;;  %v3509_v7 = vmax.f32 %v3477_v26, 0.0  ;;  %v4436_v6 = vld [vmem:[%s4552_s20 + $0x18] sm:$0xff] }
 0x39b   : > { %v3390_v8 = vpop.f32.mrf.mxu1  ;;  %v5934_v26 = vld [vmem:[#allocation4_spill] sm:$0xff] }
 0x39c   : > { %v3696_v0 = vadd.f32 %v4433_v51, %v3617_v48  ;;  %v3391_v62 = vadd.f32 %v3390_v8, %v3302_v33 }
 0x39e   : > { %v3728_v27 = vmax.f32 %v3696_v0, 0.0  ;;  %v3442_v20 = vadd.f32 %v3391_v62, %v2450_v61  ;;  %v5933_v61 = vld [vmem:[#allocation17_spill] sm:$0xff] }
 0x3a0   : > { %3760 = vst [vmem:[%s5743_s19] sm:$0xff] %v3728_v27  ;;  %v3478_v18 = vadd.f32 %v5630_v39, %v3442_v20  ;;  %v2460_v27 = vadd.f32 %v5934_v26, %v5554_v58  ;;  %v3316_v20 = vpop.f32.mrf.mxu0 }
 0x3a1   : > { %v3618_v45 = vpop.f32.mrf.mxu2 }
 0x3a2   : > { %v3510_v42 = vmax.f32 %v3478_v18, 0.0  ;;  %v3619_v1 = vadd.f32 %v5731_v43, %v3618_v45  ;;  %v3227_v45 = vpop.f32.mrf.mxu3 }
 0x3a3   : > { %v3393_v21 = vpop.f32.mrf.mxu1 }
 0x3a4   : > { %v3697_v13 = vadd.f32 %v4434_v23, %v3619_v1  ;;  %v3532_v5 = vpack.c.bf16 %v3510_v42, %v3509_v7  ;;  %v3394_v37 = vadd.f32 %v3393_v21, %v3305_v46 }
 0x3a6   : > { %v3729_v32 = vmax.f32 %v3697_v13, 0.0  ;;  %3660 = vmatmul.bf16.gmra.mxu2 %v3532_v5  ;;  %v3443_v44 = vadd.f32 %v3394_v37, %v5930_v2  ;;  %v4438_v37 = vld [vmem:[%s4552_s20 + $0x28] sm:$0xff] }
 0x3a8   : > { %3761 = vst [vmem:[%s5743_s19 + $0x8] sm:$0xff] %v3729_v32  ;;  %v3479_v63 = vadd.f32 %v5630_v39, %v3443_v44  ;;  %v3315_v32 = vadd.f32 %v3314_v57, %v3225_v35 }
 0x3a9   : > { %v3621_v49 = vpop.f32.mrf.mxu2 }
 0x3aa   : > { %v3622_v55 = vadd.f32 %v5731_v43, %v3621_v49  ;;  %v3511_v15 = vmax.f32 %v3479_v63, 0.0  ;;  %v3319_v49 = vpop.f32.mrf.mxu0  ;;  %v3230_v44 = vpop.f32.mrf.mxu3 }
 0x3ab   : > { %v3395_v40 = vpop.f32.mrf.mxu1 }
 0x3ac   : > { %v3698_v28 = vadd.f32 %v4435_v24, %v3622_v55  ;;  %v3396_v47 = vadd.f32 %v3395_v40, %v3307_v3  ;;  %v3317_v40 = vadd.f32 %v3316_v20, %v3227_v45  ;;  %v2465_v24 = vadd.f32 %v5560_v22, %v5571_v14 }
 0x3ad   : > { %v3320_v14 = vadd.f32 %v3319_v49, %v3230_v44 }
 0x3ae   : > { %v3730_v34 = vmax.f32 %v3698_v28, 0.0  ;;  %v3444_v31 = vadd.f32 %v3396_v47, %v2455_v38  ;;  %v4439_v28 = vld [vmem:[%s4552_s20 + $0x30] sm:$0xff] }
 0x3b0   : > { %3762 = vst [vmem:[%s5743_s19 + $0x10] sm:$0xff] %v3730_v34  ;;  %v3480_v50 = vadd.f32 %v5630_v39, %v3444_v31 }
 0x3b1   : > { %v3623_v12 = vpop.f32.mrf.mxu2 }
 0x3b2   : > { %v3512_v59 = vmax.f32 %v3480_v50, 0.0  ;;  %v3624_v36 = vadd.f32 %v5731_v43, %v3623_v12  ;;  %v3321_v12 = vpop.f32.mrf.mxu0 }
 0x3b3   : > { %v3398_v11 = vpop.f32.mrf.mxu1 }
 0x3b4   : > { %v3699_v33 = vadd.f32 %v4436_v6, %v3624_v36  ;;  %v3533_v16 = vpack.c.bf16 %v3512_v59, %v3511_v15  ;;  %v3399_v8 = vadd.f32 %v3398_v11, %v3310_v29  ;;  %v4440_v11 = vld [vmem:[%s4552_s20 + $0x38] sm:$0xff] }
 0x3b6   : > { %v3731_v48 = vmax.f32 %v3699_v33, 0.0  ;;  %3665 = vmatmul.bf16.gmra.mxu2 %v3533_v16  ;;  %v3445_v51 = vadd.f32 %v3399_v8, %v5933_v61 }
 0x3b8   : > { %3763 = vst [vmem:[%s5743_s19 + $0x18] sm:$0xff] %v3731_v48  ;;  %v3481_v7 = vadd.f32 %v5630_v39, %v3445_v51 }
 0x3b9   : > { %v3626_v4 = vpop.f32.mrf.mxu2 }
 0x3ba   : > { %v3627_v0 = vadd.f32 %v5731_v43, %v3626_v4  ;;  %v3513_v23 = vmax.f32 %v3481_v7, 0.0  ;;  %v3324_v8 = vpop.f32.mrf.mxu0 }
 0x3bb   : > { %v3400_v62 = vpop.f32.mrf.mxu1 }
 0x3bc   : > { %v3700_v52 = vadd.f32 %v4437_v25, %v3627_v0  ;;  %v3401_v18 = vadd.f32 %v3400_v62, %v3312_v19  ;;  %v5935_v62 = vld [vmem:[#allocation5_spill] sm:$0xff] }
 0x3bd   : > { %v2470_v26 = vadd.f32 %v5935_v62, %v5588_v41  ;;  %v4442_v41 = vld [vmem:[%s4552_s20 + $0x48] sm:$0xff] }
 0x3be   : > { %v3732_v42 = vmax.f32 %v3700_v52, 0.0  ;;  %v3446_v1 = vadd.f32 %v3401_v18, %v2460_v27  ;;  %v4441_v27 = vld [vmem:[%s4552_s20 + $0x40] sm:$0xff] }
 0x3c0   : > { %3764 = vst [vmem:[%s5743_s19 + $0x20] sm:$0xff] %v3732_v42  ;;  %v3482_v21 = vadd.f32 %v5630_v39, %v3446_v1 }
 0x3c1   : > { %v3628_v46 = vpop.f32.mrf.mxu2 }
 0x3c2   : > { %v3514_v13 = vmax.f32 %v3482_v21, 0.0  ;;  %v3629_v5 = vadd.f32 %v5731_v43, %v3628_v46 }
 0x3c3   : > { %v3403_v58 = vpop.f32.mrf.mxu1 }
 0x3c4   : > { %v3701_v30 = vadd.f32 %v4438_v37, %v3629_v5  ;;  %v3534_v53 = vpack.c.bf16 %v3514_v13, %v3513_v23  ;;  %v3404_v2 = vadd.f32 %v3403_v58, %v3315_v32  ;;  %v3326_v58 = vpop.f32.mrf.mxu0 }
 0x3c6   : > { %v3733_v3 = vmax.f32 %v3701_v30, 0.0  ;;  %3670 = vmatmul.bf16.gmra.mxu2 %v3534_v53  ;;  %v3447_v56 = vadd.f32 %v3404_v2, %v5565_v10  ;;  %v3232_v10 = vpop.f32.mrf.mxu3 }
 0x3c7   : > { %v3322_v4 = vadd.f32 %v3321_v12, %v3232_v10 }
 0x3c8   : > { %3765 = vst [vmem:[%s5743_s19 + $0x28] sm:$0xff] %v3733_v3  ;;  %v3483_v34 = vadd.f32 %v5630_v39, %v3447_v56  ;;  %v5936_v3 = vld [vmem:[#allocation6_spill] sm:$0xff] }
 0x3c9   : > { %v3631_v55 = vpop.f32.mrf.mxu2 }
 0x3ca   : > { %v3632_v54 = vadd.f32 %v5731_v43, %v3631_v55  ;;  %v3515_v59 = vmax.f32 %v3483_v34, 0.0 }
 0x3cb   : > { %v3405_v38 = vpop.f32.mrf.mxu1 }
 0x3cc   : > { %v3702_v47 = vadd.f32 %v4439_v28, %v3632_v54  ;;  %v3406_v63 = vadd.f32 %v3405_v38, %v3317_v40  ;;  %v5937_v40 = vld [vmem:[#allocation7_spill] sm:$0xff] }
 0x3cd   : > { %v2475_v56 = vadd.f32 %v5937_v40, %v5602_v9  ;;  %v4443_v54 = vld [vmem:[%s4552_s20 + $0x50] sm:$0xff] }
 0x3ce   : > { %v3734_v31 = vmax.f32 %v3702_v47, 0.0  ;;  %v3448_v50 = vadd.f32 %v3406_v63, %v2465_v24  ;;  %v3235_v51 = vpop.f32.mrf.mxu3  ;;  %v3329_v47 = vpop.f32.mrf.mxu0 }
 0x3cf   : > { %v3325_v23 = vadd.f32 %v3324_v8, %v3235_v51 }
 0x3d0   : > { %3766 = vst [vmem:[%s5743_s19 + $0x30] sm:$0xff] %v3734_v31  ;;  %v3484_v57 = vadd.f32 %v5630_v39, %v3448_v50 }
 0x3d1   : > { %v3633_v15 = vpop.f32.mrf.mxu2 }
 0x3d2   : > { %v3516_v36 = vmax.f32 %v3484_v57, 0.0  ;;  %v3634_v35 = vadd.f32 %v5731_v43, %v3633_v15 }
 0x3d3   : > { %v3408_v22 = vpop.f32.mrf.mxu1 }
 0x3d4   : > { %v3703_v29 = vadd.f32 %v4440_v11, %v3634_v35  ;;  %v3535_v6 = vpack.c.bf16 %v3516_v36, %v3515_v59  ;;  %v3409_v16 = vadd.f32 %v3408_v22, %v3320_v14  ;;  %v4444_v36 = vld [vmem:[%s4552_s20 + $0x58] sm:$0xff] }
 0x3d6   : > { %v3735_v33 = vmax.f32 %v3703_v29, 0.0  ;;  %3675 = vmatmul.bf16.gmra.mxu2 %v3535_v6  ;;  %v3449_v19 = vadd.f32 %v3409_v16, %v5577_v17  ;;  %v3237_v32 = vpop.f32.mrf.mxu3  ;;  %v3331_v6 = vpop.f32.mrf.mxu0 }
 0x3d7   : > { %v3327_v49 = vadd.f32 %v3326_v58, %v3237_v32  ;;  %v4448_v32 = vld [vmem:[%s4552_s20 + $0x78] sm:$0xff] }
 0x3d8   : > { %3767 = vst [vmem:[%s5743_s19 + $0x38] sm:$0xff] %v3735_v33  ;;  %v3485_v52 = vadd.f32 %v5630_v39, %v3449_v19 }
 0x3d9   : > { %v3636_v48 = vpop.f32.mrf.mxu2 }
 0x3da   : > { %v3637_v61 = vadd.f32 %v5731_v43, %v3636_v48  ;;  %v3517_v42 = vmax.f32 %v3485_v52, 0.0  ;;  %v5938_v48 = vld [vmem:[#allocation8_spill] sm:$0xff] }
 0x3db   : > { %v3410_v0 = vpop.f32.mrf.mxu1 }
 0x3dc   : > { %v3704_v20 = vadd.f32 %v4441_v27, %v3637_v61  ;;  %v3411_v25 = vadd.f32 %v3410_v0, %v3322_v4  ;;  %v5939_v61 = vld [vmem:[#allocation9_spill] sm:$0xff] }
 0x3dd   : > { %v2480_v51 = vadd.f32 %v5726_v60, %v5939_v61  ;;  %v4445_v0 = vld [vmem:[%s4552_s20 + $0x60] sm:$0xff]  ;;  %v4446_v60 = vld [vmem:[%s4552_s20 + $0x68] sm:$0xff] }
 0x3de   : > { %v3736_v18 = vmax.f32 %v3704_v20, 0.0  ;;  %v3450_v45 = vadd.f32 %v3411_v25, %v2470_v26  ;;  %v3240_v28 = vpop.f32.mrf.mxu3 }
 0x3df   : > { %v3330_v10 = vadd.f32 %v3329_v47, %v3240_v28  ;;  %v4451_v47 = vld [vmem:[%s4552_s20 + $0x90] sm:$0xff] }
 0x3e0   : > { %3768 = vst [vmem:[%s5743_s19 + $0x40] sm:$0xff] %v3736_v18  ;;  %v3486_v7 = vadd.f32 %v5630_v39, %v3450_v45 }
 0x3e1   : > { %v3638_v17 = vpop.f32.mrf.mxu2 }
 0x3e2   : > { %v3518_v1 = vmax.f32 %v3486_v7, 0.0  ;;  %v3639_v21 = vadd.f32 %v5731_v43, %v3638_v17 }
 0x3e3   : > { %v3413_v46 = vpop.f32.mrf.mxu1 }
 0x3e4   : > { %v3705_v13 = vadd.f32 %v4442_v41, %v3639_v21  ;;  %v3536_v5 = vpack.c.bf16 %v3518_v1, %v3517_v42  ;;  %v3414_v30 = vadd.f32 %v3413_v46, %v3325_v23 }
 0x3e6   : > { %v3737_v37 = vmax.f32 %v3705_v13, 0.0  ;;  %3680 = vmatmul.bf16.gmra.mxu2 %v3536_v5  ;;  %v3451_v2 = vadd.f32 %v3414_v30, %v5936_v3  ;;  %v3242_v29 = vpop.f32.mrf.mxu3  ;;  %v4449_v3 = vld [vmem:[%s4552_s20 + $0x80] sm:$0xff] }
 0x3e7   : > { %v3332_v16 = vadd.f32 %v3331_v6, %v3242_v29 }
 0x3e8   : > { %3769 = vst [vmem:[%s5743_s19 + $0x48] sm:$0xff] %v3737_v37  ;;  %v3487_v63 = vadd.f32 %v5630_v39, %v3451_v2 }
 0x3e9   : > { %v3641_v53 = vpop.f32.mrf.mxu2 }
 0x3ea   : > { %v3642_v44 = vadd.f32 %v5731_v43, %v3641_v53  ;;  %v3519_v57 = vmax.f32 %v3487_v63, 0.0 }
 0x3eb   : > { %v3415_v55 = vpop.f32.mrf.mxu1 }
 0x3ec   : > { %v3706_v38 = vadd.f32 %v4443_v54, %v3642_v44  ;;  %v3416_v24 = vadd.f32 %v3415_v55, %v3327_v49 }
 0x3ee   : > { %v3738_v34 = vmax.f32 %v3706_v38, 0.0  ;;  %v3452_v31 = vadd.f32 %v3416_v24, %v2475_v56  ;;  %v4450_v56 = vld [vmem:[%s4552_s20 + $0x88] sm:$0xff] }
 0x3f0   : > { %3770 = vst [vmem:[%s5743_s19 + $0x50] sm:$0xff] %v3738_v34  ;;  %v3488_v50 = vadd.f32 %v5630_v39, %v3452_v31 }
 0x3f1   : > { %v3643_v12 = vpop.f32.mrf.mxu2 }
 0x3f2   : > { %v3520_v15 = vmax.f32 %v3488_v50, 0.0  ;;  %v3644_v9 = vadd.f32 %v5731_v43, %v3643_v12  ;;  %v4452_v12 = vld [vmem:[%s4552_s20 + $0x98] sm:$0xff] }
 0x3f3   : > { %v3418_v59 = vpop.f32.mrf.mxu1 }
 0x3f4   : > { %v3707_v35 = vadd.f32 %v4444_v36, %v3644_v9  ;;  %v3537_v22 = vpack.c.bf16 %v3520_v15, %v3519_v57  ;;  %v3419_v11 = vadd.f32 %v3418_v59, %v3330_v10  ;;  %v4453_v59 = vld [vmem:[%s4552_s20 + $0xa0] sm:$0xff] }
 0x3f6   : > { %v3739_v14 = vmax.f32 %v3707_v35, 0.0  ;;  %3685 = vmatmul.bf16.gmra.mxu2 %v3537_v22  ;;  %v3453_v8 = vadd.f32 %v3419_v11, %v5938_v48  ;;  %v4454_v11 = vld [vmem:[%s4552_s20 + $0xa8] sm:$0xff]  ;;  %v4455_v48 = vld [vmem:[%s4552_s20 + $0xb0] sm:$0xff] }
 0x3f8   : > { %3771 = vst [vmem:[%s5743_s19 + $0x58] sm:$0xff] %v3739_v14  ;;  %v3489_v27 = vadd.f32 %v5630_v39, %v3453_v8 }
 0x3f9   : > { %v3646_v33 = vpop.f32.mrf.mxu2 }
 0x3fa   : > { %v3647_v4 = vadd.f32 %v5731_v43, %v3646_v33  ;;  %v3521_v45 = vmax.f32 %v3489_v27, 0.0 }
 0x3fb   : > { %v3420_v19 = vpop.f32.mrf.mxu1 }
 0x3fc   : > { %v3708_v62 = vadd.f32 %v4445_v0, %v3647_v4  ;;  %v3421_v26 = vadd.f32 %v3420_v19, %v3332_v16 }
 0x3fe   : > { %v3740_v20 = vmax.f32 %v3708_v62, 0.0  ;;  %v3454_v25 = vadd.f32 %v3421_v26, %v2480_v51  ;;  %v4456_v51 = vld [vmem:[%s4552_s20 + $0xb8] sm:$0xff] }
 0x400   : > { %3772 = vst [vmem:[%s5743_s19 + $0x60] sm:$0xff] %v3740_v20  ;;  %v3490_v52 = vadd.f32 %v5630_v39, %v3454_v25  ;;  %v4447_v39 = vld [vmem:[%s4552_s20 + $0x70] sm:$0xff]  ;;  %v4457_v20 = vld [vmem:[%s4552_s20 + $0xc0] sm:$0xff] }
 0x401   : > { %v3648_v18 = vpop.f32.mrf.mxu2 }
 0x402   : > { %v3522_v7 = vmax.f32 %v3490_v52, 0.0  ;;  %v3649_v17 = vadd.f32 %v5731_v43, %v3648_v18 }
 0x404   : > { %v3709_v42 = vadd.f32 %v4446_v60, %v3649_v17  ;;  %v3538_v1 = vpack.c.bf16 %v3522_v7, %v3521_v45  ;;  %v4458_v7 = vld [vmem:[%s4552_s20 + $0xc8] sm:$0xff] }
 0x406   : > { %v3741_v21 = vmax.f32 %v3709_v42, 0.0  ;;  %3690 = vmatmul.bf16.gmra.mxu2 %v3538_v1 }
 0x408   : > { %3773 = vst [vmem:[%s5743_s19 + $0x68] sm:$0xff] %v3741_v21  ;;  %v4459_v21 = vld [vmem:[%s4552_s20 + $0xd0] sm:$0xff] }
 0x409   : > { %v3651_v46 = vpop.f32.mrf.mxu2 }
 0x40a   : > { %v3652_v23 = vadd.f32 %v5731_v43, %v3651_v46 }
 0x40c   : > { %v3710_v41 = vadd.f32 %v4447_v39, %v3652_v23 }
 0x40e   : > { %v3742_v13 = vmax.f32 %v3710_v41, 0.0 }
 0x410   : > { %3774 = vst [vmem:[%s5743_s19 + $0x70] sm:$0xff] %v3742_v13  ;;  %v4460_v13 = vld [vmem:[%s4552_s20 + $0xd8] sm:$0xff] }
 0x411   : > { %v3653_v5 = vpop.f32.mrf.mxu2 }
 0x412   : > { %v3654_v58 = vadd.f32 %v5731_v43, %v3653_v5 }
 0x414   : > { %v3711_v37 = vadd.f32 %v4448_v32, %v3654_v58 }
 0x416   : > { %v3743_v30 = vmax.f32 %v3711_v37, 0.0 }
 0x418   : > { %3775 = vst [vmem:[%s5743_s19 + $0x78] sm:$0xff] %v3743_v30  ;;  %v4461_v30 = vld [vmem:[%s4552_s20 + $0xe0] sm:$0xff] }
 0x419   : > { %v3656_v53 = vpop.f32.mrf.mxu2 }
 0x41a   : > { %v3657_v49 = vadd.f32 %v5731_v43, %v3656_v53 }
 0x41c   : > { %v3712_v2 = vadd.f32 %v4449_v3, %v3657_v49 }
 0x41e   : > { %v3744_v44 = vmax.f32 %v3712_v2, 0.0 }
 0x420   : > { %3776 = vst [vmem:[%s5743_s19 + $0x80] sm:$0xff] %v3744_v44  ;;  %v4462_v44 = vld [vmem:[%s4552_s20 + $0xe8] sm:$0xff] }
 0x421   : > { %v3658_v55 = vpop.f32.mrf.mxu2 }
 0x422   : > { %v3659_v40 = vadd.f32 %v5731_v43, %v3658_v55 }
 0x424   : > { %v3713_v54 = vadd.f32 %v4450_v56, %v3659_v40 }
 0x426   : > { %v3745_v38 = vmax.f32 %v3713_v54, 0.0 }
 0x428   : > { %3777 = vst [vmem:[%s5743_s19 + $0x88] sm:$0xff] %v3745_v38  ;;  %v4463_v38 = vld [vmem:[%s4552_s20 + $0xf0] sm:$0xff] }
 0x429   : > { %v3661_v24 = vpop.f32.mrf.mxu2 }
 0x42a   : > { %v3662_v28 = vadd.f32 %v5731_v43, %v3661_v24 }
 0x42c   : > { %v3714_v63 = vadd.f32 %v4451_v47, %v3662_v28 }
 0x42e   : > { %v3746_v34 = vmax.f32 %v3714_v63, 0.0 }
 0x430   : > { %3778 = vst [vmem:[%s5743_s19 + $0x90] sm:$0xff] %v3746_v34  ;;  %v4464_v34 = vld [vmem:[%s4552_s20 + $0xf8] sm:$0xff] }
 0x431   : > { %v3663_v31 = vpop.f32.mrf.mxu2 }
 0x432   : > { %v3664_v50 = vadd.f32 %v5731_v43, %v3663_v31 }
 0x434   : > { %v3715_v57 = vadd.f32 %v4452_v12, %v3664_v50 }
 0x436   : > { %v3747_v10 = vmax.f32 %v3715_v57, 0.0 }
 0x438   : > { %3779 = vst [vmem:[%s5743_s19 + $0x98] sm:$0xff] %v3747_v10 }
 0x439   : > { %v3666_v15 = vpop.f32.mrf.mxu2 }
 0x43a   : > { %v3667_v9 = vadd.f32 %v5731_v43, %v3666_v15 }
 0x43c   : > { %v3716_v36 = vadd.f32 %v4453_v59, %v3667_v9 }
 0x43e   : > { %v3748_v35 = vmax.f32 %v3716_v36, 0.0 }
 0x440   : > { %3780 = vst [vmem:[%s5743_s19 + $0xa0] sm:$0xff] %v3748_v35 }
 0x441   : > { %v3668_v22 = vpop.f32.mrf.mxu2 }
 0x442   : > { %v3669_v14 = vadd.f32 %v5731_v43, %v3668_v22 }
 0x444   : > { %v3717_v29 = vadd.f32 %v4454_v11, %v3669_v14 }
 0x446   : > { %v3749_v6 = vmax.f32 %v3717_v29, 0.0 }
 0x448   : > { %3781 = vst [vmem:[%s5743_s19 + $0xa8] sm:$0xff] %v3749_v6 }
 0x449   : > { %v3671_v33 = vpop.f32.mrf.mxu2 }
 0x44a   : > { %v3672_v16 = vadd.f32 %v5731_v43, %v3671_v33 }
 0x44c   : > { %v3718_v8 = vadd.f32 %v4455_v48, %v3672_v16 }
 0x44e   : > { %v3750_v4 = vmax.f32 %v3718_v8, 0.0 }
 0x450   : > { %3782 = vst [vmem:[%s5743_s19 + $0xb0] sm:$0xff] %v3750_v4 }
 0x451   : > { %v3673_v19 = vpop.f32.mrf.mxu2 }
 0x452   : > { %v3674_v61 = vadd.f32 %v5731_v43, %v3673_v19 }
 0x454   : > { %v3719_v0 = vadd.f32 %v4456_v51, %v3674_v61 }
 0x456   : > { %v3751_v62 = vmax.f32 %v3719_v0, 0.0 }
 0x458   : > { %3783 = vst [vmem:[%s5743_s19 + $0xb8] sm:$0xff] %v3751_v62 }
 0x459   : > { %v3676_v26 = vpop.f32.mrf.mxu2 }
 0x45a   : > { %v3677_v27 = vadd.f32 %v5731_v43, %v3676_v26 }
 0x45c   : > { %v3720_v25 = vadd.f32 %v4457_v20, %v3677_v27 }
 0x45e   : > { %v3752_v52 = vmax.f32 %v3720_v25, 0.0 }
 0x460   : > { %3784 = vst [vmem:[%s5743_s19 + $0xc0] sm:$0xff] %v3752_v52 }
 0x461   : > { %v3678_v18 = vpop.f32.mrf.mxu2 }
 0x462   : > { %v3679_v45 = vadd.f32 %v5731_v43, %v3678_v18 }
 0x464   : > { %v3721_v17 = vadd.f32 %v4458_v7, %v3679_v45 }
 0x466   : > { %v3753_v60 = vmax.f32 %v3721_v17, 0.0 }
 0x468   : > { %3785 = vst [vmem:[%s5743_s19 + $0xc8] sm:$0xff] %v3753_v60 }
 0x469   : > { %v3681_v42 = vpop.f32.mrf.mxu2 }
 0x46a   : > { %v3682_v1 = vadd.f32 %v5731_v43, %v3681_v42 }
 0x46c   : > { %v3722_v46 = vadd.f32 %v4459_v21, %v3682_v1 }
 0x46e   : > { %v3754_v23 = vmax.f32 %v3722_v46, 0.0 }
 0x470   : > { %3786 = vst [vmem:[%s5743_s19 + $0xd0] sm:$0xff] %v3754_v23 }
 0x471   : > { %v3683_v39 = vpop.f32.mrf.mxu2 }
 0x472   : > { %v3684_v41 = vadd.f32 %v5731_v43, %v3683_v39 }
 0x474   : > { %v3723_v5 = vadd.f32 %v4460_v13, %v3684_v41 }
 0x476   : > { %v3755_v58 = vmax.f32 %v3723_v5, 0.0 }
 0x478   : > { %3787 = vst [vmem:[%s5743_s19 + $0xd8] sm:$0xff] %v3755_v58 }
 0x479   : > { %v3686_v32 = vpop.f32.mrf.mxu2 }
 0x47a   : > { %v3687_v37 = vadd.f32 %v5731_v43, %v3686_v32 }
 0x47c   : > { %v3724_v53 = vadd.f32 %v4461_v30, %v3687_v37 }
 0x47e   : > { %v3756_v49 = vmax.f32 %v3724_v53, 0.0 }
 0x480   : > { %3788 = vst [vmem:[%s5743_s19 + $0xe0] sm:$0xff] %v3756_v49 }
 0x481   : > { %v3688_v3 = vpop.f32.mrf.mxu2 }
 0x482   : > { %v3689_v2 = vadd.f32 %v5731_v43, %v3688_v3 }
 0x484   : > { %v3725_v55 = vadd.f32 %v4462_v44, %v3689_v2 }
 0x486   : > { %v3757_v40 = vmax.f32 %v3725_v55, 0.0 }
 0x488   : > { %3789 = vst [vmem:[%s5743_s19 + $0xe8] sm:$0xff] %v3757_v40 }
 0x489   : > { %v3691_v56 = vpop.f32.mrf.mxu2 }
 0x48a   : > { %v3692_v54 = vadd.f32 %v5731_v43, %v3691_v56 }
 0x48c   : > { %v3726_v24 = vadd.f32 %v4463_v38, %v3692_v54 }
 0x48e   : > { %v3758_v28 = vmax.f32 %v3726_v24, 0.0 }
 0x490   : > { %3790 = vst [vmem:[%s5743_s19 + $0xf0] sm:$0xff] %v3758_v28 }
 0x491   : > { %v3693_v47 = vpop.f32.mrf.mxu2 }
 0x492   : > { %v3694_v63 = vadd.f32 %v5731_v43, %v3693_v47 }
 0x494   : > { %v3727_v31 = vadd.f32 %v4464_v34, %v3694_v63 }
 0x496   : > { %v3759_v50 = vmax.f32 %v3727_v31, 0.0 }
 0x498   : > { %3791 = vst [vmem:[%s5743_s19 + $0xf8] sm:$0xff] %v3759_v50 }
 0x499 PF: > { %s17_s24 = sadd.s32 1, %s4471_s24  }
 0x49a   : > { %p14_p4 = scmp.ge.s32.totalorder %s17_s24, 4  }
 0x49c   :  { %16 = sbr.rel (!%p14_p4) target bundleno = 1 (0x1), region = 82 }

</bundles_post_ra>
